<compile_context>
chip_gen: v5e
topology: v5e:2x2
jax: 0.10.0
libtpu: 0.0.40
codegen_flags: <defaults>
</compile_context>

<pallas_src>
import jax
import jax.numpy as jnp
from jax import lax
from jax.experimental import pallas as pl
from jax.experimental.pallas import tpu as pltpu

EPS = 1e-8


# ----------------------------- fused separator kernel ----------------------

def _make_separator_kernel(dilations, T, Bblk, bn_ch):
    dilations = tuple(int(d) for d in dilations)
    NB = len(dilations)

    def kernel(x_ref, wbn_ref, bbn_ref, w1_ref, pv_ref, wrs_ref, brs_ref,
               a1_ref, a2_ref, outa_ref, outw_ref, outb_ref, y_ref):
        L = x_ref.shape[1]                       # = Bblk * T

        # Hoisted per-lane index rows: a couple of vregs only.
        lane = lax.broadcasted_iota(jnp.int32, (1, L), 1)
        tpos = lane                              # position within each sample
        for s in range(1, Bblk):
            tpos = jnp.where(lane >= s * T, lane - s * T, tpos)

        def gn_stats(h):
            # Per-sample GroupNorm(1, C) stats over (C, T); single pass.
            csum = jnp.sum(h, axis=0, keepdims=True)          # (1, L)
            csq = jnp.sum(h * h, axis=0, keepdims=True)       # (1, L)
            inv_n = 1.0 / float(h.shape[0] * T)
            if Bblk == 1:
                mu = jnp.sum(csum) * inv_n
                var = jnp.maximum(jnp.sum(csq) * inv_n - mu * mu, 0.0)
                return mu, lax.rsqrt(var + EPS)
            mu_row = jnp.zeros((1, L), jnp.float32)
            r_row = jnp.zeros((1, L), jnp.float32)
            for s in range(Bblk):
                m = (lane >= s * T) & (lane < (s + 1) * T)
                s1 = jnp.sum(jnp.where(m, csum, 0.0))
                s2 = jnp.sum(jnp.where(m, csq, 0.0))
                mu = s1 * inv_n
                var = jnp.maximum(s2 * inv_n - mu * mu, 0.0)
                r = lax.rsqrt(var + EPS)
                mu_row = jnp.where(m, mu, mu_row)
                r_row = jnp.where(m, r, r_row)
            return mu_row, r_row

        # ---- pre stage: LN (affine folded into BN conv) -> 1x1 conv ----
        x = x_ref[...]                                        # (Cin, L)
        mu, r = gn_stats(x)
        out = jnp.dot(wbn_ref[...], (x - mu) * r,
                      preferred_element_type=jnp.float32) + bbn_ref[...]

        brs_all = brs_ref[...]                                # (bn+skip, NB)
        skip = None

        # ---- TCN blocks (statically unrolled; NB=4 here) ----
        for blk in range(NB):
            d = dilations[blk]
            pv = pv_ref[blk]                                  # (hid, 7)
            b1 = pv[:, 0:1]
            g1w = pv[:, 1:2]
            g1b = pv[:, 2:3]
            dw0 = pv[:, 3:4]
            dw1 = pv[:, 4:5]
            dw2 = pv[:, 5:6]
            db = pv[:, 6:7]

            # 1x1 conv -> PReLU -> GroupNorm (with affine)
            h = jnp.dot(w1_ref[blk], out,
                        preferred_element_type=jnp.float32) + b1
            a1 = a1_ref[blk]
            h = jnp.where(h > 0, h, a1 * h)
            mu, r = gn_stats(h)
            h = (h - mu) * r * g1w + g1b

            # depthwise conv: kernel=3, dilation=d, zero padding=d
            m_l = tpos >= d                                   # (1, L) rows
            m_r = tpos < (T - d)
            h_m = jnp.where(m_l, pltpu.roll(h, d, 1), 0.0)    # h[:, t-d]
            h_p = jnp.where(m_r, pltpu.roll(h, L - d, 1), 0.0)  # h[:, t+d]
            h2 = dw0 * h_m + dw1 * h + dw2 * h_p + db

            # PReLU -> GroupNorm (affine folded into residual+skip conv)
            a2 = a2_ref[blk]
            h2 = jnp.where(h2 > 0, h2, a2 * h2)
            mu, r = gn_stats(h2)
            h2 = (h2 - mu) * r

            # merged residual + skip projection: one (bn+skip, hid) MXU dot
            rs = jnp.dot(wrs_ref[blk], h2,
                         preferred_element_type=jnp.float32) \
                + brs_all[:, blk:blk + 1]
            out = out + rs[:bn_ch]
            skp = rs[bn_ch:]
            skip = skp if skip is None else skip + skp

        # ---- out stage: PReLU -> 1x1 conv ----
        oa = outa_ref[0]
        skip = jnp.where(skip > 0, skip, oa * skip)
        y_ref[...] = jnp.dot(outw_ref[...], skip,
                             preferred_element_type=jnp.float32) + outb_ref[...]

    return kernel


def separator_forward(x, params, dilations):
    B, in_ch, T = x.shape
    NB = len(dilations)
    out_ch = params['out_w'].shape[0]
    bn_ch = params['bn_w'].shape[0]
    hid = params['w1'].shape[1]
    skip_ch = params['wrs'].shape[1] - bn_ch
    assert T % 128 == 0, "lane tiling requires T % 128 == 0"

    # Two grid steps (one per v7x TensorCore); each packs Bblk samples into
    # the lane dimension.  Odd batch sizes fall back to one sample per step.
    G = 2 if (B % 2 == 0 and B >= 2) else B
    Bblk = B // G
    L = Bblk * T

    HIGH = lax.Precision.HIGHEST
    # --- host-side exact folds of GroupNorm affines into adjacent 1x1 convs
    wbn_eff = params['bn_w'] * params['ln_w'].reshape(1, -1)
    bbn_eff = params['bn_b'] + jnp.matmul(params['bn_w'], params['ln_b'],
                                          precision=HIGH)
    wrs_eff = params['wrs'] * jnp.transpose(params['g2w'], (0, 2, 1))
    brs_eff = params['brs'] + jnp.matmul(params['wrs'], params['g2b'],
                                         precision=HIGH)
    brs_all = jnp.transpose(brs_eff[:, :, 0], (1, 0))          # (bn+skip, NB)
    # pack per-block per-channel vectors: [b1 | g1w | g1b | dw0 dw1 dw2 | db]
    pvec = jnp.concatenate([params['b1'], params['g1w'], params['g1b'],
                            params['dw'], params['db']], axis=-1)  # (NB,hid,7)

    # layout plumbing (wrapper-side): samples packed along the lane axis
    xp = jnp.transpose(x, (1, 0, 2)).reshape(in_ch, B * T)

    kernel = _make_separator_kernel(dilations, T, Bblk, bn_ch)

    def _full(a):
        return pl.BlockSpec(a.shape, lambda g, z=(0,) * a.ndim: z)

    def _smem():
        return pl.BlockSpec(memory_space=pltpu.MemorySpace.SMEM)

    # advisory cost estimate for the XLA scheduler
    mm_flops = 2 * B * T * (in_ch * bn_ch
                            + NB * (bn_ch * hid + (bn_ch + skip_ch) * hid)
                            + skip_ch * out_ch)
    ew_flops = B * T * (NB * hid * 24 + in_ch * 4 + skip_ch * 2)
    all_ins = (xp, wbn_eff, bbn_eff, params['w1'], pvec, wrs_eff, brs_all,
               params['a1'], params['a2'], params['out_a'],
               params['out_w'], params['out_b'])
    bytes_accessed = sum(int(a.size) * 4 for a in all_ins) + B * out_ch * T * 4
    ce = pl.CostEstimate(flops=int(mm_flops + ew_flops),
                         transcendentals=int(B * (2 * NB + 1)),
                         bytes_accessed=int(bytes_accessed))

    yp = pl.pallas_call(
        kernel,
        out_shape=jax.ShapeDtypeStruct((out_ch, B * T), jnp.float32),
        grid=(G,),
        in_specs=[
            pl.BlockSpec((in_ch, L), lambda g: (0, g)),
            _full(wbn_eff), _full(bbn_eff),
            _full(params['w1']), _full(pvec), _full(wrs_eff), _full(brs_all),
            _smem(), _smem(), _smem(),
            _full(params['out_w']), _full(params['out_b']),
        ],
        out_specs=pl.BlockSpec((out_ch, L), lambda g: (0, g)),
        compiler_params=pltpu.CompilerParams(
            dimension_semantics=("parallel",),
            vmem_limit_bytes=32 * 1024 * 1024),
        cost_estimate=ce,
    )(*all_ins)

    return jnp.transpose(yp.reshape(out_ch, B, T), (1, 0, 2))


# ----------------------------- plain-JAX reference -------------------------

def ref_forward(x, params, dilations):
    def gnorm(v, w, b):
        mu = jnp.mean(v, axis=(1, 2), keepdims=True)
        var = jnp.mean(jnp.square(v - mu), axis=(1, 2), keepdims=True)
        return (v - mu) / jnp.sqrt(var + EPS) * w[None] + b[None]

    def conv1x1(v, w, b):
        return jnp.einsum('oi,bit->bot', w, v,
                          precision=lax.Precision.HIGHEST) + b[None]

    def prelu(v, a):
        return jnp.where(v > 0, v, a * v)

    B, _, T = x.shape
    bn_ch = params['bn_w'].shape[0]
    skip_ch = params['wrs'].shape[1] - bn_ch
    out = conv1x1(gnorm(x, params['ln_w'], params['ln_b']),
                  params['bn_w'], params['bn_b'])
    skip_conn = jnp.zeros((B, skip_ch, T), jnp.float32)
    for i, d in enumerate(dilations):
        h = gnorm(prelu(conv1x1(out, params['w1'][i], params['b1'][i]),
                        params['a1'][i]),
                  params['g1w'][i], params['g1b'][i])
        hp = jnp.pad(h, ((0, 0), (0, 0), (d, d)))
        dw = params['dw'][i]                                  # (hid, 3)
        h2 = (dw[:, 0:1][None] * hp[:, :, 0:T]
              + dw[:, 1:2][None] * hp[:, :, d:d + T]
              + dw[:, 2:3][None] * hp[:, :, 2 * d:2 * d + T]
              + params['db'][i][None])
        h2 = gnorm(prelu(h2, params['a2'][i]), params['g2w'][i], params['g2b'][i])
        wres, wskip = params['wrs'][i][:bn_ch], params['wrs'][i][bn_ch:]
        bres, bskip = params['brs'][i][:bn_ch], params['brs'][i][bn_ch:]
        out = out + conv1x1(h2, wres, bres)
        skip_conn = skip_conn + conv1x1(h2, wskip, bskip)
    return conv1x1(prelu(skip_conn, params['out_a'][0]),
                   params['out_w'], params['out_b'])


# ----------------------------- deterministic params ------------------------

def init_params(key, in_ch, out_ch, bn_ch, hid_ch, skip_ch, num_blocks):
    def nrm(k, shape, s=0.2):
        return s * jax.random.normal(k, shape, jnp.float32)

    keys = iter(jax.random.split(key, 16 + 20 * num_blocks))
    NB = num_blocks
    params = {
        'ln_w': 1.0 + nrm(next(keys), (in_ch, 1), 0.1),
        'ln_b': nrm(next(keys), (in_ch, 1), 0.1),
        'bn_w': nrm(next(keys), (bn_ch, in_ch)),
        'bn_b': nrm(next(keys), (bn_ch, 1), 0.1),
        'out_a': jnp.full((1,), 0.25, jnp.float32),          # PReLU default
        'out_w': nrm(next(keys), (out_ch, skip_ch)),
        'out_b': nrm(next(keys), (out_ch, 1), 0.1),
        # stacked per-block parameters (leading axis = block index)
        'w1': nrm(next(keys), (NB, hid_ch, bn_ch)),
        'b1': nrm(next(keys), (NB, hid_ch, 1), 0.1),
        'a1': jnp.full((NB,), 0.25, jnp.float32),
        'g1w': 1.0 + nrm(next(keys), (NB, hid_ch, 1), 0.1),
        'g1b': nrm(next(keys), (NB, hid_ch, 1), 0.1),
        'dw': nrm(next(keys), (NB, hid_ch, 3)),               # depthwise taps
        'db': nrm(next(keys), (NB, hid_ch, 1), 0.1),
        'a2': jnp.full((NB,), 0.25, jnp.float32),
        'g2w': 1.0 + nrm(next(keys), (NB, hid_ch, 1), 0.1),
        'g2b': nrm(next(keys), (NB, hid_ch, 1), 0.1),
        # merged residual+skip projection: (NB, bn+skip, hid)
        'wrs': nrm(next(keys), (NB, bn_ch + skip_ch, hid_ch)),
        'brs': nrm(next(keys), (NB, bn_ch + skip_ch, 1), 0.1),
    }
    return params


# ----------------------------- main ----------------------------------------

if __name__ == "__main__":
    B, in_ch, out_ch = 4, 8, 8
    # bn_ch / skip_ch kept multiples of 8 so the rs[:bn]/rs[bn:] split is
    # sublane-tile aligned (no per-block VMEM copy).
    bn_ch, hid_ch, skip_ch = 16, 32, 16
    kernel_size, layer, stack = 3, 2, 2
    T = 128
    assert kernel_size == 3  # Pallas depthwise kernel is specialized to 3 taps

    # Separator: stack x layer blocks with dilation = 2**j, padding = 2**j
    dilations = [2 ** j for _ in range(stack) for j in range(layer)]
    num_blocks = len(dilations)

    key = jax.random.PRNGKey(0)
    kx, kp = jax.random.split(key)
    x = jax.random.normal(kx, (B, in_ch, T), jnp.float32)
    params = init_params(kp, in_ch, out_ch, bn_ch, hid_ch, skip_ch, num_blocks)

    y = separator_forward(x, params, dilations)
    y = jax.block_until_ready(y)

    y_ref = ref_forward(x, params, dilations)
    err = float(jnp.max(jnp.abs(y - y_ref)))
    assert y.shape == (B, out_ch, T), y.shape
    assert err < 5e-3, f"max abs error vs reference: {err}"
    print("KERNEL_OK")
</pallas_src>

<mosaic_0001>
module attributes {stable_mosaic.version = 11 : i64} {
  func.func @kernel(%arg0: i32, %arg1: memref<8x256xf32, #tpu.memory_space<vmem>>, %arg2: memref<16x8xf32, #tpu.memory_space<vmem>>, %arg3: memref<16x1xf32, #tpu.memory_space<vmem>>, %arg4: memref<4x32x16xf32, #tpu.memory_space<vmem>>, %arg5: memref<4x32x7xf32, #tpu.memory_space<vmem>>, %arg6: memref<4x32x32xf32, #tpu.memory_space<vmem>>, %arg7: memref<32x4xf32, #tpu.memory_space<vmem>>, %arg8: memref<4xf32, #tpu.memory_space<smem>>, %arg9: memref<4xf32, #tpu.memory_space<smem>>, %arg10: memref<1xf32, #tpu.memory_space<smem>>, %arg11: memref<8x16xf32, #tpu.memory_space<vmem>>, %arg12: memref<8x1xf32, #tpu.memory_space<vmem>>, %arg13: memref<8x256xf32, #tpu.memory_space<vmem>>) attributes {dimension_semantics = [#tpu.dimension_semantics<parallel>], iteration_bounds = array<i64: 2>, scalar_prefetch = 0 : i64, scratch_operands = 0 : i64, tpu.core_type = #tpu.core_type<tc>, window_params = [{transform_indices = @transform_0, window_bounds = array<i64: 8, 256>}, {pipeline_mode = #tpu.pipeline_mode<synchronous>, transform_indices = @transform_1, window_bounds = array<i64: 16, 8>}, {pipeline_mode = #tpu.pipeline_mode<synchronous>, transform_indices = @transform_2, window_bounds = array<i64: 16, 1>}, {pipeline_mode = #tpu.pipeline_mode<synchronous>, transform_indices = @transform_3, window_bounds = array<i64: 4, 32, 16>}, {pipeline_mode = #tpu.pipeline_mode<synchronous>, transform_indices = @transform_4, window_bounds = array<i64: 4, 32, 7>}, {pipeline_mode = #tpu.pipeline_mode<synchronous>, transform_indices = @transform_5, window_bounds = array<i64: 4, 32, 32>}, {pipeline_mode = #tpu.pipeline_mode<synchronous>, transform_indices = @transform_6, window_bounds = array<i64: 32, 4>}, {transform_indices = @transform_7, window_bounds = array<i64: 4>}, {transform_indices = @transform_8, window_bounds = array<i64: 4>}, {transform_indices = @transform_9, window_bounds = array<i64: 1>}, {pipeline_mode = #tpu.pipeline_mode<synchronous>, transform_indices = @transform_10, window_bounds = array<i64: 8, 16>}, {pipeline_mode = #tpu.pipeline_mode<synchronous>, transform_indices = @transform_11, window_bounds = array<i64: 8, 1>}, {transform_indices = @transform_12, window_bounds = array<i64: 8, 256>}]} {
    %0 = tpu.iota {dimensions = array<i32: 1>} : vector<1x256xi32>
    %c128_i32 = arith.constant 128 : i32
    %1 = vector.broadcast %c128_i32 : i32 to vector<1x256xi32>
    %2 = arith.cmpi sge, %0, %1 : vector<1x256xi32>
    %c128_i32_0 = arith.constant 128 : i32
    %3 = vector.broadcast %c128_i32_0 : i32 to vector<1x256xi32>
    %4 = arith.subi %0, %3 : vector<1x256xi32>
    %5 = arith.select %2, %4, %0 : vector<1x256xi1>, vector<1x256xi32>
    %c0 = arith.constant 0 : index
    %c0_1 = arith.constant 0 : index
    %6 = vector.load %arg1[%c0, %c0_1] : memref<8x256xf32, #tpu.memory_space<vmem>>, vector<8x256xf32>
    %cst = arith.constant dense<0.000000e+00> : vector<256xf32>
    %7 = vector.multi_reduction <add>, %6, %cst [0] : vector<8x256xf32> to vector<256xf32>
    %8 = vector.shape_cast %7 : vector<256xf32> to vector<1x256xf32>
    %9 = arith.mulf %6, %6 : vector<8x256xf32>
    %cst_2 = arith.constant dense<0.000000e+00> : vector<256xf32>
    %10 = vector.multi_reduction <add>, %9, %cst_2 [0] : vector<8x256xf32> to vector<256xf32>
    %11 = vector.shape_cast %10 : vector<256xf32> to vector<1x256xf32>
    %cst_3 = arith.constant 0.000000e+00 : f32
    %12 = vector.broadcast %cst_3 : f32 to vector<1x256xf32>
    %cst_4 = arith.constant 0.000000e+00 : f32
    %13 = vector.broadcast %cst_4 : f32 to vector<1x256xf32>
    %c0_i32 = arith.constant 0 : i32
    %14 = vector.broadcast %c0_i32 : i32 to vector<1x256xi32>
    %15 = arith.cmpi sge, %0, %14 : vector<1x256xi32>
    %c128_i32_5 = arith.constant 128 : i32
    %16 = vector.broadcast %c128_i32_5 : i32 to vector<1x256xi32>
    %17 = arith.cmpi slt, %0, %16 : vector<1x256xi32>
    %18 = arith.andi %15, %17 : vector<1x256xi1>
    %cst_6 = arith.constant 0.000000e+00 : f32
    %19 = vector.broadcast %cst_6 : f32 to vector<1x256xf32>
    %20 = arith.select %18, %8, %19 : vector<1x256xi1>, vector<1x256xf32>
    %21 = vector.shape_cast %20 : vector<1x256xf32> to vector<1x1x256xf32>
    %cst_7 = arith.constant dense<0.000000e+00> : vector<1xf32>
    %22 = vector.multi_reduction <add>, %21, %cst_7 [1, 2] : vector<1x1x256xf32> to vector<1xf32>
    %23 = vector.shape_cast %22 : vector<1xf32> to vector<1x1x1xf32>
    %24 = vector.extract %23[0, 0, 0] : f32 from vector<1x1x1xf32>
    %cst_8 = arith.constant 0.000000e+00 : f32
    %25 = vector.broadcast %cst_8 : f32 to vector<1x256xf32>
    %26 = arith.select %18, %11, %25 : vector<1x256xi1>, vector<1x256xf32>
    %27 = vector.shape_cast %26 : vector<1x256xf32> to vector<1x1x256xf32>
    %cst_9 = arith.constant dense<0.000000e+00> : vector<1xf32>
    %28 = vector.multi_reduction <add>, %27, %cst_9 [1, 2] : vector<1x1x256xf32> to vector<1xf32>
    %29 = vector.shape_cast %28 : vector<1xf32> to vector<1x1x1xf32>
    %30 = vector.extract %29[0, 0, 0] : f32 from vector<1x1x1xf32>
    %cst_10 = arith.constant 9.765625E-4 : f32
    %31 = arith.mulf %24, %cst_10 : f32
    %cst_11 = arith.constant 9.765625E-4 : f32
    %32 = arith.mulf %30, %cst_11 : f32
    %33 = arith.mulf %31, %31 : f32
    %34 = arith.subf %32, %33 : f32
    %cst_12 = arith.constant 0.000000e+00 : f32
    %35 = arith.maximumf %34, %cst_12 : f32
    %cst_13 = arith.constant 9.99999993E-9 : f32
    %36 = arith.addf %35, %cst_13 : f32
    %37 = math.rsqrt %36 : f32
    %38 = vector.broadcast %31 : f32 to vector<1x256xf32>
    %39 = arith.select %18, %38, %12 : vector<1x256xi1>, vector<1x256xf32>
    %40 = vector.broadcast %37 : f32 to vector<1x256xf32>
    %41 = arith.select %18, %40, %13 : vector<1x256xi1>, vector<1x256xf32>
    %c128_i32_14 = arith.constant 128 : i32
    %42 = vector.broadcast %c128_i32_14 : i32 to vector<1x256xi32>
    %43 = arith.cmpi sge, %0, %42 : vector<1x256xi32>
    %c256_i32 = arith.constant 256 : i32
    %44 = vector.broadcast %c256_i32 : i32 to vector<1x256xi32>
    %45 = arith.cmpi slt, %0, %44 : vector<1x256xi32>
    %46 = arith.andi %43, %45 : vector<1x256xi1>
    %cst_15 = arith.constant 0.000000e+00 : f32
    %47 = vector.broadcast %cst_15 : f32 to vector<1x256xf32>
    %48 = arith.select %46, %8, %47 : vector<1x256xi1>, vector<1x256xf32>
    %49 = vector.shape_cast %48 : vector<1x256xf32> to vector<1x1x256xf32>
    %cst_16 = arith.constant dense<0.000000e+00> : vector<1xf32>
    %50 = vector.multi_reduction <add>, %49, %cst_16 [1, 2] : vector<1x1x256xf32> to vector<1xf32>
    %51 = vector.shape_cast %50 : vector<1xf32> to vector<1x1x1xf32>
    %52 = vector.extract %51[0, 0, 0] : f32 from vector<1x1x1xf32>
    %cst_17 = arith.constant 0.000000e+00 : f32
    %53 = vector.broadcast %cst_17 : f32 to vector<1x256xf32>
    %54 = arith.select %46, %11, %53 : vector<1x256xi1>, vector<1x256xf32>
    %55 = vector.shape_cast %54 : vector<1x256xf32> to vector<1x1x256xf32>
    %cst_18 = arith.constant dense<0.000000e+00> : vector<1xf32>
    %56 = vector.multi_reduction <add>, %55, %cst_18 [1, 2] : vector<1x1x256xf32> to vector<1xf32>
    %57 = vector.shape_cast %56 : vector<1xf32> to vector<1x1x1xf32>
    %58 = vector.extract %57[0, 0, 0] : f32 from vector<1x1x1xf32>
    %cst_19 = arith.constant 9.765625E-4 : f32
    %59 = arith.mulf %52, %cst_19 : f32
    %cst_20 = arith.constant 9.765625E-4 : f32
    %60 = arith.mulf %58, %cst_20 : f32
    %61 = arith.mulf %59, %59 : f32
    %62 = arith.subf %60, %61 : f32
    %cst_21 = arith.constant 0.000000e+00 : f32
    %63 = arith.maximumf %62, %cst_21 : f32
    %cst_22 = arith.constant 9.99999993E-9 : f32
    %64 = arith.addf %63, %cst_22 : f32
    %65 = math.rsqrt %64 : f32
    %66 = vector.broadcast %59 : f32 to vector<1x256xf32>
    %67 = arith.select %46, %66, %39 : vector<1x256xi1>, vector<1x256xf32>
    %68 = vector.broadcast %65 : f32 to vector<1x256xf32>
    %69 = arith.select %46, %68, %41 : vector<1x256xi1>, vector<1x256xf32>
    %c0_23 = arith.constant 0 : index
    %c0_24 = arith.constant 0 : index
    %70 = vector.load %arg2[%c0_23, %c0_24] : memref<16x8xf32, #tpu.memory_space<vmem>>, vector<16x8xf32>
    %71 = vector.broadcast %67 : vector<1x256xf32> to vector<8x256xf32>
    %72 = arith.subf %6, %71 : vector<8x256xf32>
    %73 = vector.broadcast %69 : vector<1x256xf32> to vector<8x256xf32>
    %74 = arith.mulf %72, %73 : vector<8x256xf32>
    %cst_25 = arith.constant dense<0.000000e+00> : vector<16x256xf32>
    %75 = tpu.matmul %70, %74, %cst_25 {dimension_numbers = #tpu.dot_dimension_numbers<[1], [0], [0], [1], [0, 0, 1, 1], [], []>} : vector<16x8xf32>, vector<8x256xf32>, vector<16x256xf32> -> vector<16x256xf32>
    %c0_26 = arith.constant 0 : index
    %c0_27 = arith.constant 0 : index
    %76 = vector.load %arg3[%c0_26, %c0_27] : memref<16x1xf32, #tpu.memory_space<vmem>>, vector<16x1xf32>
    %77 = vector.broadcast %76 : vector<16x1xf32> to vector<16x256xf32>
    %78 = arith.addf %75, %77 : vector<16x256xf32>
    %c0_28 = arith.constant 0 : index
    %c0_29 = arith.constant 0 : index
    %79 = vector.load %arg7[%c0_28, %c0_29] : memref<32x4xf32, #tpu.memory_space<vmem>>, vector<32x4xf32>
    %c0_30 = arith.constant 0 : index
    %c0_31 = arith.constant 0 : index
    %c0_32 = arith.constant 0 : index
    %80 = vector.load %arg5[%c0_30, %c0_31, %c0_32] : memref<4x32x7xf32, #tpu.memory_space<vmem>>, vector<1x32x7xf32>
    %81 = vector.shape_cast %80 : vector<1x32x7xf32> to vector<32x7xf32>
    %82 = vector.extract_strided_slice %81 {offsets = [0, 0], sizes = [32, 1], strides = [1, 1]} : vector<32x7xf32> to vector<32x1xf32>
    %83 = vector.extract_strided_slice %81 {offsets = [0, 1], sizes = [32, 1], strides = [1, 1]} : vector<32x7xf32> to vector<32x1xf32>
    %84 = vector.extract_strided_slice %81 {offsets = [0, 2], sizes = [32, 1], strides = [1, 1]} : vector<32x7xf32> to vector<32x1xf32>
    %85 = vector.extract_strided_slice %81 {offsets = [0, 3], sizes = [32, 1], strides = [1, 1]} : vector<32x7xf32> to vector<32x1xf32>
    %86 = vector.extract_strided_slice %81 {offsets = [0, 4], sizes = [32, 1], strides = [1, 1]} : vector<32x7xf32> to vector<32x1xf32>
    %87 = vector.extract_strided_slice %81 {offsets = [0, 5], sizes = [32, 1], strides = [1, 1]} : vector<32x7xf32> to vector<32x1xf32>
    %88 = vector.extract_strided_slice %81 {offsets = [0, 6], sizes = [32, 1], strides = [1, 1]} : vector<32x7xf32> to vector<32x1xf32>
    %c0_33 = arith.constant 0 : index
    %c0_34 = arith.constant 0 : index
    %c0_35 = arith.constant 0 : index
    %89 = vector.load %arg4[%c0_33, %c0_34, %c0_35] : memref<4x32x16xf32, #tpu.memory_space<vmem>>, vector<1x32x16xf32>
    %90 = vector.shape_cast %89 : vector<1x32x16xf32> to vector<32x16xf32>
    %cst_36 = arith.constant dense<0.000000e+00> : vector<32x256xf32>
    %91 = tpu.matmul %90, %78, %cst_36 {dimension_numbers = #tpu.dot_dimension_numbers<[1], [0], [0], [1], [0, 0, 1, 1], [], []>} : vector<32x16xf32>, vector<16x256xf32>, vector<32x256xf32> -> vector<32x256xf32>
    %92 = vector.broadcast %82 : vector<32x1xf32> to vector<32x256xf32>
    %93 = arith.addf %91, %92 : vector<32x256xf32>
    %c0_37 = arith.constant 0 : index
    %94 = memref.load %arg8[%c0_37] : memref<4xf32, #tpu.memory_space<smem>>
    %cst_38 = arith.constant 0.000000e+00 : f32
    %95 = vector.broadcast %cst_38 : f32 to vector<32x256xf32>
    %96 = arith.cmpf ogt, %93, %95 : vector<32x256xf32>
    %97 = vector.broadcast %94 : f32 to vector<32x256xf32>
    %98 = arith.mulf %97, %93 : vector<32x256xf32>
    %99 = arith.select %96, %93, %98 : vector<32x256xi1>, vector<32x256xf32>
    %cst_39 = arith.constant dense<0.000000e+00> : vector<256xf32>
    %100 = vector.multi_reduction <add>, %99, %cst_39 [0] : vector<32x256xf32> to vector<256xf32>
    %101 = vector.shape_cast %100 : vector<256xf32> to vector<1x256xf32>
    %102 = arith.mulf %99, %99 : vector<32x256xf32>
    %cst_40 = arith.constant dense<0.000000e+00> : vector<256xf32>
    %103 = vector.multi_reduction <add>, %102, %cst_40 [0] : vector<32x256xf32> to vector<256xf32>
    %104 = vector.shape_cast %103 : vector<256xf32> to vector<1x256xf32>
    %cst_41 = arith.constant 0.000000e+00 : f32
    %105 = vector.broadcast %cst_41 : f32 to vector<1x256xf32>
    %cst_42 = arith.constant 0.000000e+00 : f32
    %106 = vector.broadcast %cst_42 : f32 to vector<1x256xf32>
    %c0_i32_43 = arith.constant 0 : i32
    %107 = vector.broadcast %c0_i32_43 : i32 to vector<1x256xi32>
    %108 = arith.cmpi sge, %0, %107 : vector<1x256xi32>
    %c128_i32_44 = arith.constant 128 : i32
    %109 = vector.broadcast %c128_i32_44 : i32 to vector<1x256xi32>
    %110 = arith.cmpi slt, %0, %109 : vector<1x256xi32>
    %111 = arith.andi %108, %110 : vector<1x256xi1>
    %cst_45 = arith.constant 0.000000e+00 : f32
    %112 = vector.broadcast %cst_45 : f32 to vector<1x256xf32>
    %113 = arith.select %111, %101, %112 : vector<1x256xi1>, vector<1x256xf32>
    %114 = vector.shape_cast %113 : vector<1x256xf32> to vector<1x1x256xf32>
    %cst_46 = arith.constant dense<0.000000e+00> : vector<1xf32>
    %115 = vector.multi_reduction <add>, %114, %cst_46 [1, 2] : vector<1x1x256xf32> to vector<1xf32>
    %116 = vector.shape_cast %115 : vector<1xf32> to vector<1x1x1xf32>
    %117 = vector.extract %116[0, 0, 0] : f32 from vector<1x1x1xf32>
    %cst_47 = arith.constant 0.000000e+00 : f32
    %118 = vector.broadcast %cst_47 : f32 to vector<1x256xf32>
    %119 = arith.select %111, %104, %118 : vector<1x256xi1>, vector<1x256xf32>
    %120 = vector.shape_cast %119 : vector<1x256xf32> to vector<1x1x256xf32>
    %cst_48 = arith.constant dense<0.000000e+00> : vector<1xf32>
    %121 = vector.multi_reduction <add>, %120, %cst_48 [1, 2] : vector<1x1x256xf32> to vector<1xf32>
    %122 = vector.shape_cast %121 : vector<1xf32> to vector<1x1x1xf32>
    %123 = vector.extract %122[0, 0, 0] : f32 from vector<1x1x1xf32>
    %cst_49 = arith.constant 2.44140625E-4 : f32
    %124 = arith.mulf %117, %cst_49 : f32
    %cst_50 = arith.constant 2.44140625E-4 : f32
    %125 = arith.mulf %123, %cst_50 : f32
    %126 = arith.mulf %124, %124 : f32
    %127 = arith.subf %125, %126 : f32
    %cst_51 = arith.constant 0.000000e+00 : f32
    %128 = arith.maximumf %127, %cst_51 : f32
    %cst_52 = arith.constant 9.99999993E-9 : f32
    %129 = arith.addf %128, %cst_52 : f32
    %130 = math.rsqrt %129 : f32
    %131 = vector.broadcast %124 : f32 to vector<1x256xf32>
    %132 = arith.select %111, %131, %105 : vector<1x256xi1>, vector<1x256xf32>
    %133 = vector.broadcast %130 : f32 to vector<1x256xf32>
    %134 = arith.select %111, %133, %106 : vector<1x256xi1>, vector<1x256xf32>
    %c128_i32_53 = arith.constant 128 : i32
    %135 = vector.broadcast %c128_i32_53 : i32 to vector<1x256xi32>
    %136 = arith.cmpi sge, %0, %135 : vector<1x256xi32>
    %c256_i32_54 = arith.constant 256 : i32
    %137 = vector.broadcast %c256_i32_54 : i32 to vector<1x256xi32>
    %138 = arith.cmpi slt, %0, %137 : vector<1x256xi32>
    %139 = arith.andi %136, %138 : vector<1x256xi1>
    %cst_55 = arith.constant 0.000000e+00 : f32
    %140 = vector.broadcast %cst_55 : f32 to vector<1x256xf32>
    %141 = arith.select %139, %101, %140 : vector<1x256xi1>, vector<1x256xf32>
    %142 = vector.shape_cast %141 : vector<1x256xf32> to vector<1x1x256xf32>
    %cst_56 = arith.constant dense<0.000000e+00> : vector<1xf32>
    %143 = vector.multi_reduction <add>, %142, %cst_56 [1, 2] : vector<1x1x256xf32> to vector<1xf32>
    %144 = vector.shape_cast %143 : vector<1xf32> to vector<1x1x1xf32>
    %145 = vector.extract %144[0, 0, 0] : f32 from vector<1x1x1xf32>
    %cst_57 = arith.constant 0.000000e+00 : f32
    %146 = vector.broadcast %cst_57 : f32 to vector<1x256xf32>
    %147 = arith.select %139, %104, %146 : vector<1x256xi1>, vector<1x256xf32>
    %148 = vector.shape_cast %147 : vector<1x256xf32> to vector<1x1x256xf32>
    %cst_58 = arith.constant dense<0.000000e+00> : vector<1xf32>
    %149 = vector.multi_reduction <add>, %148, %cst_58 [1, 2] : vector<1x1x256xf32> to vector<1xf32>
    %150 = vector.shape_cast %149 : vector<1xf32> to vector<1x1x1xf32>
    %151 = vector.extract %150[0, 0, 0] : f32 from vector<1x1x1xf32>
    %cst_59 = arith.constant 2.44140625E-4 : f32
    %152 = arith.mulf %145, %cst_59 : f32
    %cst_60 = arith.constant 2.44140625E-4 : f32
    %153 = arith.mulf %151, %cst_60 : f32
    %154 = arith.mulf %152, %152 : f32
    %155 = arith.subf %153, %154 : f32
    %cst_61 = arith.constant 0.000000e+00 : f32
    %156 = arith.maximumf %155, %cst_61 : f32
    %cst_62 = arith.constant 9.99999993E-9 : f32
    %157 = arith.addf %156, %cst_62 : f32
    %158 = math.rsqrt %157 : f32
    %159 = vector.broadcast %152 : f32 to vector<1x256xf32>
    %160 = arith.select %139, %159, %132 : vector<1x256xi1>, vector<1x256xf32>
    %161 = vector.broadcast %158 : f32 to vector<1x256xf32>
    %162 = arith.select %139, %161, %134 : vector<1x256xi1>, vector<1x256xf32>
    %163 = vector.broadcast %160 : vector<1x256xf32> to vector<32x256xf32>
    %164 = arith.subf %99, %163 : vector<32x256xf32>
    %165 = vector.broadcast %162 : vector<1x256xf32> to vector<32x256xf32>
    %166 = arith.mulf %164, %165 : vector<32x256xf32>
    %167 = vector.broadcast %83 : vector<32x1xf32> to vector<32x256xf32>
    %168 = arith.mulf %166, %167 : vector<32x256xf32>
    %169 = vector.broadcast %84 : vector<32x1xf32> to vector<32x256xf32>
    %170 = arith.addf %168, %169 : vector<32x256xf32>
    %c1_i32 = arith.constant 1 : i32
    %171 = vector.broadcast %c1_i32 : i32 to vector<1x256xi32>
    %172 = arith.cmpi sge, %5, %171 : vector<1x256xi32>
    %c127_i32 = arith.constant 127 : i32
    %173 = vector.broadcast %c127_i32 : i32 to vector<1x256xi32>
    %174 = arith.cmpi slt, %5, %173 : vector<1x256xi32>
    %c1_i32_63 = arith.constant 1 : i32
    %175 = tpu.dynamic_rotate %170 by %c1_i32_63 dim 1 : vector<32x256xf32>, i32 -> vector<32x256xf32>
    %cst_64 = arith.constant 0.000000e+00 : f32
    %176 = vector.shape_cast %172 : vector<1x256xi1> to vector<1x256xi1>
    %177 = vector.broadcast %176 : vector<1x256xi1> to vector<32x256xi1>
    %178 = vector.broadcast %cst_64 : f32 to vector<32x256xf32>
    %179 = arith.select %177, %175, %178 : vector<32x256xi1>, vector<32x256xf32>
    %c255_i32 = arith.constant 255 : i32
    %180 = tpu.dynamic_rotate %170 by %c255_i32 dim 1 : vector<32x256xf32>, i32 -> vector<32x256xf32>
    %cst_65 = arith.constant 0.000000e+00 : f32
    %181 = vector.shape_cast %174 : vector<1x256xi1> to vector<1x256xi1>
    %182 = vector.broadcast %181 : vector<1x256xi1> to vector<32x256xi1>
    %183 = vector.broadcast %cst_65 : f32 to vector<32x256xf32>
    %184 = arith.select %182, %180, %183 : vector<32x256xi1>, vector<32x256xf32>
    %185 = vector.broadcast %85 : vector<32x1xf32> to vector<32x256xf32>
    %186 = arith.mulf %185, %179 : vector<32x256xf32>
    %187 = vector.broadcast %86 : vector<32x1xf32> to vector<32x256xf32>
    %188 = arith.mulf %187, %170 : vector<32x256xf32>
    %189 = arith.addf %186, %188 : vector<32x256xf32>
    %190 = vector.broadcast %87 : vector<32x1xf32> to vector<32x256xf32>
    %191 = arith.mulf %190, %184 : vector<32x256xf32>
    %192 = arith.addf %189, %191 : vector<32x256xf32>
    %193 = vector.broadcast %88 : vector<32x1xf32> to vector<32x256xf32>
    %194 = arith.addf %192, %193 : vector<32x256xf32>
    %c0_66 = arith.constant 0 : index
    %195 = memref.load %arg9[%c0_66] : memref<4xf32, #tpu.memory_space<smem>>
    %cst_67 = arith.constant 0.000000e+00 : f32
    %196 = vector.broadcast %cst_67 : f32 to vector<32x256xf32>
    %197 = arith.cmpf ogt, %194, %196 : vector<32x256xf32>
    %198 = vector.broadcast %195 : f32 to vector<32x256xf32>
    %199 = arith.mulf %198, %194 : vector<32x256xf32>
    %200 = arith.select %197, %194, %199 : vector<32x256xi1>, vector<32x256xf32>
    %cst_68 = arith.constant dense<0.000000e+00> : vector<256xf32>
    %201 = vector.multi_reduction <add>, %200, %cst_68 [0] : vector<32x256xf32> to vector<256xf32>
    %202 = vector.shape_cast %201 : vector<256xf32> to vector<1x256xf32>
    %203 = arith.mulf %200, %200 : vector<32x256xf32>
    %cst_69 = arith.constant dense<0.000000e+00> : vector<256xf32>
    %204 = vector.multi_reduction <add>, %203, %cst_69 [0] : vector<32x256xf32> to vector<256xf32>
    %205 = vector.shape_cast %204 : vector<256xf32> to vector<1x256xf32>
    %cst_70 = arith.constant 0.000000e+00 : f32
    %206 = vector.broadcast %cst_70 : f32 to vector<1x256xf32>
    %cst_71 = arith.constant 0.000000e+00 : f32
    %207 = vector.broadcast %cst_71 : f32 to vector<1x256xf32>
    %c0_i32_72 = arith.constant 0 : i32
    %208 = vector.broadcast %c0_i32_72 : i32 to vector<1x256xi32>
    %209 = arith.cmpi sge, %0, %208 : vector<1x256xi32>
    %c128_i32_73 = arith.constant 128 : i32
    %210 = vector.broadcast %c128_i32_73 : i32 to vector<1x256xi32>
    %211 = arith.cmpi slt, %0, %210 : vector<1x256xi32>
    %212 = arith.andi %209, %211 : vector<1x256xi1>
    %cst_74 = arith.constant 0.000000e+00 : f32
    %213 = vector.broadcast %cst_74 : f32 to vector<1x256xf32>
    %214 = arith.select %212, %202, %213 : vector<1x256xi1>, vector<1x256xf32>
    %215 = vector.shape_cast %214 : vector<1x256xf32> to vector<1x1x256xf32>
    %cst_75 = arith.constant dense<0.000000e+00> : vector<1xf32>
    %216 = vector.multi_reduction <add>, %215, %cst_75 [1, 2] : vector<1x1x256xf32> to vector<1xf32>
    %217 = vector.shape_cast %216 : vector<1xf32> to vector<1x1x1xf32>
    %218 = vector.extract %217[0, 0, 0] : f32 from vector<1x1x1xf32>
    %cst_76 = arith.constant 0.000000e+00 : f32
    %219 = vector.broadcast %cst_76 : f32 to vector<1x256xf32>
    %220 = arith.select %212, %205, %219 : vector<1x256xi1>, vector<1x256xf32>
    %221 = vector.shape_cast %220 : vector<1x256xf32> to vector<1x1x256xf32>
    %cst_77 = arith.constant dense<0.000000e+00> : vector<1xf32>
    %222 = vector.multi_reduction <add>, %221, %cst_77 [1, 2] : vector<1x1x256xf32> to vector<1xf32>
    %223 = vector.shape_cast %222 : vector<1xf32> to vector<1x1x1xf32>
    %224 = vector.extract %223[0, 0, 0] : f32 from vector<1x1x1xf32>
    %cst_78 = arith.constant 2.44140625E-4 : f32
    %225 = arith.mulf %218, %cst_78 : f32
    %cst_79 = arith.constant 2.44140625E-4 : f32
    %226 = arith.mulf %224, %cst_79 : f32
    %227 = arith.mulf %225, %225 : f32
    %228 = arith.subf %226, %227 : f32
    %cst_80 = arith.constant 0.000000e+00 : f32
    %229 = arith.maximumf %228, %cst_80 : f32
    %cst_81 = arith.constant 9.99999993E-9 : f32
    %230 = arith.addf %229, %cst_81 : f32
    %231 = math.rsqrt %230 : f32
    %232 = vector.broadcast %225 : f32 to vector<1x256xf32>
    %233 = arith.select %212, %232, %206 : vector<1x256xi1>, vector<1x256xf32>
    %234 = vector.broadcast %231 : f32 to vector<1x256xf32>
    %235 = arith.select %212, %234, %207 : vector<1x256xi1>, vector<1x256xf32>
    %c128_i32_82 = arith.constant 128 : i32
    %236 = vector.broadcast %c128_i32_82 : i32 to vector<1x256xi32>
    %237 = arith.cmpi sge, %0, %236 : vector<1x256xi32>
    %c256_i32_83 = arith.constant 256 : i32
    %238 = vector.broadcast %c256_i32_83 : i32 to vector<1x256xi32>
    %239 = arith.cmpi slt, %0, %238 : vector<1x256xi32>
    %240 = arith.andi %237, %239 : vector<1x256xi1>
    %cst_84 = arith.constant 0.000000e+00 : f32
    %241 = vector.broadcast %cst_84 : f32 to vector<1x256xf32>
    %242 = arith.select %240, %202, %241 : vector<1x256xi1>, vector<1x256xf32>
    %243 = vector.shape_cast %242 : vector<1x256xf32> to vector<1x1x256xf32>
    %cst_85 = arith.constant dense<0.000000e+00> : vector<1xf32>
    %244 = vector.multi_reduction <add>, %243, %cst_85 [1, 2] : vector<1x1x256xf32> to vector<1xf32>
    %245 = vector.shape_cast %244 : vector<1xf32> to vector<1x1x1xf32>
    %246 = vector.extract %245[0, 0, 0] : f32 from vector<1x1x1xf32>
    %cst_86 = arith.constant 0.000000e+00 : f32
    %247 = vector.broadcast %cst_86 : f32 to vector<1x256xf32>
    %248 = arith.select %240, %205, %247 : vector<1x256xi1>, vector<1x256xf32>
    %249 = vector.shape_cast %248 : vector<1x256xf32> to vector<1x1x256xf32>
    %cst_87 = arith.constant dense<0.000000e+00> : vector<1xf32>
    %250 = vector.multi_reduction <add>, %249, %cst_87 [1, 2] : vector<1x1x256xf32> to vector<1xf32>
    %251 = vector.shape_cast %250 : vector<1xf32> to vector<1x1x1xf32>
    %252 = vector.extract %251[0, 0, 0] : f32 from vector<1x1x1xf32>
    %cst_88 = arith.constant 2.44140625E-4 : f32
    %253 = arith.mulf %246, %cst_88 : f32
    %cst_89 = arith.constant 2.44140625E-4 : f32
    %254 = arith.mulf %252, %cst_89 : f32
    %255 = arith.mulf %253, %253 : f32
    %256 = arith.subf %254, %255 : f32
    %cst_90 = arith.constant 0.000000e+00 : f32
    %257 = arith.maximumf %256, %cst_90 : f32
    %cst_91 = arith.constant 9.99999993E-9 : f32
    %258 = arith.addf %257, %cst_91 : f32
    %259 = math.rsqrt %258 : f32
    %260 = vector.broadcast %253 : f32 to vector<1x256xf32>
    %261 = arith.select %240, %260, %233 : vector<1x256xi1>, vector<1x256xf32>
    %262 = vector.broadcast %259 : f32 to vector<1x256xf32>
    %263 = arith.select %240, %262, %235 : vector<1x256xi1>, vector<1x256xf32>
    %264 = vector.broadcast %261 : vector<1x256xf32> to vector<32x256xf32>
    %265 = arith.subf %200, %264 : vector<32x256xf32>
    %266 = vector.broadcast %263 : vector<1x256xf32> to vector<32x256xf32>
    %267 = arith.mulf %265, %266 : vector<32x256xf32>
    %c0_92 = arith.constant 0 : index
    %c0_93 = arith.constant 0 : index
    %c0_94 = arith.constant 0 : index
    %268 = vector.load %arg6[%c0_92, %c0_93, %c0_94] : memref<4x32x32xf32, #tpu.memory_space<vmem>>, vector<1x32x32xf32>
    %269 = vector.shape_cast %268 : vector<1x32x32xf32> to vector<32x32xf32>
    %cst_95 = arith.constant dense<0.000000e+00> : vector<32x256xf32>
    %270 = tpu.matmul %269, %267, %cst_95 {dimension_numbers = #tpu.dot_dimension_numbers<[1], [0], [0], [1], [0, 0, 1, 1], [], []>} : vector<32x32xf32>, vector<32x256xf32>, vector<32x256xf32> -> vector<32x256xf32>
    %271 = vector.extract_strided_slice %79 {offsets = [0, 0], sizes = [32, 1], strides = [1, 1]} : vector<32x4xf32> to vector<32x1xf32>
    %272 = vector.broadcast %271 : vector<32x1xf32> to vector<32x256xf32>
    %273 = arith.addf %270, %272 : vector<32x256xf32>
    %274 = vector.extract_strided_slice %273 {offsets = [0, 0], sizes = [16, 256], strides = [1, 1]} : vector<32x256xf32> to vector<16x256xf32>
    %275 = arith.addf %78, %274 : vector<16x256xf32>
    %276 = vector.extract_strided_slice %273 {offsets = [16, 0], sizes = [16, 256], strides = [1, 1]} : vector<32x256xf32> to vector<16x256xf32>
    %c1 = arith.constant 1 : index
    %c0_96 = arith.constant 0 : index
    %c0_97 = arith.constant 0 : index
    %277 = vector.load %arg5[%c1, %c0_96, %c0_97] : memref<4x32x7xf32, #tpu.memory_space<vmem>>, vector<1x32x7xf32>
    %278 = vector.shape_cast %277 : vector<1x32x7xf32> to vector<32x7xf32>
    %279 = vector.extract_strided_slice %278 {offsets = [0, 0], sizes = [32, 1], strides = [1, 1]} : vector<32x7xf32> to vector<32x1xf32>
    %280 = vector.extract_strided_slice %278 {offsets = [0, 1], sizes = [32, 1], strides = [1, 1]} : vector<32x7xf32> to vector<32x1xf32>
    %281 = vector.extract_strided_slice %278 {offsets = [0, 2], sizes = [32, 1], strides = [1, 1]} : vector<32x7xf32> to vector<32x1xf32>
    %282 = vector.extract_strided_slice %278 {offsets = [0, 3], sizes = [32, 1], strides = [1, 1]} : vector<32x7xf32> to vector<32x1xf32>
    %283 = vector.extract_strided_slice %278 {offsets = [0, 4], sizes = [32, 1], strides = [1, 1]} : vector<32x7xf32> to vector<32x1xf32>
    %284 = vector.extract_strided_slice %278 {offsets = [0, 5], sizes = [32, 1], strides = [1, 1]} : vector<32x7xf32> to vector<32x1xf32>
    %285 = vector.extract_strided_slice %278 {offsets = [0, 6], sizes = [32, 1], strides = [1, 1]} : vector<32x7xf32> to vector<32x1xf32>
    %c1_98 = arith.constant 1 : index
    %c0_99 = arith.constant 0 : index
    %c0_100 = arith.constant 0 : index
    %286 = vector.load %arg4[%c1_98, %c0_99, %c0_100] : memref<4x32x16xf32, #tpu.memory_space<vmem>>, vector<1x32x16xf32>
    %287 = vector.shape_cast %286 : vector<1x32x16xf32> to vector<32x16xf32>
    %cst_101 = arith.constant dense<0.000000e+00> : vector<32x256xf32>
    %288 = tpu.matmul %287, %275, %cst_101 {dimension_numbers = #tpu.dot_dimension_numbers<[1], [0], [0], [1], [0, 0, 1, 1], [], []>} : vector<32x16xf32>, vector<16x256xf32>, vector<32x256xf32> -> vector<32x256xf32>
    %289 = vector.broadcast %279 : vector<32x1xf32> to vector<32x256xf32>
    %290 = arith.addf %288, %289 : vector<32x256xf32>
    %c1_102 = arith.constant 1 : index
    %291 = memref.load %arg8[%c1_102] : memref<4xf32, #tpu.memory_space<smem>>
    %cst_103 = arith.constant 0.000000e+00 : f32
    %292 = vector.broadcast %cst_103 : f32 to vector<32x256xf32>
    %293 = arith.cmpf ogt, %290, %292 : vector<32x256xf32>
    %294 = vector.broadcast %291 : f32 to vector<32x256xf32>
    %295 = arith.mulf %294, %290 : vector<32x256xf32>
    %296 = arith.select %293, %290, %295 : vector<32x256xi1>, vector<32x256xf32>
    %cst_104 = arith.constant dense<0.000000e+00> : vector<256xf32>
    %297 = vector.multi_reduction <add>, %296, %cst_104 [0] : vector<32x256xf32> to vector<256xf32>
    %298 = vector.shape_cast %297 : vector<256xf32> to vector<1x256xf32>
    %299 = arith.mulf %296, %296 : vector<32x256xf32>
    %cst_105 = arith.constant dense<0.000000e+00> : vector<256xf32>
    %300 = vector.multi_reduction <add>, %299, %cst_105 [0] : vector<32x256xf32> to vector<256xf32>
    %301 = vector.shape_cast %300 : vector<256xf32> to vector<1x256xf32>
    %cst_106 = arith.constant 0.000000e+00 : f32
    %302 = vector.broadcast %cst_106 : f32 to vector<1x256xf32>
    %cst_107 = arith.constant 0.000000e+00 : f32
    %303 = vector.broadcast %cst_107 : f32 to vector<1x256xf32>
    %c0_i32_108 = arith.constant 0 : i32
    %304 = vector.broadcast %c0_i32_108 : i32 to vector<1x256xi32>
    %305 = arith.cmpi sge, %0, %304 : vector<1x256xi32>
    %c128_i32_109 = arith.constant 128 : i32
    %306 = vector.broadcast %c128_i32_109 : i32 to vector<1x256xi32>
    %307 = arith.cmpi slt, %0, %306 : vector<1x256xi32>
    %308 = arith.andi %305, %307 : vector<1x256xi1>
    %cst_110 = arith.constant 0.000000e+00 : f32
    %309 = vector.broadcast %cst_110 : f32 to vector<1x256xf32>
    %310 = arith.select %308, %298, %309 : vector<1x256xi1>, vector<1x256xf32>
    %311 = vector.shape_cast %310 : vector<1x256xf32> to vector<1x1x256xf32>
    %cst_111 = arith.constant dense<0.000000e+00> : vector<1xf32>
    %312 = vector.multi_reduction <add>, %311, %cst_111 [1, 2] : vector<1x1x256xf32> to vector<1xf32>
    %313 = vector.shape_cast %312 : vector<1xf32> to vector<1x1x1xf32>
    %314 = vector.extract %313[0, 0, 0] : f32 from vector<1x1x1xf32>
    %cst_112 = arith.constant 0.000000e+00 : f32
    %315 = vector.broadcast %cst_112 : f32 to vector<1x256xf32>
    %316 = arith.select %308, %301, %315 : vector<1x256xi1>, vector<1x256xf32>
    %317 = vector.shape_cast %316 : vector<1x256xf32> to vector<1x1x256xf32>
    %cst_113 = arith.constant dense<0.000000e+00> : vector<1xf32>
    %318 = vector.multi_reduction <add>, %317, %cst_113 [1, 2] : vector<1x1x256xf32> to vector<1xf32>
    %319 = vector.shape_cast %318 : vector<1xf32> to vector<1x1x1xf32>
    %320 = vector.extract %319[0, 0, 0] : f32 from vector<1x1x1xf32>
    %cst_114 = arith.constant 2.44140625E-4 : f32
    %321 = arith.mulf %314, %cst_114 : f32
    %cst_115 = arith.constant 2.44140625E-4 : f32
    %322 = arith.mulf %320, %cst_115 : f32
    %323 = arith.mulf %321, %321 : f32
    %324 = arith.subf %322, %323 : f32
    %cst_116 = arith.constant 0.000000e+00 : f32
    %325 = arith.maximumf %324, %cst_116 : f32
    %cst_117 = arith.constant 9.99999993E-9 : f32
    %326 = arith.addf %325, %cst_117 : f32
    %327 = math.rsqrt %326 : f32
    %328 = vector.broadcast %321 : f32 to vector<1x256xf32>
    %329 = arith.select %308, %328, %302 : vector<1x256xi1>, vector<1x256xf32>
    %330 = vector.broadcast %327 : f32 to vector<1x256xf32>
    %331 = arith.select %308, %330, %303 : vector<1x256xi1>, vector<1x256xf32>
    %c128_i32_118 = arith.constant 128 : i32
    %332 = vector.broadcast %c128_i32_118 : i32 to vector<1x256xi32>
    %333 = arith.cmpi sge, %0, %332 : vector<1x256xi32>
    %c256_i32_119 = arith.constant 256 : i32
    %334 = vector.broadcast %c256_i32_119 : i32 to vector<1x256xi32>
    %335 = arith.cmpi slt, %0, %334 : vector<1x256xi32>
    %336 = arith.andi %333, %335 : vector<1x256xi1>
    %cst_120 = arith.constant 0.000000e+00 : f32
    %337 = vector.broadcast %cst_120 : f32 to vector<1x256xf32>
    %338 = arith.select %336, %298, %337 : vector<1x256xi1>, vector<1x256xf32>
    %339 = vector.shape_cast %338 : vector<1x256xf32> to vector<1x1x256xf32>
    %cst_121 = arith.constant dense<0.000000e+00> : vector<1xf32>
    %340 = vector.multi_reduction <add>, %339, %cst_121 [1, 2] : vector<1x1x256xf32> to vector<1xf32>
    %341 = vector.shape_cast %340 : vector<1xf32> to vector<1x1x1xf32>
    %342 = vector.extract %341[0, 0, 0] : f32 from vector<1x1x1xf32>
    %cst_122 = arith.constant 0.000000e+00 : f32
    %343 = vector.broadcast %cst_122 : f32 to vector<1x256xf32>
    %344 = arith.select %336, %301, %343 : vector<1x256xi1>, vector<1x256xf32>
    %345 = vector.shape_cast %344 : vector<1x256xf32> to vector<1x1x256xf32>
    %cst_123 = arith.constant dense<0.000000e+00> : vector<1xf32>
    %346 = vector.multi_reduction <add>, %345, %cst_123 [1, 2] : vector<1x1x256xf32> to vector<1xf32>
    %347 = vector.shape_cast %346 : vector<1xf32> to vector<1x1x1xf32>
    %348 = vector.extract %347[0, 0, 0] : f32 from vector<1x1x1xf32>
    %cst_124 = arith.constant 2.44140625E-4 : f32
    %349 = arith.mulf %342, %cst_124 : f32
    %cst_125 = arith.constant 2.44140625E-4 : f32
    %350 = arith.mulf %348, %cst_125 : f32
    %351 = arith.mulf %349, %349 : f32
    %352 = arith.subf %350, %351 : f32
    %cst_126 = arith.constant 0.000000e+00 : f32
    %353 = arith.maximumf %352, %cst_126 : f32
    %cst_127 = arith.constant 9.99999993E-9 : f32
    %354 = arith.addf %353, %cst_127 : f32
    %355 = math.rsqrt %354 : f32
    %356 = vector.broadcast %349 : f32 to vector<1x256xf32>
    %357 = arith.select %336, %356, %329 : vector<1x256xi1>, vector<1x256xf32>
    %358 = vector.broadcast %355 : f32 to vector<1x256xf32>
    %359 = arith.select %336, %358, %331 : vector<1x256xi1>, vector<1x256xf32>
    %360 = vector.broadcast %357 : vector<1x256xf32> to vector<32x256xf32>
    %361 = arith.subf %296, %360 : vector<32x256xf32>
    %362 = vector.broadcast %359 : vector<1x256xf32> to vector<32x256xf32>
    %363 = arith.mulf %361, %362 : vector<32x256xf32>
    %364 = vector.broadcast %280 : vector<32x1xf32> to vector<32x256xf32>
    %365 = arith.mulf %363, %364 : vector<32x256xf32>
    %366 = vector.broadcast %281 : vector<32x1xf32> to vector<32x256xf32>
    %367 = arith.addf %365, %366 : vector<32x256xf32>
    %c2_i32 = arith.constant 2 : i32
    %368 = vector.broadcast %c2_i32 : i32 to vector<1x256xi32>
    %369 = arith.cmpi sge, %5, %368 : vector<1x256xi32>
    %c126_i32 = arith.constant 126 : i32
    %370 = vector.broadcast %c126_i32 : i32 to vector<1x256xi32>
    %371 = arith.cmpi slt, %5, %370 : vector<1x256xi32>
    %c2_i32_128 = arith.constant 2 : i32
    %372 = tpu.dynamic_rotate %367 by %c2_i32_128 dim 1 : vector<32x256xf32>, i32 -> vector<32x256xf32>
    %cst_129 = arith.constant 0.000000e+00 : f32
    %373 = vector.shape_cast %369 : vector<1x256xi1> to vector<1x256xi1>
    %374 = vector.broadcast %373 : vector<1x256xi1> to vector<32x256xi1>
    %375 = vector.broadcast %cst_129 : f32 to vector<32x256xf32>
    %376 = arith.select %374, %372, %375 : vector<32x256xi1>, vector<32x256xf32>
    %c254_i32 = arith.constant 254 : i32
    %377 = tpu.dynamic_rotate %367 by %c254_i32 dim 1 : vector<32x256xf32>, i32 -> vector<32x256xf32>
    %cst_130 = arith.constant 0.000000e+00 : f32
    %378 = vector.shape_cast %371 : vector<1x256xi1> to vector<1x256xi1>
    %379 = vector.broadcast %378 : vector<1x256xi1> to vector<32x256xi1>
    %380 = vector.broadcast %cst_130 : f32 to vector<32x256xf32>
    %381 = arith.select %379, %377, %380 : vector<32x256xi1>, vector<32x256xf32>
    %382 = vector.broadcast %282 : vector<32x1xf32> to vector<32x256xf32>
    %383 = arith.mulf %382, %376 : vector<32x256xf32>
    %384 = vector.broadcast %283 : vector<32x1xf32> to vector<32x256xf32>
    %385 = arith.mulf %384, %367 : vector<32x256xf32>
    %386 = arith.addf %383, %385 : vector<32x256xf32>
    %387 = vector.broadcast %284 : vector<32x1xf32> to vector<32x256xf32>
    %388 = arith.mulf %387, %381 : vector<32x256xf32>
    %389 = arith.addf %386, %388 : vector<32x256xf32>
    %390 = vector.broadcast %285 : vector<32x1xf32> to vector<32x256xf32>
    %391 = arith.addf %389, %390 : vector<32x256xf32>
    %c1_131 = arith.constant 1 : index
    %392 = memref.load %arg9[%c1_131] : memref<4xf32, #tpu.memory_space<smem>>
    %cst_132 = arith.constant 0.000000e+00 : f32
    %393 = vector.broadcast %cst_132 : f32 to vector<32x256xf32>
    %394 = arith.cmpf ogt, %391, %393 : vector<32x256xf32>
    %395 = vector.broadcast %392 : f32 to vector<32x256xf32>
    %396 = arith.mulf %395, %391 : vector<32x256xf32>
    %397 = arith.select %394, %391, %396 : vector<32x256xi1>, vector<32x256xf32>
    %cst_133 = arith.constant dense<0.000000e+00> : vector<256xf32>
    %398 = vector.multi_reduction <add>, %397, %cst_133 [0] : vector<32x256xf32> to vector<256xf32>
    %399 = vector.shape_cast %398 : vector<256xf32> to vector<1x256xf32>
    %400 = arith.mulf %397, %397 : vector<32x256xf32>
    %cst_134 = arith.constant dense<0.000000e+00> : vector<256xf32>
    %401 = vector.multi_reduction <add>, %400, %cst_134 [0] : vector<32x256xf32> to vector<256xf32>
    %402 = vector.shape_cast %401 : vector<256xf32> to vector<1x256xf32>
    %cst_135 = arith.constant 0.000000e+00 : f32
    %403 = vector.broadcast %cst_135 : f32 to vector<1x256xf32>
    %cst_136 = arith.constant 0.000000e+00 : f32
    %404 = vector.broadcast %cst_136 : f32 to vector<1x256xf32>
    %c0_i32_137 = arith.constant 0 : i32
    %405 = vector.broadcast %c0_i32_137 : i32 to vector<1x256xi32>
    %406 = arith.cmpi sge, %0, %405 : vector<1x256xi32>
    %c128_i32_138 = arith.constant 128 : i32
    %407 = vector.broadcast %c128_i32_138 : i32 to vector<1x256xi32>
    %408 = arith.cmpi slt, %0, %407 : vector<1x256xi32>
    %409 = arith.andi %406, %408 : vector<1x256xi1>
    %cst_139 = arith.constant 0.000000e+00 : f32
    %410 = vector.broadcast %cst_139 : f32 to vector<1x256xf32>
    %411 = arith.select %409, %399, %410 : vector<1x256xi1>, vector<1x256xf32>
    %412 = vector.shape_cast %411 : vector<1x256xf32> to vector<1x1x256xf32>
    %cst_140 = arith.constant dense<0.000000e+00> : vector<1xf32>
    %413 = vector.multi_reduction <add>, %412, %cst_140 [1, 2] : vector<1x1x256xf32> to vector<1xf32>
    %414 = vector.shape_cast %413 : vector<1xf32> to vector<1x1x1xf32>
    %415 = vector.extract %414[0, 0, 0] : f32 from vector<1x1x1xf32>
    %cst_141 = arith.constant 0.000000e+00 : f32
    %416 = vector.broadcast %cst_141 : f32 to vector<1x256xf32>
    %417 = arith.select %409, %402, %416 : vector<1x256xi1>, vector<1x256xf32>
    %418 = vector.shape_cast %417 : vector<1x256xf32> to vector<1x1x256xf32>
    %cst_142 = arith.constant dense<0.000000e+00> : vector<1xf32>
    %419 = vector.multi_reduction <add>, %418, %cst_142 [1, 2] : vector<1x1x256xf32> to vector<1xf32>
    %420 = vector.shape_cast %419 : vector<1xf32> to vector<1x1x1xf32>
    %421 = vector.extract %420[0, 0, 0] : f32 from vector<1x1x1xf32>
    %cst_143 = arith.constant 2.44140625E-4 : f32
    %422 = arith.mulf %415, %cst_143 : f32
    %cst_144 = arith.constant 2.44140625E-4 : f32
    %423 = arith.mulf %421, %cst_144 : f32
    %424 = arith.mulf %422, %422 : f32
    %425 = arith.subf %423, %424 : f32
    %cst_145 = arith.constant 0.000000e+00 : f32
    %426 = arith.maximumf %425, %cst_145 : f32
    %cst_146 = arith.constant 9.99999993E-9 : f32
    %427 = arith.addf %426, %cst_146 : f32
    %428 = math.rsqrt %427 : f32
    %429 = vector.broadcast %422 : f32 to vector<1x256xf32>
    %430 = arith.select %409, %429, %403 : vector<1x256xi1>, vector<1x256xf32>
    %431 = vector.broadcast %428 : f32 to vector<1x256xf32>
    %432 = arith.select %409, %431, %404 : vector<1x256xi1>, vector<1x256xf32>
    %c128_i32_147 = arith.constant 128 : i32
    %433 = vector.broadcast %c128_i32_147 : i32 to vector<1x256xi32>
    %434 = arith.cmpi sge, %0, %433 : vector<1x256xi32>
    %c256_i32_148 = arith.constant 256 : i32
    %435 = vector.broadcast %c256_i32_148 : i32 to vector<1x256xi32>
    %436 = arith.cmpi slt, %0, %435 : vector<1x256xi32>
    %437 = arith.andi %434, %436 : vector<1x256xi1>
    %cst_149 = arith.constant 0.000000e+00 : f32
    %438 = vector.broadcast %cst_149 : f32 to vector<1x256xf32>
    %439 = arith.select %437, %399, %438 : vector<1x256xi1>, vector<1x256xf32>
    %440 = vector.shape_cast %439 : vector<1x256xf32> to vector<1x1x256xf32>
    %cst_150 = arith.constant dense<0.000000e+00> : vector<1xf32>
    %441 = vector.multi_reduction <add>, %440, %cst_150 [1, 2] : vector<1x1x256xf32> to vector<1xf32>
    %442 = vector.shape_cast %441 : vector<1xf32> to vector<1x1x1xf32>
    %443 = vector.extract %442[0, 0, 0] : f32 from vector<1x1x1xf32>
    %cst_151 = arith.constant 0.000000e+00 : f32
    %444 = vector.broadcast %cst_151 : f32 to vector<1x256xf32>
    %445 = arith.select %437, %402, %444 : vector<1x256xi1>, vector<1x256xf32>
    %446 = vector.shape_cast %445 : vector<1x256xf32> to vector<1x1x256xf32>
    %cst_152 = arith.constant dense<0.000000e+00> : vector<1xf32>
    %447 = vector.multi_reduction <add>, %446, %cst_152 [1, 2] : vector<1x1x256xf32> to vector<1xf32>
    %448 = vector.shape_cast %447 : vector<1xf32> to vector<1x1x1xf32>
    %449 = vector.extract %448[0, 0, 0] : f32 from vector<1x1x1xf32>
    %cst_153 = arith.constant 2.44140625E-4 : f32
    %450 = arith.mulf %443, %cst_153 : f32
    %cst_154 = arith.constant 2.44140625E-4 : f32
    %451 = arith.mulf %449, %cst_154 : f32
    %452 = arith.mulf %450, %450 : f32
    %453 = arith.subf %451, %452 : f32
    %cst_155 = arith.constant 0.000000e+00 : f32
    %454 = arith.maximumf %453, %cst_155 : f32
    %cst_156 = arith.constant 9.99999993E-9 : f32
    %455 = arith.addf %454, %cst_156 : f32
    %456 = math.rsqrt %455 : f32
    %457 = vector.broadcast %450 : f32 to vector<1x256xf32>
    %458 = arith.select %437, %457, %430 : vector<1x256xi1>, vector<1x256xf32>
    %459 = vector.broadcast %456 : f32 to vector<1x256xf32>
    %460 = arith.select %437, %459, %432 : vector<1x256xi1>, vector<1x256xf32>
    %461 = vector.broadcast %458 : vector<1x256xf32> to vector<32x256xf32>
    %462 = arith.subf %397, %461 : vector<32x256xf32>
    %463 = vector.broadcast %460 : vector<1x256xf32> to vector<32x256xf32>
    %464 = arith.mulf %462, %463 : vector<32x256xf32>
    %c1_157 = arith.constant 1 : index
    %c0_158 = arith.constant 0 : index
    %c0_159 = arith.constant 0 : index
    %465 = vector.load %arg6[%c1_157, %c0_158, %c0_159] : memref<4x32x32xf32, #tpu.memory_space<vmem>>, vector<1x32x32xf32>
    %466 = vector.shape_cast %465 : vector<1x32x32xf32> to vector<32x32xf32>
    %cst_160 = arith.constant dense<0.000000e+00> : vector<32x256xf32>
    %467 = tpu.matmul %466, %464, %cst_160 {dimension_numbers = #tpu.dot_dimension_numbers<[1], [0], [0], [1], [0, 0, 1, 1], [], []>} : vector<32x32xf32>, vector<32x256xf32>, vector<32x256xf32> -> vector<32x256xf32>
    %468 = vector.extract_strided_slice %79 {offsets = [0, 1], sizes = [32, 1], strides = [1, 1]} : vector<32x4xf32> to vector<32x1xf32>
    %469 = vector.broadcast %468 : vector<32x1xf32> to vector<32x256xf32>
    %470 = arith.addf %467, %469 : vector<32x256xf32>
    %471 = vector.extract_strided_slice %470 {offsets = [0, 0], sizes = [16, 256], strides = [1, 1]} : vector<32x256xf32> to vector<16x256xf32>
    %472 = arith.addf %275, %471 : vector<16x256xf32>
    %473 = vector.extract_strided_slice %470 {offsets = [16, 0], sizes = [16, 256], strides = [1, 1]} : vector<32x256xf32> to vector<16x256xf32>
    %474 = arith.addf %276, %473 : vector<16x256xf32>
    %c2 = arith.constant 2 : index
    %c0_161 = arith.constant 0 : index
    %c0_162 = arith.constant 0 : index
    %475 = vector.load %arg5[%c2, %c0_161, %c0_162] : memref<4x32x7xf32, #tpu.memory_space<vmem>>, vector<1x32x7xf32>
    %476 = vector.shape_cast %475 : vector<1x32x7xf32> to vector<32x7xf32>
    %477 = vector.extract_strided_slice %476 {offsets = [0, 0], sizes = [32, 1], strides = [1, 1]} : vector<32x7xf32> to vector<32x1xf32>
    %478 = vector.extract_strided_slice %476 {offsets = [0, 1], sizes = [32, 1], strides = [1, 1]} : vector<32x7xf32> to vector<32x1xf32>
    %479 = vector.extract_strided_slice %476 {offsets = [0, 2], sizes = [32, 1], strides = [1, 1]} : vector<32x7xf32> to vector<32x1xf32>
    %480 = vector.extract_strided_slice %476 {offsets = [0, 3], sizes = [32, 1], strides = [1, 1]} : vector<32x7xf32> to vector<32x1xf32>
    %481 = vector.extract_strided_slice %476 {offsets = [0, 4], sizes = [32, 1], strides = [1, 1]} : vector<32x7xf32> to vector<32x1xf32>
    %482 = vector.extract_strided_slice %476 {offsets = [0, 5], sizes = [32, 1], strides = [1, 1]} : vector<32x7xf32> to vector<32x1xf32>
    %483 = vector.extract_strided_slice %476 {offsets = [0, 6], sizes = [32, 1], strides = [1, 1]} : vector<32x7xf32> to vector<32x1xf32>
    %c2_163 = arith.constant 2 : index
    %c0_164 = arith.constant 0 : index
    %c0_165 = arith.constant 0 : index
    %484 = vector.load %arg4[%c2_163, %c0_164, %c0_165] : memref<4x32x16xf32, #tpu.memory_space<vmem>>, vector<1x32x16xf32>
    %485 = vector.shape_cast %484 : vector<1x32x16xf32> to vector<32x16xf32>
    %cst_166 = arith.constant dense<0.000000e+00> : vector<32x256xf32>
    %486 = tpu.matmul %485, %472, %cst_166 {dimension_numbers = #tpu.dot_dimension_numbers<[1], [0], [0], [1], [0, 0, 1, 1], [], []>} : vector<32x16xf32>, vector<16x256xf32>, vector<32x256xf32> -> vector<32x256xf32>
    %487 = vector.broadcast %477 : vector<32x1xf32> to vector<32x256xf32>
    %488 = arith.addf %486, %487 : vector<32x256xf32>
    %c2_167 = arith.constant 2 : index
    %489 = memref.load %arg8[%c2_167] : memref<4xf32, #tpu.memory_space<smem>>
    %cst_168 = arith.constant 0.000000e+00 : f32
    %490 = vector.broadcast %cst_168 : f32 to vector<32x256xf32>
    %491 = arith.cmpf ogt, %488, %490 : vector<32x256xf32>
    %492 = vector.broadcast %489 : f32 to vector<32x256xf32>
    %493 = arith.mulf %492, %488 : vector<32x256xf32>
    %494 = arith.select %491, %488, %493 : vector<32x256xi1>, vector<32x256xf32>
    %cst_169 = arith.constant dense<0.000000e+00> : vector<256xf32>
    %495 = vector.multi_reduction <add>, %494, %cst_169 [0] : vector<32x256xf32> to vector<256xf32>
    %496 = vector.shape_cast %495 : vector<256xf32> to vector<1x256xf32>
    %497 = arith.mulf %494, %494 : vector<32x256xf32>
    %cst_170 = arith.constant dense<0.000000e+00> : vector<256xf32>
    %498 = vector.multi_reduction <add>, %497, %cst_170 [0] : vector<32x256xf32> to vector<256xf32>
    %499 = vector.shape_cast %498 : vector<256xf32> to vector<1x256xf32>
    %cst_171 = arith.constant 0.000000e+00 : f32
    %500 = vector.broadcast %cst_171 : f32 to vector<1x256xf32>
    %cst_172 = arith.constant 0.000000e+00 : f32
    %501 = vector.broadcast %cst_172 : f32 to vector<1x256xf32>
    %c0_i32_173 = arith.constant 0 : i32
    %502 = vector.broadcast %c0_i32_173 : i32 to vector<1x256xi32>
    %503 = arith.cmpi sge, %0, %502 : vector<1x256xi32>
    %c128_i32_174 = arith.constant 128 : i32
    %504 = vector.broadcast %c128_i32_174 : i32 to vector<1x256xi32>
    %505 = arith.cmpi slt, %0, %504 : vector<1x256xi32>
    %506 = arith.andi %503, %505 : vector<1x256xi1>
    %cst_175 = arith.constant 0.000000e+00 : f32
    %507 = vector.broadcast %cst_175 : f32 to vector<1x256xf32>
    %508 = arith.select %506, %496, %507 : vector<1x256xi1>, vector<1x256xf32>
    %509 = vector.shape_cast %508 : vector<1x256xf32> to vector<1x1x256xf32>
    %cst_176 = arith.constant dense<0.000000e+00> : vector<1xf32>
    %510 = vector.multi_reduction <add>, %509, %cst_176 [1, 2] : vector<1x1x256xf32> to vector<1xf32>
    %511 = vector.shape_cast %510 : vector<1xf32> to vector<1x1x1xf32>
    %512 = vector.extract %511[0, 0, 0] : f32 from vector<1x1x1xf32>
    %cst_177 = arith.constant 0.000000e+00 : f32
    %513 = vector.broadcast %cst_177 : f32 to vector<1x256xf32>
    %514 = arith.select %506, %499, %513 : vector<1x256xi1>, vector<1x256xf32>
    %515 = vector.shape_cast %514 : vector<1x256xf32> to vector<1x1x256xf32>
    %cst_178 = arith.constant dense<0.000000e+00> : vector<1xf32>
    %516 = vector.multi_reduction <add>, %515, %cst_178 [1, 2] : vector<1x1x256xf32> to vector<1xf32>
    %517 = vector.shape_cast %516 : vector<1xf32> to vector<1x1x1xf32>
    %518 = vector.extract %517[0, 0, 0] : f32 from vector<1x1x1xf32>
    %cst_179 = arith.constant 2.44140625E-4 : f32
    %519 = arith.mulf %512, %cst_179 : f32
    %cst_180 = arith.constant 2.44140625E-4 : f32
    %520 = arith.mulf %518, %cst_180 : f32
    %521 = arith.mulf %519, %519 : f32
    %522 = arith.subf %520, %521 : f32
    %cst_181 = arith.constant 0.000000e+00 : f32
    %523 = arith.maximumf %522, %cst_181 : f32
    %cst_182 = arith.constant 9.99999993E-9 : f32
    %524 = arith.addf %523, %cst_182 : f32
    %525 = math.rsqrt %524 : f32
    %526 = vector.broadcast %519 : f32 to vector<1x256xf32>
    %527 = arith.select %506, %526, %500 : vector<1x256xi1>, vector<1x256xf32>
    %528 = vector.broadcast %525 : f32 to vector<1x256xf32>
    %529 = arith.select %506, %528, %501 : vector<1x256xi1>, vector<1x256xf32>
    %c128_i32_183 = arith.constant 128 : i32
    %530 = vector.broadcast %c128_i32_183 : i32 to vector<1x256xi32>
    %531 = arith.cmpi sge, %0, %530 : vector<1x256xi32>
    %c256_i32_184 = arith.constant 256 : i32
    %532 = vector.broadcast %c256_i32_184 : i32 to vector<1x256xi32>
    %533 = arith.cmpi slt, %0, %532 : vector<1x256xi32>
    %534 = arith.andi %531, %533 : vector<1x256xi1>
    %cst_185 = arith.constant 0.000000e+00 : f32
    %535 = vector.broadcast %cst_185 : f32 to vector<1x256xf32>
    %536 = arith.select %534, %496, %535 : vector<1x256xi1>, vector<1x256xf32>
    %537 = vector.shape_cast %536 : vector<1x256xf32> to vector<1x1x256xf32>
    %cst_186 = arith.constant dense<0.000000e+00> : vector<1xf32>
    %538 = vector.multi_reduction <add>, %537, %cst_186 [1, 2] : vector<1x1x256xf32> to vector<1xf32>
    %539 = vector.shape_cast %538 : vector<1xf32> to vector<1x1x1xf32>
    %540 = vector.extract %539[0, 0, 0] : f32 from vector<1x1x1xf32>
    %cst_187 = arith.constant 0.000000e+00 : f32
    %541 = vector.broadcast %cst_187 : f32 to vector<1x256xf32>
    %542 = arith.select %534, %499, %541 : vector<1x256xi1>, vector<1x256xf32>
    %543 = vector.shape_cast %542 : vector<1x256xf32> to vector<1x1x256xf32>
    %cst_188 = arith.constant dense<0.000000e+00> : vector<1xf32>
    %544 = vector.multi_reduction <add>, %543, %cst_188 [1, 2] : vector<1x1x256xf32> to vector<1xf32>
    %545 = vector.shape_cast %544 : vector<1xf32> to vector<1x1x1xf32>
    %546 = vector.extract %545[0, 0, 0] : f32 from vector<1x1x1xf32>
    %cst_189 = arith.constant 2.44140625E-4 : f32
    %547 = arith.mulf %540, %cst_189 : f32
    %cst_190 = arith.constant 2.44140625E-4 : f32
    %548 = arith.mulf %546, %cst_190 : f32
    %549 = arith.mulf %547, %547 : f32
    %550 = arith.subf %548, %549 : f32
    %cst_191 = arith.constant 0.000000e+00 : f32
    %551 = arith.maximumf %550, %cst_191 : f32
    %cst_192 = arith.constant 9.99999993E-9 : f32
    %552 = arith.addf %551, %cst_192 : f32
    %553 = math.rsqrt %552 : f32
    %554 = vector.broadcast %547 : f32 to vector<1x256xf32>
    %555 = arith.select %534, %554, %527 : vector<1x256xi1>, vector<1x256xf32>
    %556 = vector.broadcast %553 : f32 to vector<1x256xf32>
    %557 = arith.select %534, %556, %529 : vector<1x256xi1>, vector<1x256xf32>
    %558 = vector.broadcast %555 : vector<1x256xf32> to vector<32x256xf32>
    %559 = arith.subf %494, %558 : vector<32x256xf32>
    %560 = vector.broadcast %557 : vector<1x256xf32> to vector<32x256xf32>
    %561 = arith.mulf %559, %560 : vector<32x256xf32>
    %562 = vector.broadcast %478 : vector<32x1xf32> to vector<32x256xf32>
    %563 = arith.mulf %561, %562 : vector<32x256xf32>
    %564 = vector.broadcast %479 : vector<32x1xf32> to vector<32x256xf32>
    %565 = arith.addf %563, %564 : vector<32x256xf32>
    %c1_i32_193 = arith.constant 1 : i32
    %566 = vector.broadcast %c1_i32_193 : i32 to vector<1x256xi32>
    %567 = arith.cmpi sge, %5, %566 : vector<1x256xi32>
    %c127_i32_194 = arith.constant 127 : i32
    %568 = vector.broadcast %c127_i32_194 : i32 to vector<1x256xi32>
    %569 = arith.cmpi slt, %5, %568 : vector<1x256xi32>
    %c1_i32_195 = arith.constant 1 : i32
    %570 = tpu.dynamic_rotate %565 by %c1_i32_195 dim 1 : vector<32x256xf32>, i32 -> vector<32x256xf32>
    %cst_196 = arith.constant 0.000000e+00 : f32
    %571 = vector.shape_cast %567 : vector<1x256xi1> to vector<1x256xi1>
    %572 = vector.broadcast %571 : vector<1x256xi1> to vector<32x256xi1>
    %573 = vector.broadcast %cst_196 : f32 to vector<32x256xf32>
    %574 = arith.select %572, %570, %573 : vector<32x256xi1>, vector<32x256xf32>
    %c255_i32_197 = arith.constant 255 : i32
    %575 = tpu.dynamic_rotate %565 by %c255_i32_197 dim 1 : vector<32x256xf32>, i32 -> vector<32x256xf32>
    %cst_198 = arith.constant 0.000000e+00 : f32
    %576 = vector.shape_cast %569 : vector<1x256xi1> to vector<1x256xi1>
    %577 = vector.broadcast %576 : vector<1x256xi1> to vector<32x256xi1>
    %578 = vector.broadcast %cst_198 : f32 to vector<32x256xf32>
    %579 = arith.select %577, %575, %578 : vector<32x256xi1>, vector<32x256xf32>
    %580 = vector.broadcast %480 : vector<32x1xf32> to vector<32x256xf32>
    %581 = arith.mulf %580, %574 : vector<32x256xf32>
    %582 = vector.broadcast %481 : vector<32x1xf32> to vector<32x256xf32>
    %583 = arith.mulf %582, %565 : vector<32x256xf32>
    %584 = arith.addf %581, %583 : vector<32x256xf32>
    %585 = vector.broadcast %482 : vector<32x1xf32> to vector<32x256xf32>
    %586 = arith.mulf %585, %579 : vector<32x256xf32>
    %587 = arith.addf %584, %586 : vector<32x256xf32>
    %588 = vector.broadcast %483 : vector<32x1xf32> to vector<32x256xf32>
    %589 = arith.addf %587, %588 : vector<32x256xf32>
    %c2_199 = arith.constant 2 : index
    %590 = memref.load %arg9[%c2_199] : memref<4xf32, #tpu.memory_space<smem>>
    %cst_200 = arith.constant 0.000000e+00 : f32
    %591 = vector.broadcast %cst_200 : f32 to vector<32x256xf32>
    %592 = arith.cmpf ogt, %589, %591 : vector<32x256xf32>
    %593 = vector.broadcast %590 : f32 to vector<32x256xf32>
    %594 = arith.mulf %593, %589 : vector<32x256xf32>
    %595 = arith.select %592, %589, %594 : vector<32x256xi1>, vector<32x256xf32>
    %cst_201 = arith.constant dense<0.000000e+00> : vector<256xf32>
    %596 = vector.multi_reduction <add>, %595, %cst_201 [0] : vector<32x256xf32> to vector<256xf32>
    %597 = vector.shape_cast %596 : vector<256xf32> to vector<1x256xf32>
    %598 = arith.mulf %595, %595 : vector<32x256xf32>
    %cst_202 = arith.constant dense<0.000000e+00> : vector<256xf32>
    %599 = vector.multi_reduction <add>, %598, %cst_202 [0] : vector<32x256xf32> to vector<256xf32>
    %600 = vector.shape_cast %599 : vector<256xf32> to vector<1x256xf32>
    %cst_203 = arith.constant 0.000000e+00 : f32
    %601 = vector.broadcast %cst_203 : f32 to vector<1x256xf32>
    %cst_204 = arith.constant 0.000000e+00 : f32
    %602 = vector.broadcast %cst_204 : f32 to vector<1x256xf32>
    %c0_i32_205 = arith.constant 0 : i32
    %603 = vector.broadcast %c0_i32_205 : i32 to vector<1x256xi32>
    %604 = arith.cmpi sge, %0, %603 : vector<1x256xi32>
    %c128_i32_206 = arith.constant 128 : i32
    %605 = vector.broadcast %c128_i32_206 : i32 to vector<1x256xi32>
    %606 = arith.cmpi slt, %0, %605 : vector<1x256xi32>
    %607 = arith.andi %604, %606 : vector<1x256xi1>
    %cst_207 = arith.constant 0.000000e+00 : f32
    %608 = vector.broadcast %cst_207 : f32 to vector<1x256xf32>
    %609 = arith.select %607, %597, %608 : vector<1x256xi1>, vector<1x256xf32>
    %610 = vector.shape_cast %609 : vector<1x256xf32> to vector<1x1x256xf32>
    %cst_208 = arith.constant dense<0.000000e+00> : vector<1xf32>
    %611 = vector.multi_reduction <add>, %610, %cst_208 [1, 2] : vector<1x1x256xf32> to vector<1xf32>
    %612 = vector.shape_cast %611 : vector<1xf32> to vector<1x1x1xf32>
    %613 = vector.extract %612[0, 0, 0] : f32 from vector<1x1x1xf32>
    %cst_209 = arith.constant 0.000000e+00 : f32
    %614 = vector.broadcast %cst_209 : f32 to vector<1x256xf32>
    %615 = arith.select %607, %600, %614 : vector<1x256xi1>, vector<1x256xf32>
    %616 = vector.shape_cast %615 : vector<1x256xf32> to vector<1x1x256xf32>
    %cst_210 = arith.constant dense<0.000000e+00> : vector<1xf32>
    %617 = vector.multi_reduction <add>, %616, %cst_210 [1, 2] : vector<1x1x256xf32> to vector<1xf32>
    %618 = vector.shape_cast %617 : vector<1xf32> to vector<1x1x1xf32>
    %619 = vector.extract %618[0, 0, 0] : f32 from vector<1x1x1xf32>
    %cst_211 = arith.constant 2.44140625E-4 : f32
    %620 = arith.mulf %613, %cst_211 : f32
    %cst_212 = arith.constant 2.44140625E-4 : f32
    %621 = arith.mulf %619, %cst_212 : f32
    %622 = arith.mulf %620, %620 : f32
    %623 = arith.subf %621, %622 : f32
    %cst_213 = arith.constant 0.000000e+00 : f32
    %624 = arith.maximumf %623, %cst_213 : f32
    %cst_214 = arith.constant 9.99999993E-9 : f32
    %625 = arith.addf %624, %cst_214 : f32
    %626 = math.rsqrt %625 : f32
    %627 = vector.broadcast %620 : f32 to vector<1x256xf32>
    %628 = arith.select %607, %627, %601 : vector<1x256xi1>, vector<1x256xf32>
    %629 = vector.broadcast %626 : f32 to vector<1x256xf32>
    %630 = arith.select %607, %629, %602 : vector<1x256xi1>, vector<1x256xf32>
    %c128_i32_215 = arith.constant 128 : i32
    %631 = vector.broadcast %c128_i32_215 : i32 to vector<1x256xi32>
    %632 = arith.cmpi sge, %0, %631 : vector<1x256xi32>
    %c256_i32_216 = arith.constant 256 : i32
    %633 = vector.broadcast %c256_i32_216 : i32 to vector<1x256xi32>
    %634 = arith.cmpi slt, %0, %633 : vector<1x256xi32>
    %635 = arith.andi %632, %634 : vector<1x256xi1>
    %cst_217 = arith.constant 0.000000e+00 : f32
    %636 = vector.broadcast %cst_217 : f32 to vector<1x256xf32>
    %637 = arith.select %635, %597, %636 : vector<1x256xi1>, vector<1x256xf32>
    %638 = vector.shape_cast %637 : vector<1x256xf32> to vector<1x1x256xf32>
    %cst_218 = arith.constant dense<0.000000e+00> : vector<1xf32>
    %639 = vector.multi_reduction <add>, %638, %cst_218 [1, 2] : vector<1x1x256xf32> to vector<1xf32>
    %640 = vector.shape_cast %639 : vector<1xf32> to vector<1x1x1xf32>
    %641 = vector.extract %640[0, 0, 0] : f32 from vector<1x1x1xf32>
    %cst_219 = arith.constant 0.000000e+00 : f32
    %642 = vector.broadcast %cst_219 : f32 to vector<1x256xf32>
    %643 = arith.select %635, %600, %642 : vector<1x256xi1>, vector<1x256xf32>
    %644 = vector.shape_cast %643 : vector<1x256xf32> to vector<1x1x256xf32>
    %cst_220 = arith.constant dense<0.000000e+00> : vector<1xf32>
    %645 = vector.multi_reduction <add>, %644, %cst_220 [1, 2] : vector<1x1x256xf32> to vector<1xf32>
    %646 = vector.shape_cast %645 : vector<1xf32> to vector<1x1x1xf32>
    %647 = vector.extract %646[0, 0, 0] : f32 from vector<1x1x1xf32>
    %cst_221 = arith.constant 2.44140625E-4 : f32
    %648 = arith.mulf %641, %cst_221 : f32
    %cst_222 = arith.constant 2.44140625E-4 : f32
    %649 = arith.mulf %647, %cst_222 : f32
    %650 = arith.mulf %648, %648 : f32
    %651 = arith.subf %649, %650 : f32
    %cst_223 = arith.constant 0.000000e+00 : f32
    %652 = arith.maximumf %651, %cst_223 : f32
    %cst_224 = arith.constant 9.99999993E-9 : f32
    %653 = arith.addf %652, %cst_224 : f32
    %654 = math.rsqrt %653 : f32
    %655 = vector.broadcast %648 : f32 to vector<1x256xf32>
    %656 = arith.select %635, %655, %628 : vector<1x256xi1>, vector<1x256xf32>
    %657 = vector.broadcast %654 : f32 to vector<1x256xf32>
    %658 = arith.select %635, %657, %630 : vector<1x256xi1>, vector<1x256xf32>
    %659 = vector.broadcast %656 : vector<1x256xf32> to vector<32x256xf32>
    %660 = arith.subf %595, %659 : vector<32x256xf32>
    %661 = vector.broadcast %658 : vector<1x256xf32> to vector<32x256xf32>
    %662 = arith.mulf %660, %661 : vector<32x256xf32>
    %c2_225 = arith.constant 2 : index
    %c0_226 = arith.constant 0 : index
    %c0_227 = arith.constant 0 : index
    %663 = vector.load %arg6[%c2_225, %c0_226, %c0_227] : memref<4x32x32xf32, #tpu.memory_space<vmem>>, vector<1x32x32xf32>
    %664 = vector.shape_cast %663 : vector<1x32x32xf32> to vector<32x32xf32>
    %cst_228 = arith.constant dense<0.000000e+00> : vector<32x256xf32>
    %665 = tpu.matmul %664, %662, %cst_228 {dimension_numbers = #tpu.dot_dimension_numbers<[1], [0], [0], [1], [0, 0, 1, 1], [], []>} : vector<32x32xf32>, vector<32x256xf32>, vector<32x256xf32> -> vector<32x256xf32>
    %666 = vector.extract_strided_slice %79 {offsets = [0, 2], sizes = [32, 1], strides = [1, 1]} : vector<32x4xf32> to vector<32x1xf32>
    %667 = vector.broadcast %666 : vector<32x1xf32> to vector<32x256xf32>
    %668 = arith.addf %665, %667 : vector<32x256xf32>
    %669 = vector.extract_strided_slice %668 {offsets = [0, 0], sizes = [16, 256], strides = [1, 1]} : vector<32x256xf32> to vector<16x256xf32>
    %670 = arith.addf %472, %669 : vector<16x256xf32>
    %671 = vector.extract_strided_slice %668 {offsets = [16, 0], sizes = [16, 256], strides = [1, 1]} : vector<32x256xf32> to vector<16x256xf32>
    %672 = arith.addf %474, %671 : vector<16x256xf32>
    %c3 = arith.constant 3 : index
    %c0_229 = arith.constant 0 : index
    %c0_230 = arith.constant 0 : index
    %673 = vector.load %arg5[%c3, %c0_229, %c0_230] : memref<4x32x7xf32, #tpu.memory_space<vmem>>, vector<1x32x7xf32>
    %674 = vector.shape_cast %673 : vector<1x32x7xf32> to vector<32x7xf32>
    %675 = vector.extract_strided_slice %674 {offsets = [0, 0], sizes = [32, 1], strides = [1, 1]} : vector<32x7xf32> to vector<32x1xf32>
    %676 = vector.extract_strided_slice %674 {offsets = [0, 1], sizes = [32, 1], strides = [1, 1]} : vector<32x7xf32> to vector<32x1xf32>
    %677 = vector.extract_strided_slice %674 {offsets = [0, 2], sizes = [32, 1], strides = [1, 1]} : vector<32x7xf32> to vector<32x1xf32>
    %678 = vector.extract_strided_slice %674 {offsets = [0, 3], sizes = [32, 1], strides = [1, 1]} : vector<32x7xf32> to vector<32x1xf32>
    %679 = vector.extract_strided_slice %674 {offsets = [0, 4], sizes = [32, 1], strides = [1, 1]} : vector<32x7xf32> to vector<32x1xf32>
    %680 = vector.extract_strided_slice %674 {offsets = [0, 5], sizes = [32, 1], strides = [1, 1]} : vector<32x7xf32> to vector<32x1xf32>
    %681 = vector.extract_strided_slice %674 {offsets = [0, 6], sizes = [32, 1], strides = [1, 1]} : vector<32x7xf32> to vector<32x1xf32>
    %c3_231 = arith.constant 3 : index
    %c0_232 = arith.constant 0 : index
    %c0_233 = arith.constant 0 : index
    %682 = vector.load %arg4[%c3_231, %c0_232, %c0_233] : memref<4x32x16xf32, #tpu.memory_space<vmem>>, vector<1x32x16xf32>
    %683 = vector.shape_cast %682 : vector<1x32x16xf32> to vector<32x16xf32>
    %cst_234 = arith.constant dense<0.000000e+00> : vector<32x256xf32>
    %684 = tpu.matmul %683, %670, %cst_234 {dimension_numbers = #tpu.dot_dimension_numbers<[1], [0], [0], [1], [0, 0, 1, 1], [], []>} : vector<32x16xf32>, vector<16x256xf32>, vector<32x256xf32> -> vector<32x256xf32>
    %685 = vector.broadcast %675 : vector<32x1xf32> to vector<32x256xf32>
    %686 = arith.addf %684, %685 : vector<32x256xf32>
    %c3_235 = arith.constant 3 : index
    %687 = memref.load %arg8[%c3_235] : memref<4xf32, #tpu.memory_space<smem>>
    %cst_236 = arith.constant 0.000000e+00 : f32
    %688 = vector.broadcast %cst_236 : f32 to vector<32x256xf32>
    %689 = arith.cmpf ogt, %686, %688 : vector<32x256xf32>
    %690 = vector.broadcast %687 : f32 to vector<32x256xf32>
    %691 = arith.mulf %690, %686 : vector<32x256xf32>
    %692 = arith.select %689, %686, %691 : vector<32x256xi1>, vector<32x256xf32>
    %cst_237 = arith.constant dense<0.000000e+00> : vector<256xf32>
    %693 = vector.multi_reduction <add>, %692, %cst_237 [0] : vector<32x256xf32> to vector<256xf32>
    %694 = vector.shape_cast %693 : vector<256xf32> to vector<1x256xf32>
    %695 = arith.mulf %692, %692 : vector<32x256xf32>
    %cst_238 = arith.constant dense<0.000000e+00> : vector<256xf32>
    %696 = vector.multi_reduction <add>, %695, %cst_238 [0] : vector<32x256xf32> to vector<256xf32>
    %697 = vector.shape_cast %696 : vector<256xf32> to vector<1x256xf32>
    %cst_239 = arith.constant 0.000000e+00 : f32
    %698 = vector.broadcast %cst_239 : f32 to vector<1x256xf32>
    %cst_240 = arith.constant 0.000000e+00 : f32
    %699 = vector.broadcast %cst_240 : f32 to vector<1x256xf32>
    %c0_i32_241 = arith.constant 0 : i32
    %700 = vector.broadcast %c0_i32_241 : i32 to vector<1x256xi32>
    %701 = arith.cmpi sge, %0, %700 : vector<1x256xi32>
    %c128_i32_242 = arith.constant 128 : i32
    %702 = vector.broadcast %c128_i32_242 : i32 to vector<1x256xi32>
    %703 = arith.cmpi slt, %0, %702 : vector<1x256xi32>
    %704 = arith.andi %701, %703 : vector<1x256xi1>
    %cst_243 = arith.constant 0.000000e+00 : f32
    %705 = vector.broadcast %cst_243 : f32 to vector<1x256xf32>
    %706 = arith.select %704, %694, %705 : vector<1x256xi1>, vector<1x256xf32>
    %707 = vector.shape_cast %706 : vector<1x256xf32> to vector<1x1x256xf32>
    %cst_244 = arith.constant dense<0.000000e+00> : vector<1xf32>
    %708 = vector.multi_reduction <add>, %707, %cst_244 [1, 2] : vector<1x1x256xf32> to vector<1xf32>
    %709 = vector.shape_cast %708 : vector<1xf32> to vector<1x1x1xf32>
    %710 = vector.extract %709[0, 0, 0] : f32 from vector<1x1x1xf32>
    %cst_245 = arith.constant 0.000000e+00 : f32
    %711 = vector.broadcast %cst_245 : f32 to vector<1x256xf32>
    %712 = arith.select %704, %697, %711 : vector<1x256xi1>, vector<1x256xf32>
    %713 = vector.shape_cast %712 : vector<1x256xf32> to vector<1x1x256xf32>
    %cst_246 = arith.constant dense<0.000000e+00> : vector<1xf32>
    %714 = vector.multi_reduction <add>, %713, %cst_246 [1, 2] : vector<1x1x256xf32> to vector<1xf32>
    %715 = vector.shape_cast %714 : vector<1xf32> to vector<1x1x1xf32>
    %716 = vector.extract %715[0, 0, 0] : f32 from vector<1x1x1xf32>
    %cst_247 = arith.constant 2.44140625E-4 : f32
    %717 = arith.mulf %710, %cst_247 : f32
    %cst_248 = arith.constant 2.44140625E-4 : f32
    %718 = arith.mulf %716, %cst_248 : f32
    %719 = arith.mulf %717, %717 : f32
    %720 = arith.subf %718, %719 : f32
    %cst_249 = arith.constant 0.000000e+00 : f32
    %721 = arith.maximumf %720, %cst_249 : f32
    %cst_250 = arith.constant 9.99999993E-9 : f32
    %722 = arith.addf %721, %cst_250 : f32
    %723 = math.rsqrt %722 : f32
    %724 = vector.broadcast %717 : f32 to vector<1x256xf32>
    %725 = arith.select %704, %724, %698 : vector<1x256xi1>, vector<1x256xf32>
    %726 = vector.broadcast %723 : f32 to vector<1x256xf32>
    %727 = arith.select %704, %726, %699 : vector<1x256xi1>, vector<1x256xf32>
    %c128_i32_251 = arith.constant 128 : i32
    %728 = vector.broadcast %c128_i32_251 : i32 to vector<1x256xi32>
    %729 = arith.cmpi sge, %0, %728 : vector<1x256xi32>
    %c256_i32_252 = arith.constant 256 : i32
    %730 = vector.broadcast %c256_i32_252 : i32 to vector<1x256xi32>
    %731 = arith.cmpi slt, %0, %730 : vector<1x256xi32>
    %732 = arith.andi %729, %731 : vector<1x256xi1>
    %cst_253 = arith.constant 0.000000e+00 : f32
    %733 = vector.broadcast %cst_253 : f32 to vector<1x256xf32>
    %734 = arith.select %732, %694, %733 : vector<1x256xi1>, vector<1x256xf32>
    %735 = vector.shape_cast %734 : vector<1x256xf32> to vector<1x1x256xf32>
    %cst_254 = arith.constant dense<0.000000e+00> : vector<1xf32>
    %736 = vector.multi_reduction <add>, %735, %cst_254 [1, 2] : vector<1x1x256xf32> to vector<1xf32>
    %737 = vector.shape_cast %736 : vector<1xf32> to vector<1x1x1xf32>
    %738 = vector.extract %737[0, 0, 0] : f32 from vector<1x1x1xf32>
    %cst_255 = arith.constant 0.000000e+00 : f32
    %739 = vector.broadcast %cst_255 : f32 to vector<1x256xf32>
    %740 = arith.select %732, %697, %739 : vector<1x256xi1>, vector<1x256xf32>
    %741 = vector.shape_cast %740 : vector<1x256xf32> to vector<1x1x256xf32>
    %cst_256 = arith.constant dense<0.000000e+00> : vector<1xf32>
    %742 = vector.multi_reduction <add>, %741, %cst_256 [1, 2] : vector<1x1x256xf32> to vector<1xf32>
    %743 = vector.shape_cast %742 : vector<1xf32> to vector<1x1x1xf32>
    %744 = vector.extract %743[0, 0, 0] : f32 from vector<1x1x1xf32>
    %cst_257 = arith.constant 2.44140625E-4 : f32
    %745 = arith.mulf %738, %cst_257 : f32
    %cst_258 = arith.constant 2.44140625E-4 : f32
    %746 = arith.mulf %744, %cst_258 : f32
    %747 = arith.mulf %745, %745 : f32
    %748 = arith.subf %746, %747 : f32
    %cst_259 = arith.constant 0.000000e+00 : f32
    %749 = arith.maximumf %748, %cst_259 : f32
    %cst_260 = arith.constant 9.99999993E-9 : f32
    %750 = arith.addf %749, %cst_260 : f32
    %751 = math.rsqrt %750 : f32
    %752 = vector.broadcast %745 : f32 to vector<1x256xf32>
    %753 = arith.select %732, %752, %725 : vector<1x256xi1>, vector<1x256xf32>
    %754 = vector.broadcast %751 : f32 to vector<1x256xf32>
    %755 = arith.select %732, %754, %727 : vector<1x256xi1>, vector<1x256xf32>
    %756 = vector.broadcast %753 : vector<1x256xf32> to vector<32x256xf32>
    %757 = arith.subf %692, %756 : vector<32x256xf32>
    %758 = vector.broadcast %755 : vector<1x256xf32> to vector<32x256xf32>
    %759 = arith.mulf %757, %758 : vector<32x256xf32>
    %760 = vector.broadcast %676 : vector<32x1xf32> to vector<32x256xf32>
    %761 = arith.mulf %759, %760 : vector<32x256xf32>
    %762 = vector.broadcast %677 : vector<32x1xf32> to vector<32x256xf32>
    %763 = arith.addf %761, %762 : vector<32x256xf32>
    %c2_i32_261 = arith.constant 2 : i32
    %764 = vector.broadcast %c2_i32_261 : i32 to vector<1x256xi32>
    %765 = arith.cmpi sge, %5, %764 : vector<1x256xi32>
    %c126_i32_262 = arith.constant 126 : i32
    %766 = vector.broadcast %c126_i32_262 : i32 to vector<1x256xi32>
    %767 = arith.cmpi slt, %5, %766 : vector<1x256xi32>
    %c2_i32_263 = arith.constant 2 : i32
    %768 = tpu.dynamic_rotate %763 by %c2_i32_263 dim 1 : vector<32x256xf32>, i32 -> vector<32x256xf32>
    %cst_264 = arith.constant 0.000000e+00 : f32
    %769 = vector.shape_cast %765 : vector<1x256xi1> to vector<1x256xi1>
    %770 = vector.broadcast %769 : vector<1x256xi1> to vector<32x256xi1>
    %771 = vector.broadcast %cst_264 : f32 to vector<32x256xf32>
    %772 = arith.select %770, %768, %771 : vector<32x256xi1>, vector<32x256xf32>
    %c254_i32_265 = arith.constant 254 : i32
    %773 = tpu.dynamic_rotate %763 by %c254_i32_265 dim 1 : vector<32x256xf32>, i32 -> vector<32x256xf32>
    %cst_266 = arith.constant 0.000000e+00 : f32
    %774 = vector.shape_cast %767 : vector<1x256xi1> to vector<1x256xi1>
    %775 = vector.broadcast %774 : vector<1x256xi1> to vector<32x256xi1>
    %776 = vector.broadcast %cst_266 : f32 to vector<32x256xf32>
    %777 = arith.select %775, %773, %776 : vector<32x256xi1>, vector<32x256xf32>
    %778 = vector.broadcast %678 : vector<32x1xf32> to vector<32x256xf32>
    %779 = arith.mulf %778, %772 : vector<32x256xf32>
    %780 = vector.broadcast %679 : vector<32x1xf32> to vector<32x256xf32>
    %781 = arith.mulf %780, %763 : vector<32x256xf32>
    %782 = arith.addf %779, %781 : vector<32x256xf32>
    %783 = vector.broadcast %680 : vector<32x1xf32> to vector<32x256xf32>
    %784 = arith.mulf %783, %777 : vector<32x256xf32>
    %785 = arith.addf %782, %784 : vector<32x256xf32>
    %786 = vector.broadcast %681 : vector<32x1xf32> to vector<32x256xf32>
    %787 = arith.addf %785, %786 : vector<32x256xf32>
    %c3_267 = arith.constant 3 : index
    %788 = memref.load %arg9[%c3_267] : memref<4xf32, #tpu.memory_space<smem>>
    %cst_268 = arith.constant 0.000000e+00 : f32
    %789 = vector.broadcast %cst_268 : f32 to vector<32x256xf32>
    %790 = arith.cmpf ogt, %787, %789 : vector<32x256xf32>
    %791 = vector.broadcast %788 : f32 to vector<32x256xf32>
    %792 = arith.mulf %791, %787 : vector<32x256xf32>
    %793 = arith.select %790, %787, %792 : vector<32x256xi1>, vector<32x256xf32>
    %cst_269 = arith.constant dense<0.000000e+00> : vector<256xf32>
    %794 = vector.multi_reduction <add>, %793, %cst_269 [0] : vector<32x256xf32> to vector<256xf32>
    %795 = vector.shape_cast %794 : vector<256xf32> to vector<1x256xf32>
    %796 = arith.mulf %793, %793 : vector<32x256xf32>
    %cst_270 = arith.constant dense<0.000000e+00> : vector<256xf32>
    %797 = vector.multi_reduction <add>, %796, %cst_270 [0] : vector<32x256xf32> to vector<256xf32>
    %798 = vector.shape_cast %797 : vector<256xf32> to vector<1x256xf32>
    %cst_271 = arith.constant 0.000000e+00 : f32
    %799 = vector.broadcast %cst_271 : f32 to vector<1x256xf32>
    %cst_272 = arith.constant 0.000000e+00 : f32
    %800 = vector.broadcast %cst_272 : f32 to vector<1x256xf32>
    %c0_i32_273 = arith.constant 0 : i32
    %801 = vector.broadcast %c0_i32_273 : i32 to vector<1x256xi32>
    %802 = arith.cmpi sge, %0, %801 : vector<1x256xi32>
    %c128_i32_274 = arith.constant 128 : i32
    %803 = vector.broadcast %c128_i32_274 : i32 to vector<1x256xi32>
    %804 = arith.cmpi slt, %0, %803 : vector<1x256xi32>
    %805 = arith.andi %802, %804 : vector<1x256xi1>
    %cst_275 = arith.constant 0.000000e+00 : f32
    %806 = vector.broadcast %cst_275 : f32 to vector<1x256xf32>
    %807 = arith.select %805, %795, %806 : vector<1x256xi1>, vector<1x256xf32>
    %808 = vector.shape_cast %807 : vector<1x256xf32> to vector<1x1x256xf32>
    %cst_276 = arith.constant dense<0.000000e+00> : vector<1xf32>
    %809 = vector.multi_reduction <add>, %808, %cst_276 [1, 2] : vector<1x1x256xf32> to vector<1xf32>
    %810 = vector.shape_cast %809 : vector<1xf32> to vector<1x1x1xf32>
    %811 = vector.extract %810[0, 0, 0] : f32 from vector<1x1x1xf32>
    %cst_277 = arith.constant 0.000000e+00 : f32
    %812 = vector.broadcast %cst_277 : f32 to vector<1x256xf32>
    %813 = arith.select %805, %798, %812 : vector<1x256xi1>, vector<1x256xf32>
    %814 = vector.shape_cast %813 : vector<1x256xf32> to vector<1x1x256xf32>
    %cst_278 = arith.constant dense<0.000000e+00> : vector<1xf32>
    %815 = vector.multi_reduction <add>, %814, %cst_278 [1, 2] : vector<1x1x256xf32> to vector<1xf32>
    %816 = vector.shape_cast %815 : vector<1xf32> to vector<1x1x1xf32>
    %817 = vector.extract %816[0, 0, 0] : f32 from vector<1x1x1xf32>
    %cst_279 = arith.constant 2.44140625E-4 : f32
    %818 = arith.mulf %811, %cst_279 : f32
    %cst_280 = arith.constant 2.44140625E-4 : f32
    %819 = arith.mulf %817, %cst_280 : f32
    %820 = arith.mulf %818, %818 : f32
    %821 = arith.subf %819, %820 : f32
    %cst_281 = arith.constant 0.000000e+00 : f32
    %822 = arith.maximumf %821, %cst_281 : f32
    %cst_282 = arith.constant 9.99999993E-9 : f32
    %823 = arith.addf %822, %cst_282 : f32
    %824 = math.rsqrt %823 : f32
    %825 = vector.broadcast %818 : f32 to vector<1x256xf32>
    %826 = arith.select %805, %825, %799 : vector<1x256xi1>, vector<1x256xf32>
    %827 = vector.broadcast %824 : f32 to vector<1x256xf32>
    %828 = arith.select %805, %827, %800 : vector<1x256xi1>, vector<1x256xf32>
    %c128_i32_283 = arith.constant 128 : i32
    %829 = vector.broadcast %c128_i32_283 : i32 to vector<1x256xi32>
    %830 = arith.cmpi sge, %0, %829 : vector<1x256xi32>
    %c256_i32_284 = arith.constant 256 : i32
    %831 = vector.broadcast %c256_i32_284 : i32 to vector<1x256xi32>
    %832 = arith.cmpi slt, %0, %831 : vector<1x256xi32>
    %833 = arith.andi %830, %832 : vector<1x256xi1>
    %cst_285 = arith.constant 0.000000e+00 : f32
    %834 = vector.broadcast %cst_285 : f32 to vector<1x256xf32>
    %835 = arith.select %833, %795, %834 : vector<1x256xi1>, vector<1x256xf32>
    %836 = vector.shape_cast %835 : vector<1x256xf32> to vector<1x1x256xf32>
    %cst_286 = arith.constant dense<0.000000e+00> : vector<1xf32>
    %837 = vector.multi_reduction <add>, %836, %cst_286 [1, 2] : vector<1x1x256xf32> to vector<1xf32>
    %838 = vector.shape_cast %837 : vector<1xf32> to vector<1x1x1xf32>
    %839 = vector.extract %838[0, 0, 0] : f32 from vector<1x1x1xf32>
    %cst_287 = arith.constant 0.000000e+00 : f32
    %840 = vector.broadcast %cst_287 : f32 to vector<1x256xf32>
    %841 = arith.select %833, %798, %840 : vector<1x256xi1>, vector<1x256xf32>
    %842 = vector.shape_cast %841 : vector<1x256xf32> to vector<1x1x256xf32>
    %cst_288 = arith.constant dense<0.000000e+00> : vector<1xf32>
    %843 = vector.multi_reduction <add>, %842, %cst_288 [1, 2] : vector<1x1x256xf32> to vector<1xf32>
    %844 = vector.shape_cast %843 : vector<1xf32> to vector<1x1x1xf32>
    %845 = vector.extract %844[0, 0, 0] : f32 from vector<1x1x1xf32>
    %cst_289 = arith.constant 2.44140625E-4 : f32
    %846 = arith.mulf %839, %cst_289 : f32
    %cst_290 = arith.constant 2.44140625E-4 : f32
    %847 = arith.mulf %845, %cst_290 : f32
    %848 = arith.mulf %846, %846 : f32
    %849 = arith.subf %847, %848 : f32
    %cst_291 = arith.constant 0.000000e+00 : f32
    %850 = arith.maximumf %849, %cst_291 : f32
    %cst_292 = arith.constant 9.99999993E-9 : f32
    %851 = arith.addf %850, %cst_292 : f32
    %852 = math.rsqrt %851 : f32
    %853 = vector.broadcast %846 : f32 to vector<1x256xf32>
    %854 = arith.select %833, %853, %826 : vector<1x256xi1>, vector<1x256xf32>
    %855 = vector.broadcast %852 : f32 to vector<1x256xf32>
    %856 = arith.select %833, %855, %828 : vector<1x256xi1>, vector<1x256xf32>
    %857 = vector.broadcast %854 : vector<1x256xf32> to vector<32x256xf32>
    %858 = arith.subf %793, %857 : vector<32x256xf32>
    %859 = vector.broadcast %856 : vector<1x256xf32> to vector<32x256xf32>
    %860 = arith.mulf %858, %859 : vector<32x256xf32>
    %c3_293 = arith.constant 3 : index
    %c0_294 = arith.constant 0 : index
    %c0_295 = arith.constant 0 : index
    %861 = vector.load %arg6[%c3_293, %c0_294, %c0_295] : memref<4x32x32xf32, #tpu.memory_space<vmem>>, vector<1x32x32xf32>
    %862 = vector.shape_cast %861 : vector<1x32x32xf32> to vector<32x32xf32>
    %cst_296 = arith.constant dense<0.000000e+00> : vector<32x256xf32>
    %863 = tpu.matmul %862, %860, %cst_296 {dimension_numbers = #tpu.dot_dimension_numbers<[1], [0], [0], [1], [0, 0, 1, 1], [], []>} : vector<32x32xf32>, vector<32x256xf32>, vector<32x256xf32> -> vector<32x256xf32>
    %864 = vector.extract_strided_slice %79 {offsets = [0, 3], sizes = [32, 1], strides = [1, 1]} : vector<32x4xf32> to vector<32x1xf32>
    %865 = vector.broadcast %864 : vector<32x1xf32> to vector<32x256xf32>
    %866 = arith.addf %863, %865 : vector<32x256xf32>
    %867 = vector.extract_strided_slice %866 {offsets = [16, 0], sizes = [16, 256], strides = [1, 1]} : vector<32x256xf32> to vector<16x256xf32>
    %868 = arith.addf %672, %867 : vector<16x256xf32>
    %c0_297 = arith.constant 0 : index
    %869 = memref.load %arg10[%c0_297] : memref<1xf32, #tpu.memory_space<smem>>
    %cst_298 = arith.constant 0.000000e+00 : f32
    %870 = vector.broadcast %cst_298 : f32 to vector<16x256xf32>
    %871 = arith.cmpf ogt, %868, %870 : vector<16x256xf32>
    %872 = vector.broadcast %869 : f32 to vector<16x256xf32>
    %873 = arith.mulf %872, %868 : vector<16x256xf32>
    %874 = arith.select %871, %868, %873 : vector<16x256xi1>, vector<16x256xf32>
    %c0_299 = arith.constant 0 : index
    %c0_300 = arith.constant 0 : index
    %875 = vector.load %arg11[%c0_299, %c0_300] : memref<8x16xf32, #tpu.memory_space<vmem>>, vector<8x16xf32>
    %cst_301 = arith.constant dense<0.000000e+00> : vector<8x256xf32>
    %876 = tpu.matmul %875, %874, %cst_301 {dimension_numbers = #tpu.dot_dimension_numbers<[1], [0], [0], [1], [0, 0, 1, 1], [], []>} : vector<8x16xf32>, vector<16x256xf32>, vector<8x256xf32> -> vector<8x256xf32>
    %c0_302 = arith.constant 0 : index
    %c0_303 = arith.constant 0 : index
    %877 = vector.load %arg12[%c0_302, %c0_303] : memref<8x1xf32, #tpu.memory_space<vmem>>, vector<8x1xf32>
    %878 = vector.broadcast %877 : vector<8x1xf32> to vector<8x256xf32>
    %879 = arith.addf %876, %878 : vector<8x256xf32>
    %c0_304 = arith.constant 0 : index
    %c0_305 = arith.constant 0 : index
    %880 = vector.load %arg13[%c0_304, %c0_305] : memref<8x256xf32, #tpu.memory_space<vmem>>, vector<8x256xf32>
    tpu.vector_store %arg13[%c0_304, %c0_305], %879 {strides = array<i32>} : memref<8x256xf32, #tpu.memory_space<vmem>>, vector<8x256xf32>,
    return
  }
  func.func @transform_0(%arg0: i32) -> (i32, i32) {
    %c0_i32 = arith.constant 0 : i32
    %c0_i32_0 = arith.constant 0 : i32
    return %c0_i32, %arg0 : i32, i32
  }
  func.func @transform_1(%arg0: i32) -> (i32, i32) {
    %c0_i32 = arith.constant 0 : i32
    %c0_i32_0 = arith.constant 0 : i32
    %c0_i32_1 = arith.constant 0 : i32
    return %c0_i32, %c0_i32_0 : i32, i32
  }
  func.func @transform_2(%arg0: i32) -> (i32, i32) {
    %c0_i32 = arith.constant 0 : i32
    %c0_i32_0 = arith.constant 0 : i32
    %c0_i32_1 = arith.constant 0 : i32
    return %c0_i32, %c0_i32_0 : i32, i32
  }
  func.func @transform_3(%arg0: i32) -> (i32, i32, i32) {
    %c0_i32 = arith.constant 0 : i32
    %c0_i32_0 = arith.constant 0 : i32
    %c0_i32_1 = arith.constant 0 : i32
    %c0_i32_2 = arith.constant 0 : i32
    return %c0_i32, %c0_i32_0, %c0_i32_1 : i32, i32, i32
  }
  func.func @transform_4(%arg0: i32) -> (i32, i32, i32) {
    %c0_i32 = arith.constant 0 : i32
    %c0_i32_0 = arith.constant 0 : i32
    %c0_i32_1 = arith.constant 0 : i32
    %c0_i32_2 = arith.constant 0 : i32
    return %c0_i32, %c0_i32_0, %c0_i32_1 : i32, i32, i32
  }
  func.func @transform_5(%arg0: i32) -> (i32, i32, i32) {
    %c0_i32 = arith.constant 0 : i32
    %c0_i32_0 = arith.constant 0 : i32
    %c0_i32_1 = arith.constant 0 : i32
    %c0_i32_2 = arith.constant 0 : i32
    return %c0_i32, %c0_i32_0, %c0_i32_1 : i32, i32, i32
  }
  func.func @transform_6(%arg0: i32) -> (i32, i32) {
    %c0_i32 = arith.constant 0 : i32
    %c0_i32_0 = arith.constant 0 : i32
    %c0_i32_1 = arith.constant 0 : i32
    return %c0_i32, %c0_i32_0 : i32, i32
  }
  func.func @transform_7(%arg0: i32) -> i32 {
    %c0_i32 = arith.constant 0 : i32
    %c0_i32_0 = arith.constant 0 : i32
    return %c0_i32 : i32
  }
  func.func @transform_8(%arg0: i32) -> i32 {
    %c0_i32 = arith.constant 0 : i32
    %c0_i32_0 = arith.constant 0 : i32
    return %c0_i32 : i32
  }
  func.func @transform_9(%arg0: i32) -> i32 {
    %c0_i32 = arith.constant 0 : i32
    %c0_i32_0 = arith.constant 0 : i32
    return %c0_i32 : i32
  }
  func.func @transform_10(%arg0: i32) -> (i32, i32) {
    %c0_i32 = arith.constant 0 : i32
    %c0_i32_0 = arith.constant 0 : i32
    %c0_i32_1 = arith.constant 0 : i32
    return %c0_i32, %c0_i32_0 : i32, i32
  }
  func.func @transform_11(%arg0: i32) -> (i32, i32) {
    %c0_i32 = arith.constant 0 : i32
    %c0_i32_0 = arith.constant 0 : i32
    %c0_i32_1 = arith.constant 0 : i32
    return %c0_i32, %c0_i32_0 : i32, i32
  }
  func.func @transform_12(%arg0: i32) -> (i32, i32) {
    %c0_i32 = arith.constant 0 : i32
    %c0_i32_0 = arith.constant 0 : i32
    return %c0_i32, %arg0 : i32, i32
  }
}

</mosaic_0001>

<bundles_post_ra>
// kernel: tpu_custom_call.1
= control target key start
LH: loop header
LB: loop body
LE: loop exit
PB: predicated region body
PF: predicated region fallthrough
CT: control target
= control target key end

     0   :  { %s6679_s0 = inlined_call_operand.vmem [shape: f32[8,512], index: 0, kind: input, shape index: {}]   ;;  %s6680_s1 = inlined_call_operand.vmem [shape: f32[16,8], index: 1, kind: input, shape index: {}]   ;;  %s6681_s2 = inlined_call_operand.vmem [shape: f32[16,1], index: 2, kind: input, shape index: {}]   ;;  %s6682_s3 = inlined_call_operand.vmem [shape: f32[4,32,16], index: 3, kind: input, shape index: {}]   ;;  %s6683_s4 = inlined_call_operand.vmem [shape: f32[4,32,7], index: 4, kind: input, shape index: {}]   ;;  %s6684_s5 = inlined_call_operand.vmem [shape: f32[4,32,32], index: 5, kind: input, shape index: {}]   ;;  %s6685_s6 = inlined_call_operand.vmem [shape: f32[32,4], index: 6, kind: input, shape index: {}]   ;;  %s6686_s7 = inlined_call_operand.vmem [shape: f32[4], index: 7, kind: input, shape index: {}]   ;;  %s6687_s8 = inlined_call_operand.vmem [shape: f32[4], index: 8, kind: input, shape index: {}]   ;;  %s6688_s9 = inlined_call_operand.<no memory space> [shape: f32[1], index: 9, kind: input, shape index: {}]   ;;  %s6689_s10 = inlined_call_operand.vmem [shape: f32[8,16], index: 10, kind: input, shape index: {}]   ;;  %s6690_s11 = inlined_call_operand.vmem [shape: f32[8,1], index: 11, kind: input, shape index: {}]   ;;  %s6691_s12 = inlined_call_operand.hbm [shape: f32[8,512], index: 12, kind: output, shape index: {}]  }
   0x1   :  { %6700 = sst [smem:[#allocation12_spill]] %s6679_s0 }
   0x2   :  { %6701 = sst [smem:[#allocation13_spill]] %s6681_s2 }
   0x3   :  { %17 = sst [smem:[#allocation2]] %s6688_s9 }
   0x4   :  { %18 = vsyncpa [#allocation5], 0 }
   0x5   :  { %19 = vsyncpa [#allocation7], 0 }
   0x6   :  { %20 = vsyncpa [#allocation4], 0 }
   0x7   :  { %22 = vsyncpa [#allocation4 + $0x1], 0  ;;  %s4697_s23 = smov 0   ;;  %s4699_s24 = smov 0  }
   0x8   :  { %s4701_s25 = smov 0   ;;  %s4703_s26 = smov 0  }
   0x9 LB: > { %s4718_s9 = sadd.s32 4294967295, %s4613_s26   ;;  %s4062_s27 = sadd.s32 4294967294, %s4613_s26   ;;  %s4613_s26 = sphi %s4703_s26, %s6713_s26   ;;  %s4609_s25 = sphi %s4701_s25, %s6712_s25   ;;  %s4605_s24 = sphi %s4699_s24, %s6711_s24   ;;  %s4601_s23 = sphi %s4697_s23, %s6710_s23  }
   0xa   : > { %s4722_s28 = sadd.s32 1, %s4613_s26   ;;  %s292_s29 = sadd.s32 1, %s4609_s25 }
   0xb   : > { %s289_s30 = ssub.s32 %s4613_s26, %s4722_s28  ;;  %p302_p0 = scmp.ne.s32.totalorder %s4609_s25, %s4605_s24 }
   0xc   : > { %p290_p1 = scmp.eq.s32.totalorder %s289_s30, 0  ;;  %p303_p2 = scmp.eq.s32.totalorder %s4718_s9, 1 }
   0xd   : > { %p308_p3 = scmp.ne.s32.totalorder %s4605_s24, %s4601_s23  ;;  %p309_p4 = scmp.eq.s32.totalorder %s4062_s27, 1 }
   0xe   : > { %s4733_s13 = scalar_select %p290_p1, %s4609_s25, %s292_s29  }
   0xf   : > { %p4735_p5 = por %p303_p2, %p302_p0  ;;  %p4739_p6 = por %p309_p4, %p308_p3 }
  0x10   : > { %p4063_p7 = scmp.ge.s32.totalorder %s4613_s26, 1  ;;  %p316_p8 = scmp.lt.s32.totalorder %s4613_s26, 3 }
  0x11   : > { %p4321_p9 = scmp.eq.s32.totalorder %s4718_s9, 0  ;;  %s346_s18 = sshll.u32 %s6686_s7, 4  ;;  %s347_s18 = int_to_ptr.vmem [resolvable:$true] %s346_s18 }
  0x12   : > { %p317_p10 = pnand %p4063_p7, %p316_p8  ;;  %s356_s21 = sshll.u32 %s6687_s8, 4  ;;  %s357_s21 = int_to_ptr.vmem [resolvable:$true] %s356_s21 }
  0x13   : > { %s4615_s22 = smov [#allocation3]   ;;  %s4616_s27 = smov [#allocation6]  }
  0x14   : > { %p4310_p11 = pneg %p317_p10 }
  0x15   : > { %387 = sbr.rel (%p317_p10) target bundleno = 5052 (0x13bc), region = 68 }
  0x16   : > { %p4311_p12 = pnand %p4321_p9, %p4310_p11 }
  0x18   : > { %4313 = dma.vmem_to_smem (!%p4311_p12), %s347_s18, 16, %s4615_s22, [#allocation5]  }
  0x19   : > { %4316 = dma.vmem_to_smem (!%p4311_p12), %s357_s21, 16, %s4616_s27, [#allocation7]  }
  0x1a   : > { %4588 = dma.done.wait (%p4321_p9), [#allocation5], 16  }
  0x1b   : > { %4590 = vsyncadd (%p4321_p9), [#allocation5], 4294967280 }
  0x1c   : > { %4592 = dma.done.wait (%p4321_p9), [#allocation7], 16  }
  0x1d   : > { %4594 = vsyncadd (%p4321_p9), [#allocation7], 4294967280 }
  0x1e   : > { %399 = sfence }
  0x1f   : > { %s4071_s29 = sshll.u32 %s4718_s9, 1  ;;  %s6704_s0 = sld [smem:[#allocation12_spill]]  ;;  %vm487_vm0 = vcmask 1040384   ;;  %vm612_vm4 = vcmask 64512   ;;  %vm697_vm8 = vcmask 130048  }
  0x20   : > { %p437_p13 = scmp.lt.s32.totalorder %s4071_s29, 3  ;;  %s6705_s2 = sld [smem:[#allocation13_spill]] }
  0x22   : > { %s6715_s29 = smov (!%p437_p13, %s4071_s29), 3 }
  0x23   : > { %s4072_s30 = sshll.u32 %s6715_s29, 3 }
  0x25   : > { %s440_s18 = scalar_lea.vmem %s6704_s0, %s4072_s30  ;;  %s6692_s30 = smov 0.0  }
  0x26   : > { %v4766_v0 = vld [vmem:[%s440_s18] sm:$0xff]  ;;  %v4768_v1 = vld [vmem:[%s440_s18 + $0x8] sm:$0xff] }
  0x27   : > { %v453_v2 = vrot.slane %v4766_v0, 4  ;;  %v465_v3 = vmul.f32 %v4766_v0, %v4766_v0  ;;  %v459_v4 = vrot.slane %v4768_v1, 4  ;;  %v466_v5 = vmul.f32 %v4768_v1, %v4768_v1 }
  0x29   : > { %v454_v6 = vadd.f32 %v453_v2, %v4766_v0  ;;  %v467_v7 = vrot.slane %v465_v3, 4  ;;  %v460_v8 = vadd.f32 %v459_v4, %v4768_v1  ;;  %v473_v9 = vrot.slane %v466_v5, 4 }
  0x2b   : > { %v455_v10 = vrot.slane %v454_v6, 2  ;;  %v468_v11 = vadd.f32 %v467_v7, %v465_v3  ;;  %v461_v12 = vrot.slane %v460_v8, 2  ;;  %v474_v13 = vadd.f32 %v473_v9, %v466_v5  ;;  %v601_v7 = vld [vmem:[%s6705_s2 + $0x8] sm:$0xff] }
  0x2d   : > { %v456_v14 = vadd.f32 %v455_v10, %v454_v6  ;;  %v469_v15 = vrot.slane %v468_v11, 2  ;;  %v462_v16 = vadd.f32 %v461_v12, %v460_v8  ;;  %v475_v17 = vrot.slane %v474_v13, 2  ;;  %v600_v8 = vld [vmem:[%s6705_s2] sm:$0xff]  ;;  %v4801_v12 = vld [vmem:[%s6683_s4 + $0x10] sm:$0xff] }
  0x2e   : > { %v4618_v6 = vmov 0  }
  0x2f   : > { %v457_v18 = vrot.slane %v456_v14, 1  ;;  %v470_v19 = vadd.f32 %v469_v15, %v468_v11  ;;  %v463_v20 = vrot.slane %v462_v16, 1  ;;  %v476_v21 = vadd.f32 %v475_v17, %v474_v13  ;;  %4372 = vset.pattern.permute.xlu2 %v4618_v6  ;;  %4373 = vset.pattern.permute.xlu0 %v4618_v6  ;;  %v595_v15 = vld [vmem:[%s6680_s1 + $0x8] sm:$0xff] }
  0x30   : > { %609 = vperm.xlu2 %4372, %v601_v7   ;;  %4374 = vset.pattern.permute.xlu1 %v4618_v6 }
  0x31   : > { %v458_v22 = vadd.f32 %v457_v18, %v456_v14  ;;  %v471_v23 = vrot.slane %v470_v19, 1  ;;  %v464_v24 = vadd.f32 %v463_v20, %v462_v16  ;;  %v477_v25 = vrot.slane %v476_v21, 1  ;;  %v594_v14 = vld [vmem:[%s6680_s1] sm:$0xff] }
  0x33   : > { %v488_v26 = vsel %vm487_vm0, %v458_v22, 0.0  ;;  %v545_v27 = vsel %vm487_vm0, %v464_v24, 0.0  ;;  %v472_v28 = vadd.f32 %v471_v23, %v470_v19  ;;  %v478_v29 = vadd.f32 %v477_v25, %v476_v21 }
  0x34   : > { %491 = vadd.xlane.f32.xlu0 %v488_v26  ;;  %547 = vadd.xlane.f32.xlu1 %v545_v27 }
  0x35   : > { %v502_v30 = vsel %vm487_vm0, %v472_v28, 0.0  ;;  %v559_v31 = vsel %vm487_vm0, %v478_v29, 0.0  ;;  %v4830_v28 = vld [vmem:[%s6683_s4] sm:$0xff] }
  0x38   : > { %604 = vperm.xlu2 %4372, %v600_v8  }
  0x3c   : > { %505 = vadd.xlane.f32.xlu0 %v502_v30  ;;  %561 = vadd.xlane.f32.xlu1 %v559_v31 }
  0x40   : > { %689 = vperm.xlu2 %4372, %v4801_v12  }
  0x50   : > { %679 = vperm.xlu0 %4373, %v4830_v28  }
  0x8a   : > { %v610_v29 = vpop.permute.xlu2 %609 }
  0xa7   : > { %v492_v32 = vpop.xlane.xlu0 %491  ;;  %v548_v46 = vpop.xlane.xlu1 %547 }
  0xa8   : > { %v493_v33 = vrot.slane %v492_v32, 4  ;;  %v549_v48 = vrot.slane %v548_v46, 4 }
  0xaa   : > { %v494_v34 = vadd.f32 %v493_v33, %v492_v32  ;;  %v550_v51 = vadd.f32 %v549_v48, %v548_v46  ;;  %v605_v33 = vpop.permute.xlu2 %604 }
  0xac   : > { %v495_v35 = vrot.slane %v494_v34, 2  ;;  %v551_v53 = vrot.slane %v550_v51, 2 }
  0xae   : > { %v496_v36 = vadd.f32 %v495_v35, %v494_v34  ;;  %v552_v58 = vadd.f32 %v551_v53, %v550_v51  ;;  %v673_v35 = vld [vmem:[%s6682_s3] sm:$0xff] }
  0xaf   : > { %v506_v37 = vpop.xlane.xlu0 %505  ;;  %v562_v47 = vpop.xlane.xlu1 %561 }
  0xb0   : > { %v507_v38 = vrot.slane %v506_v37, 4  ;;  %v497_v39 = vrot.slane %v496_v36, 1  ;;  %v563_v49 = vrot.slane %v562_v47, 4  ;;  %v553_v62 = vrot.slane %v552_v58, 1 }
  0xb2   : > { %v508_v40 = vadd.f32 %v507_v38, %v506_v37  ;;  %v498_v41 = vadd.f32 %v497_v39, %v496_v36  ;;  %v564_v52 = vadd.f32 %v563_v49, %v562_v47  ;;  %v554_v4 = vadd.f32 %v553_v62, %v552_v58  ;;  %v674_v36 = vld [vmem:[%s6682_s3 + $0x8] sm:$0xff]  ;;  %v675_v37 = vld [vmem:[%s6682_s3 + $0x10] sm:$0xff]  ;;  %v676_v38 = vld [vmem:[%s6682_s3 + $0x18] sm:$0xff]  ;;  %v690_v48 = vpop.permute.xlu2 %689 }
  0xb4   : > { %4192 = vpush %v498_v41  ;;  %v509_v42 = vrot.slane %v508_v40, 2  ;;  %v565_v55 = vrot.slane %v564_v52, 2 }
  0xb6   : > { %v510_v43 = vadd.f32 %v509_v42, %v508_v40  ;;  %v566_v59 = vadd.f32 %v565_v55, %v564_v52 }
  0xb8   : > { %v511_v44 = vrot.slane %v510_v43, 1  ;;  %v567_v63 = vrot.slane %v566_v59, 1 }
  0xba   : > { %v512_v45 = vadd.f32 %v511_v44, %v510_v43  ;;  %v568_v5 = vadd.f32 %v567_v63, %v566_v59 }
  0xbc   : > { %4194 = vpush %v512_v45 }
  0xc2   : > { %v680_v46 = vpop.permute.xlu0 %679 }
  0xe5   : > { %s4193_s19 = spop %4192 }
  0xe6   : > { %s4782_s20 = smul.f32 0.0009765625, %s4193_s19 }
  0xe8   : > { %s516_s21 = smul.f32 %s4782_s20, %s4782_s20  ;;  %v532_v9 = vstv %s4782_s20 }
  0xe9   : > { %v596_v10 = vsub.f32 %v4766_v0, %v532_v9  ;;  %v4816_v0 = vld [vmem:[%s6683_s4 + $0x18] sm:$0xff] }
  0xea   : > { %694 = vperm.xlu2 %4372, %v4816_v0  }
  0xed   : > { %s4195_s22 = spop %4194 }
  0xee   : > { %s515_s27 = smul.f32 0.0009765625, %s4195_s22 }
  0xf0   : > { %s517_s29 = ssub.f32 %s515_s27, %s516_s21 }
  0xf2   : > { %s518_s16 = smax.f32 %s6692_s30, %s517_s29 }
  0xf3   : > { %s519_s17 = sadd.f32 1e-08, %s518_s16  ;;  %s6706_s16 = smov 0.0  }
  0xf5   : > { %v520_v50 = vstv %s519_s17 }
  0xf6   : > { %4473 = vrsqrt.f32 %v520_v50  ;;  %vm527_vm2 = vweird.f32 %v520_v50 }
  0xfc   : > { %v4474_v54 = vpop.eup %4473 }
  0xfd   : > { %v522_v56 = vmul.f32 %v4474_v54, %v520_v50  ;;  %vm528_vm1 = vweird.f32 %v4474_v54 }
  0xfe   : > { %vm529_vm3 = vmor %vm527_vm2, %vm528_vm1 }
  0xff   : > { %v523_v57 = vmul.f32 %v4474_v54, %v522_v56 }
 0x101   : > { %v524_v60 = vmul.f32 0.5, %v523_v57 }
 0x103   : > { %v525_v61 = vsub.f32 1.5, %v524_v60 }
 0x105   : > { %v526_v2 = vmul.f32 %v4474_v54, %v525_v61 }
 0x107   : > { %v530_v3 = vsel %vm529_vm3, %v4474_v54, %v526_v2 }
 0x108   : > { %4196 = vpush %v530_v3 }
 0x109   : > { %4198 = vpush %v554_v4 }
 0x10a   : > { %4200 = vpush %v568_v5 }
 0x139   : > { %s4197_s27 = spop %4196 }
 0x13a   : > { %v535_v11 = vstv %s4197_s27  ;;  %s4199_s29 = spop %4198 }
 0x13b   : > { %s4803_s18 = smul.f32 0.0009765625, %s4199_s29  ;;  %s4201_s19 = spop %4200  ;;  %v598_v13 = vmul.f32 %v596_v10, %v535_v11 }
 0x13c   : > { %s571_s20 = smul.f32 0.0009765625, %s4201_s19  ;;  %s768_s19 = sld [smem:[#allocation3]] }
 0x13d   : > { %s572_s22 = smul.f32 %s4803_s18, %s4803_s18  ;;  %634 = vmatpush.msra.mxu0 %v598_v13  ;;  %v588_v24 = vstv %s4803_s18 }
 0x13e   : > { %4074 = vmatmul.msk.f32.vlgmr.msra.gmra.mxu0 %vm612_vm4, %v594_v14  ;;  %v597_v25 = vsub.f32 %v4768_v1, %v588_v24  ;;  %v4836_v1 = vld [vmem:[%s6683_s4 + $0x8] sm:$0xff] }
 0x13f   : > { %s573_s27 = ssub.f32 %s571_s20, %s572_s22  ;;  %684 = vperm.xlu1 %4374, %v4836_v1  }
 0x141   : > { %s574_s29 = smax.f32 %s6706_s16, %s573_s27 }
 0x142   : > { %s575_s17 = sadd.f32 1e-08, %s574_s29  ;;  %v4871_v50 = vstv %s768_s19 }
 0x144   : > { %v576_v16 = vstv %s575_s17  ;;  %v695_v59 = vpop.permute.xlu2 %694 }
 0x145   : > { %4475 = vrsqrt.f32 %v576_v16  ;;  %vm583_vm6 = vweird.f32 %v576_v16 }
 0x146   : > { %4075 = vmatmul.msk.f32.gmra.mxu0 %vm612_vm4, %v595_v15 }
 0x14b   : > { %v4476_v17 = vpop.eup %4475 }
 0x14c   : > { %v578_v18 = vmul.f32 %v4476_v17, %v576_v16  ;;  %vm584_vm5 = vweird.f32 %v4476_v17 }
 0x14d   : > { %vm585_vm7 = vmor %vm583_vm6, %vm584_vm5 }
 0x14e   : > { %v579_v19 = vmul.f32 %v4476_v17, %v578_v18 }
 0x150   : > { %v580_v20 = vmul.f32 0.5, %v579_v19 }
 0x152   : > { %v581_v21 = vsub.f32 1.5, %v580_v20 }
 0x154   : > { %v582_v22 = vmul.f32 %v4476_v17, %v581_v21 }
 0x156   : > { %v586_v23 = vsel %vm585_vm7, %v4476_v17, %v582_v22 }
 0x157   : > { %4202 = vpush %v586_v23 }
 0x188   : > { %s4203_s0 = spop %4202 }
 0x189   : > { %v591_v26 = vstv %s4203_s0 }
 0x18a   : > { %v599_v27 = vmul.f32 %v597_v25, %v591_v26 }
 0x18c   : > { %657 = vmatpush.msra.mxu1 %v599_v27 }
 0x18d   : > { %4076 = vmatmul.msk.f32.vlgmr.msra.gmra.mxu1 %vm612_vm4, %v594_v14 }
 0x195   : > { %4077 = vmatmul.msk.f32.gmra.mxu1 %vm612_vm4, %v595_v15 }
 0x1b1   : > { %v685_v45 = vpop.permute.xlu1 %684 }
 0x1bb   : > { %v636_v30 = vpop.f32.mrf.mxu0 }
 0x1bc   : > { %v4841_v34 = vadd.f32 %v636_v30, %v605_v33 }
 0x1c3   : > { %v639_v31 = vpop.f32.mrf.mxu0 }
 0x1c4   : > { %v4839_v32 = vadd.f32 %v639_v31, %v610_v29 }
 0x1c6   : > { %724 = vmatpush.msra.mxu2 %v4839_v32 }
 0x1c8   : > { %725 = vmatpush.msra.mxu2 %v4841_v34 }
 0x1c9   : > { %4078 = vmatmul.msk.f32.vlgmr.msra.gmra.mxu2 %vm697_vm8, %v673_v35 }
 0x1d1   : > { %4079 = vmatmul.msk.f32.gmra.mxu2 %vm697_vm8, %v674_v36 }
 0x1d9   : > { %4080 = vmatmul.msk.f32.gmra.mxu2 %vm697_vm8, %v675_v37 }
 0x1e1   : > { %4081 = vmatmul.msk.f32.gmra.mxu2 %vm697_vm8, %v676_v38 }
 0x20a   : > { %v659_v39 = vpop.f32.mrf.mxu1 }
 0x20b   : > { %v4863_v42 = vadd.f32 %v659_v39, %v605_v33 }
 0x212   : > { %v662_v40 = vpop.f32.mrf.mxu1 }
 0x213   : > { %v4861_v41 = vadd.f32 %v662_v40, %v610_v29 }
 0x215   : > { %753 = vmatpush.msra.mxu3 %v4861_v41 }
 0x217   : > { %754 = vmatpush.msra.mxu3 %v4863_v42 }
 0x218   : > { %4082 = vmatmul.msk.f32.vlgmr.msra.gmra.mxu3 %vm697_vm8, %v673_v35 }
 0x220   : > { %4083 = vmatmul.msk.f32.gmra.mxu3 %vm697_vm8, %v674_v36  ;;  %v4619_v36 = vmov 1  }
 0x221   : > { %4376 = vset.pattern.permute.xlu1 %v4619_v36  ;;  %4375 = vset.pattern.permute.xlu2 %v4619_v36 }
 0x222   : > { %4377 = vset.pattern.permute.xlu0 %v4619_v36 }
 0x228   : > { %4084 = vmatmul.msk.f32.gmra.mxu3 %vm697_vm8, %v675_v37 }
 0x230   : > { %4085 = vmatmul.msk.f32.gmra.mxu3 %vm697_vm8, %v676_v38 }
 0x24c   : > { %v727_v43 = vpop.f32.mrf.mxu2 }
 0x24d   : > { %v728_v49 = vadd.f32 %v727_v43, %v680_v46 }
 0x24f   : > { %v778_v54 = vmul.f32 %v4871_v50, %v728_v49  ;;  %vm769_vm10 = vcmp.gt.f32.partialorder %v728_v49, 0.0 }
 0x251   : > { %v4878_v57 = vsel %vm769_vm10, %v728_v49, %v778_v54  ;;  %v4620_v49 = vmov 2  }
 0x252   : > { %v812_v63 = vmul.f32 %v4878_v57, %v4878_v57 }
 0x254   : > { %v730_v44 = vpop.f32.mrf.mxu2 }
 0x255   : > { %v731_v47 = vadd.f32 %v730_v44, %v685_v45 }
 0x257   : > { %v780_v52 = vmul.f32 %v4871_v50, %v731_v47  ;;  %vm771_vm9 = vcmp.gt.f32.partialorder %v731_v47, 0.0 }
 0x259   : > { %v4876_v56 = vsel %vm771_vm9, %v731_v47, %v780_v52 }
 0x25a   : > { %v814_v60 = vmul.f32 %v4876_v56, %v4876_v56  ;;  %v794_v2 = vadd.f32 %v4876_v56, %v4878_v57 }
 0x25c   : > { %v733_v51 = vpop.f32.mrf.mxu2  ;;  %v820_v5 = vadd.f32 %v814_v60, %v812_v63 }
 0x25d   : > { %v734_v53 = vadd.f32 %v733_v51, %v690_v48 }
 0x25f   : > { %v782_v55 = vmul.f32 %v4871_v50, %v734_v53  ;;  %vm773_vm11 = vcmp.gt.f32.partialorder %v734_v53, 0.0 }
 0x261   : > { %v4880_v58 = vsel %vm773_vm11, %v734_v53, %v782_v55 }
 0x262   : > { %v816_v3 = vmul.f32 %v4880_v58, %v4880_v58  ;;  %v795_v7 = vadd.f32 %v794_v2, %v4880_v58 }
 0x264   : > { %v736_v61 = vpop.f32.mrf.mxu2  ;;  %v821_v9 = vadd.f32 %v820_v5, %v816_v3 }
 0x265   : > { %v737_v62 = vadd.f32 %v736_v61, %v695_v59 }
 0x267   : > { %vm775_vm12 = vcmp.gt.f32.partialorder %v737_v62, 0.0  ;;  %v784_v4 = vmul.f32 %v4871_v50, %v737_v62 }
 0x269   : > { %v4892_v8 = vsel %vm775_vm12, %v737_v62, %v784_v4 }
 0x26a   : > { %v796_v10 = vadd.f32 %v795_v7, %v4892_v8  ;;  %v818_v11 = vmul.f32 %v4892_v8, %v4892_v8 }
 0x26c   : > { %v797_v13 = vrot.slane %v796_v10, 4  ;;  %v822_v14 = vadd.f32 %v821_v9, %v818_v11 }
 0x26e   : > { %v798_v15 = vadd.f32 %v797_v13, %v796_v10  ;;  %v823_v16 = vrot.slane %v822_v14, 4 }
 0x270   : > { %v799_v17 = vrot.slane %v798_v15, 2  ;;  %v824_v18 = vadd.f32 %v823_v16, %v822_v14 }
 0x272   : > { %v800_v19 = vadd.f32 %v799_v17, %v798_v15  ;;  %v825_v20 = vrot.slane %v824_v18, 2 }
 0x274   : > { %v801_v21 = vrot.slane %v800_v19, 1  ;;  %v826_v22 = vadd.f32 %v825_v20, %v824_v18  ;;  %v4622_v20 = vmov 4  }
 0x276   : > { %v802_v23 = vadd.f32 %v801_v21, %v800_v19  ;;  %v827_v24 = vrot.slane %v826_v22, 1  ;;  %v4621_v19 = vmov 3  }
 0x278   : > { %v840_v25 = vsel %vm487_vm0, %v802_v23, 0.0  ;;  %v828_v26 = vadd.f32 %v827_v24, %v826_v22 }
 0x279   : > { %843 = vadd.xlane.f32.xlu2 %v840_v25 }
 0x27a   : > { %v854_v27 = vsel %vm487_vm0, %v828_v26, 0.0 }
 0x27b   : > { %857 = vadd.xlane.f32.xlu1 %v854_v27 }
 0x294   : > { %963 = vperm.xlu1 %4376, %v4836_v1  }
 0x29b   : > { %v756_v29 = vpop.f32.mrf.mxu3 }
 0x29c   : > { %v757_v33 = vadd.f32 %v756_v29, %v680_v46  ;;  %4379 = vset.pattern.permute.xlu1 %v4620_v49 }
 0x29d   : > { %987 = vperm.xlu1 %4379, %v4836_v1  }
 0x29e   : > { %v779_v39 = vmul.f32 %v4871_v50, %v757_v33  ;;  %vm770_vm14 = vcmp.gt.f32.partialorder %v757_v33, 0.0 }
 0x2a0   : > { %v4908_v44 = vsel %vm770_vm14, %v757_v33, %v779_v39 }
 0x2a1   : > { %v813_v51 = vmul.f32 %v4908_v44, %v4908_v44 }
 0x2a3   : > { %v759_v30 = vpop.f32.mrf.mxu3 }
 0x2a4   : > { %v760_v31 = vadd.f32 %v759_v30, %v685_v45 }
 0x2a5   : > { %991 = vperm.xlu1 %4379, %v4801_v12  }
 0x2a6   : > { %v781_v37 = vmul.f32 %v4871_v50, %v760_v31  ;;  %vm772_vm13 = vcmp.gt.f32.partialorder %v760_v31, 0.0 }
 0x2a8   : > { %v4906_v43 = vsel %vm772_vm13, %v760_v31, %v781_v37 }
 0x2a9   : > { %v815_v46 = vmul.f32 %v4906_v43, %v4906_v43  ;;  %v803_v52 = vadd.f32 %v4906_v43, %v4908_v44 }
 0x2ab   : > { %v762_v35 = vpop.f32.mrf.mxu3  ;;  %v829_v55 = vadd.f32 %v815_v46, %v813_v51 }
 0x2ac   : > { %v763_v38 = vadd.f32 %v762_v35, %v690_v48  ;;  %v4623_v35 = vmov 5  }
 0x2ad   : > { %4383 = vset.pattern.permute.xlu1 %v4621_v19 }
 0x2ae   : > { %v783_v40 = vmul.f32 %v4871_v50, %v763_v38  ;;  %vm774_vm15 = vcmp.gt.f32.partialorder %v763_v38, 0.0  ;;  %1089 = vperm.xlu1 %4383, %v4836_v1  }
 0x2b0   : > { %v4910_v45 = vsel %vm774_vm15, %v763_v38, %v783_v40 }
 0x2b1   : > { %v817_v53 = vmul.f32 %v4910_v45, %v4910_v45 }
 0x2b3   : > { %v765_v47 = vpop.f32.mrf.mxu3  ;;  %v830_v61 = vadd.f32 %v829_v55, %v817_v53 }
 0x2b4   : > { %v766_v48 = vadd.f32 %v765_v47, %v695_v59  ;;  %v804_v59 = vadd.f32 %v803_v52, %v4910_v45 }
 0x2b6   : > { %vm776_vm1 = vcmp.gt.f32.partialorder %v766_v48, 0.0  ;;  %v785_v54 = vmul.f32 %v4871_v50, %v766_v48  ;;  %4385 = vset.pattern.permute.xlu1 %v4622_v20 }
 0x2b7   : > { %1113 = vperm.xlu1 %4385, %v4836_v1  }
 0x2b8   : > { %v4924_v60 = vsel %vm776_vm1, %v766_v48, %v785_v54 }
 0x2b9   : > { %v805_v62 = vadd.f32 %v804_v59, %v4924_v60  ;;  %v819_v63 = vmul.f32 %v4924_v60, %v4924_v60 }
 0x2bb   : > { %v806_v2 = vrot.slane %v805_v62, 4  ;;  %v831_v3 = vadd.f32 %v830_v61, %v819_v63 }
 0x2bd   : > { %v807_v4 = vadd.f32 %v806_v2, %v805_v62  ;;  %v832_v5 = vrot.slane %v831_v3, 4 }
 0x2bf   : > { %v808_v7 = vrot.slane %v807_v4, 2  ;;  %v833_v9 = vadd.f32 %v832_v5, %v831_v3  ;;  %1117 = vperm.xlu1 %4385, %v4801_v12  }
 0x2c1   : > { %v809_v50 = vadd.f32 %v808_v7, %v807_v4  ;;  %v834_v10 = vrot.slane %v833_v9, 2 }
 0x2c3   : > { %v810_v11 = vrot.slane %v809_v50, 1  ;;  %v835_v13 = vadd.f32 %v834_v10, %v833_v9  ;;  %v4624_v10 = vmov 6  }
 0x2c5   : > { %v811_v14 = vadd.f32 %v810_v11, %v809_v50  ;;  %v836_v15 = vrot.slane %v835_v13, 1 }
 0x2c7   : > { %v893_v16 = vsel %vm487_vm0, %v811_v14, 0.0  ;;  %v837_v17 = vadd.f32 %v836_v15, %v835_v13  ;;  %4388 = vset.pattern.permute.xlu1 %v4621_v19 }
 0x2c8   : > { %895 = vadd.xlane.f32.xlu0 %v893_v16  ;;  %1097 = vperm.xlu1 %4388, %v4816_v0  }
 0x2c9   : > { %v907_v18 = vsel %vm487_vm0, %v837_v17, 0.0 }
 0x2ca   : > { %909 = vadd.xlane.f32.xlu2 %v907_v18 }
 0x2d0   : > { %4390 = vset.pattern.permute.xlu1 %v4623_v35 }
 0x2d1   : > { %1153 = vperm.xlu1 %4390, %v4816_v0  }
 0x2d9   : > { %4393 = vset.pattern.permute.xlu1 %v4624_v10 }
 0x2dc   : > { %967 = vperm.xlu0 %4377, %v4801_v12  }
 0x2e2   : > { %959 = vperm.xlu2 %4375, %v4830_v28  }
 0x2e4   : > { %4382 = vset.pattern.permute.xlu0 %v4621_v19 }
 0x2e5   : > { %1085 = vperm.xlu0 %4382, %v4830_v28  }
 0x2ea   : > { %4378 = vset.pattern.permute.xlu2 %v4620_v49 }
 0x2eb   : > { %983 = vperm.xlu2 %4378, %v4830_v28  }
 0x2ec   : > { %v844_v21 = vpop.xlane.xlu2 %843 }
 0x2ed   : > { %v845_v22 = vrot.slane %v844_v21, 4  ;;  %1093 = vperm.xlu0 %4382, %v4801_v12  }
 0x2ee   : > { %v858_v23 = vpop.xlane.xlu1 %857 }
 0x2ef   : > { %v846_v24 = vadd.f32 %v845_v22, %v844_v21  ;;  %v859_v25 = vrot.slane %v858_v23, 4 }
 0x2f1   : > { %v860_v26 = vadd.f32 %v859_v25, %v858_v23  ;;  %v847_v27 = vrot.slane %v846_v24, 2 }
 0x2f3   : > { %v848_v29 = vadd.f32 %v847_v27, %v846_v24  ;;  %v861_v30 = vrot.slane %v860_v26, 2  ;;  %4380 = vset.pattern.permute.xlu2 %v4619_v36 }
 0x2f4   : > { %971 = vperm.xlu2 %4380, %v4816_v0  }
 0x2f5   : > { %v849_v31 = vrot.slane %v848_v29, 1  ;;  %v862_v33 = vadd.f32 %v861_v30, %v860_v26  ;;  %4387 = vset.pattern.permute.xlu0 %v4623_v35 }
 0x2f6   : > { %1145 = vperm.xlu0 %4387, %v4836_v1  }
 0x2f7   : > { %v850_v37 = vadd.f32 %v849_v31, %v848_v29  ;;  %v863_v38 = vrot.slane %v862_v33, 1 }
 0x2f9   : > { %4204 = vpush %v850_v37  ;;  %v864_v39 = vadd.f32 %v863_v38, %v862_v33 }
 0x2fb   : > { %4206 = vpush %v864_v39 }
 0x2fc   : > { %4381 = vset.pattern.permute.xlu2 %v4620_v49 }
 0x2fd   : > { %995 = vperm.xlu2 %4381, %v4816_v0  }
 0x2fe   : > { %1149 = vperm.xlu0 %4387, %v4801_v12  }
 0x305   : > { %4384 = vset.pattern.permute.xlu2 %v4622_v20 }
 0x306   : > { %1109 = vperm.xlu2 %4384, %v4830_v28   ;;  %4392 = vset.pattern.permute.xlu0 %v4624_v10  ;;  %v4970_v14 = vpop.permute.xlu1 %963 }
 0x30e   : > { %4386 = vset.pattern.permute.xlu2 %v4623_v35 }
 0x30f   : > { %1141 = vperm.xlu2 %4386, %v4830_v28   ;;  %v4974_v16 = vpop.permute.xlu1 %987 }
 0x317   : > { %4389 = vset.pattern.permute.xlu2 %v4622_v20 }
 0x318   : > { %1121 = vperm.xlu2 %4389, %v4816_v0  }
 0x320   : > { %4391 = vset.pattern.permute.xlu2 %v4624_v10 }
 0x321   : > { %1173 = vperm.xlu2 %4391, %v4830_v28  }
 0x32a   : > { %s4205_s18 = spop %4204 }
 0x32b   : > { %s4961_s20 = smul.f32 0.00024414063, %s4205_s18 }
 0x32c   : > { %s4207_s22 = spop %4206 }
 0x32d   : > { %s868_s27 = smul.f32 %s4961_s20, %s4961_s20  ;;  %v884_v17 = vstv %s4961_s20 }
 0x32e   : > { %s867_s29 = smul.f32 0.00024414063, %s4207_s22  ;;  %v942_v18 = vsub.f32 %v4878_v57, %v884_v17  ;;  %v944_v21 = vsub.f32 %v4876_v56, %v884_v17  ;;  %v946_v28 = vsub.f32 %v4880_v58, %v884_v17  ;;  %v992_v58 = vpop.permute.xlu1 %991  ;;  %v948_v39 = vsub.f32 %v4892_v8, %v884_v17 }
 0x330   : > { %s869_s17 = ssub.f32 %s867_s29, %s868_s27 }
 0x332   : > { %s870_s30 = smax.f32 %s6706_s16, %s869_s17  ;;  %s4625_s17 = smov 1  }
 0x333   : > { %s871_s21 = sadd.f32 1e-08, %s870_s30 }
 0x335   : > { %v872_v40 = vstv %s871_s21  ;;  %s6694_s21 = smov 127  }
 0x336   : > { %4477 = vrsqrt.f32 %v872_v40  ;;  %vm879_vm3 = vweird.f32 %v872_v40 }
 0x33b   : > { %v896_v46 = vpop.xlane.xlu0 %895 }
 0x33c   : > { %v4478_v47 = vpop.eup %4477  ;;  %v897_v48 = vrot.slane %v896_v46, 4 }
 0x33d   : > { %v874_v51 = vmul.f32 %v4478_v47, %v872_v40  ;;  %v910_v52 = vpop.xlane.xlu2 %909  ;;  %vm880_vm2 = vweird.f32 %v4478_v47 }
 0x33e   : > { %v898_v53 = vadd.f32 %v897_v48, %v896_v46  ;;  %v911_v54 = vrot.slane %v910_v52, 4  ;;  %vm881_vm4 = vmor %vm879_vm3, %vm880_vm2 }
 0x33f   : > { %v875_v55 = vmul.f32 %v4478_v47, %v874_v51 }
 0x340   : > { %v912_v59 = vadd.f32 %v911_v54, %v910_v52  ;;  %v899_v61 = vrot.slane %v898_v53, 2 }
 0x341   : > { %v876_v62 = vmul.f32 0.5, %v875_v55 }
 0x342   : > { %v900_v63 = vadd.f32 %v899_v61, %v898_v53  ;;  %v913_v2 = vrot.slane %v912_v59, 2 }
 0x343   : > { %v877_v3 = vsub.f32 1.5, %v876_v62 }
 0x344   : > { %v901_v4 = vrot.slane %v900_v63, 1  ;;  %v914_v5 = vadd.f32 %v913_v2, %v912_v59 }
 0x345   : > { %v878_v7 = vmul.f32 %v4478_v47, %v877_v3  ;;  %v4972_v15 = vpop.permute.xlu2 %959 }
 0x346   : > { %v902_v9 = vadd.f32 %v901_v4, %v900_v63  ;;  %v915_v50 = vrot.slane %v914_v5, 1 }
 0x347   : > { %v882_v11 = vsel %vm881_vm4, %v4478_v47, %v878_v7 }
 0x348   : > { %4208 = vpush %v882_v11  ;;  %v916_v13 = vadd.f32 %v915_v50, %v914_v5 }
 0x349   : > { %4210 = vpush %v902_v9 }
 0x34a   : > { %4212 = vpush %v916_v13 }
 0x34d   : > { %v4980_v22 = vpop.permute.xlu2 %983 }
 0x34e   : > { %v4982_v24 = vpop.permute.xlu0 %967 }
 0x355   : > { %v972_v37 = vpop.permute.xlu2 %971 }
 0x35d   : > { %v996_v51 = vpop.permute.xlu2 %995 }
 0x379   : > { %s4209_s0 = spop %4208 }
 0x37a   : > { %v887_v23 = vstv %s4209_s0  ;;  %s4211_s2 = spop %4210 }
 0x37b   : > { %v950_v25 = vmul.f32 %v942_v18, %v887_v23  ;;  %v952_v26 = vmul.f32 %v944_v21, %v887_v23  ;;  %v954_v27 = vmul.f32 %v946_v28, %v887_v23  ;;  %s4984_s19 = smul.f32 0.00024414063, %s4211_s2  ;;  %s4213_s18 = spop %4212  ;;  %v956_v40 = vmul.f32 %v948_v39, %v887_v23 }
 0x37c   : > { %s919_s20 = smul.f32 0.00024414063, %s4213_s18  ;;  %s5110_s2 = sld [smem:[#allocation6]] }
 0x37d   : > { %s920_s22 = smul.f32 %s4984_s19, %s4984_s19  ;;  %v978_v56 = vmul.f32 %v4982_v24, %v954_v27  ;;  %v976_v57 = vmul.f32 %v4970_v14, %v952_v26  ;;  %v974_v29 = vmul.f32 %v4972_v15, %v950_v25  ;;  %v980_v47 = vmul.f32 %v972_v37, %v956_v40 }
 0x37e   : > { %v936_v61 = vstv %s4984_s19  ;;  %v443_v40 = vlaneseq }
 0x37f   : > { %s921_s27 = ssub.f32 %s919_s20, %s920_s22  ;;  %v4991_v30 = vadd.f32 %v992_v58, %v978_v56  ;;  %v4994_v31 = vadd.f32 %v4974_v16, %v976_v57  ;;  %v4997_v33 = vadd.f32 %v4980_v22, %v974_v29  ;;  %v5013_v53 = vadd.f32 %v996_v51, %v980_v47 }
 0x380   : > { %v943_v62 = vsub.f32 %v4908_v44, %v936_v61  ;;  %v945_v63 = vsub.f32 %v4906_v43, %v936_v61  ;;  %v949_v2 = vsub.f32 %v4924_v60, %v936_v61  ;;  %v947_v9 = vsub.f32 %v4910_v45, %v936_v61 }
 0x381   : > { %s922_s29 = smax.f32 %s6706_s16, %s921_s27  ;;  %1014 = vrot.lane.b32.xlu0 %v4991_v30, %s4625_s17  ;;  %1012 = vrot.lane.b32.xlu2 %v4994_v31, %s4625_s17 }
 0x382   : > { %s923_s30 = sadd.f32 1e-08, %s922_s29  ;;  %1010 = vrot.lane.b32.xlu1 %v4997_v33, %s4625_s17 }
 0x384   : > { %v924_v38 = vstv %s923_s30 }
 0x385   : > { %4479 = vrsqrt.f32 %v924_v38  ;;  %vm931_vm6 = vweird.f32 %v924_v38 }
 0x389   : > { %1049 = vrot.lane.b32.xlu0 %v4994_v31, %s6694_s21  ;;  %1047 = vrot.lane.b32.xlu2 %v4997_v33, %s6694_s21 }
 0x38a   : > { %1051 = vrot.lane.b32.xlu1 %v4991_v30, %s6694_s21 }
 0x38b   : > { %v4480_v46 = vpop.eup %4479 }
 0x38c   : > { %v926_v48 = vmul.f32 %v4480_v46, %v924_v38  ;;  %vm932_vm5 = vweird.f32 %v4480_v46 }
 0x38d   : > { %vm933_vm7 = vmor %vm931_vm6, %vm932_vm5 }
 0x38e   : > { %v927_v52 = vmul.f32 %v4480_v46, %v926_v48 }
 0x390   : > { %v928_v8 = vmul.f32 0.5, %v927_v52 }
 0x391   : > { %1016 = vrot.lane.b32.xlu2 %v5013_v53, %s4625_s17 }
 0x392   : > { %1053 = vrot.lane.b32.xlu1 %v5013_v53, %s6694_s21  ;;  %v929_v54 = vsub.f32 1.5, %v928_v8 }
 0x394   : > { %v930_v55 = vmul.f32 %v4480_v46, %v929_v54 }
 0x396   : > { %v934_v59 = vsel %vm933_vm7, %v4480_v46, %v930_v55  ;;  %v5077_v46 = vand.u32 127, %v443_v40 }
 0x397   : > { %4214 = vpush %v934_v59 }
 0x398   : > { %vm1026_vm9 = vcmp.lt.s32.totalorder %v5077_v46, 1  ;;  %vm1006_vm10 = vcmp.ge.s32.totalorder %v5077_v46, 1  ;;  %vm1008_vm11 = vcmp.lt.s32.totalorder %v5077_v46, 127 }
 0x3c8   : > { %s4215_s0 = spop %4214 }
 0x3c9   : > { %v939_v3 = vstv %s4215_s0 }
 0x3ca   : > { %v951_v4 = vmul.f32 %v943_v62, %v939_v3  ;;  %v953_v5 = vmul.f32 %v945_v63, %v939_v3  ;;  %v957_v7 = vmul.f32 %v949_v2, %v939_v3  ;;  %v955_v17 = vmul.f32 %v947_v9, %v939_v3 }
 0x3cc   : > { %v981_v50 = vmul.f32 %v972_v37, %v957_v7  ;;  %v975_v11 = vmul.f32 %v4972_v15, %v951_v4  ;;  %v977_v13 = vmul.f32 %v4970_v14, %v953_v5  ;;  %v979_v45 = vmul.f32 %v4982_v24, %v955_v17  ;;  %v5054_v14 = vpop.permute.xlu2 %1109  ;;  %v1090_v15 = vpop.permute.xlu1 %1089 }
 0x3ce   : > { %v5026_v18 = vadd.f32 %v996_v51, %v981_v50  ;;  %v5029_v44 = vadd.f32 %v4980_v22, %v975_v11  ;;  %v5032_v43 = vadd.f32 %v4974_v16, %v977_v13  ;;  %v5041_v60 = vadd.f32 %v992_v58, %v979_v45  ;;  %v5065_v22 = vpop.permute.xlu0 %1085 }
 0x3d0   : > { %1024 = vrot.lane.b32.xlu0 %v5026_v18, %s4625_s17  ;;  %1018 = vrot.lane.b32.xlu1 %v5029_v44, %s4625_s17 }
 0x3d1   : > { %1020 = vrot.lane.b32.xlu2 %v5032_v43, %s4625_s17 }
 0x3d4   : > { %v1114_v21 = vpop.permute.xlu1 %1113 }
 0x3d5   : > { %v1126_v17 = vmul.f32 %v1114_v21, %v4994_v31  ;;  %v1127_v45 = vmul.f32 %v1114_v21, %v5032_v43  ;;  %v1125_v21 = vmul.f32 %v5054_v14, %v5029_v44 }
 0x3d6   : > { %v5069_v24 = vpop.permute.xlu0 %1093 }
 0x3d8   : > { %1177 = vperm.xlu0 %4392, %v4836_v1   ;;  %1022 = vrot.lane.b32.xlu1 %v5041_v60, %s4625_s17  ;;  %v5060_v1 = vpop.permute.xlu2 %1141 }
 0x3d9   : > { %1057 = vrot.lane.b32.xlu2 %v5032_v43, %s6694_s21 }
 0x3e0   : > { %1055 = vrot.lane.b32.xlu1 %v5029_v44, %s6694_s21  ;;  %4395 = vset.pattern.permute.xlu0 %v4618_v6  ;;  %v1122_v16 = vpop.permute.xlu2 %1121 }
 0x3e1   : > { %1059 = vrot.lane.b32.xlu2 %v5041_v60, %s6694_s21 }
 0x3e8   : > { %1181 = vperm.xlu1 %4393, %v4801_v12   ;;  %v5063_v28 = vpop.permute.xlu2 %1173  ;;  %v5067_v12 = vpop.permute.xlu1 %1117 }
 0x3e9   : > { %1061 = vrot.lane.b32.xlu2 %v5026_v18, %s6694_s21 }
 0x3f0   : > { %4396 = vset.pattern.permute.xlu1 %v4618_v6  ;;  %v1013_v23 = vpop.permute.xlu2 %1012  ;;  %v1098_v25 = vpop.permute.xlu1 %1097 }
 0x3f1   : > { %1185 = vperm.xlu2 %4391, %v4816_v0   ;;  %v1146_v0 = vpop.permute.xlu0 %1145 }
 0x3f8   : > { %v5071_v26 = vpop.permute.xlu2 %1047  ;;  %v5073_v27 = vpop.permute.xlu1 %1153 }
 0x3f9   : > { %4394 = vset.pattern.permute.xlu2 %v4618_v6  ;;  %v5075_v57 = vpop.permute.xlu0 %1149 }
 0x400   : > { %v1017_v56 = vpop.permute.xlu2 %1016  ;;  %v1011_v58 = vpop.permute.xlu1 %1010 }
 0x401   : > { %v1015_v37 = vpop.permute.xlu0 %1014 }
 0x408   : > { %v1052_v38 = vpop.permute.xlu1 %1051 }
 0x409   : > { %v1050_v47 = vpop.permute.xlu0 %1049 }
 0x410   : > { %v1054_v48 = vpop.permute.xlu1 %1053 }
 0x42b   : > { %v1021_v29 = vpop.permute.xlu2 %1020 }
 0x42c   : > { %v1028_v52 = vsel %vm1026_vm9, %v1013_v23, %v1021_v29  ;;  %v1032_v8 = vsel %vm1026_vm9, %v1021_v29, %v1013_v23  ;;  %v1130_v29 = vmul.f32 %v1122_v16, %v5013_v53 }
 0x42d   : > { %v1041_v54 = vsel %vm1006_vm10, %v1032_v8, 0.0  ;;  %v1042_v55 = vsel %vm1006_vm10, %v1028_v52, 0.0 }
 0x42e   : > { %v1102_v4 = vmul.f32 %v1090_v15, %v1041_v54  ;;  %v1103_v5 = vmul.f32 %v1090_v15, %v1042_v55  ;;  %v1128_v15 = vmul.f32 %v5067_v12, %v4991_v30 }
 0x430   : > { %v1134_v40 = vadd.f32 %v1126_v17, %v1102_v4 }
 0x433   : > { %v1058_v39 = vpop.permute.xlu2 %1057 }
 0x434   : > { %v1065_v59 = vsel %vm1008_vm11, %v1050_v47, %v1058_v39  ;;  %v1069_v61 = vsel %vm1008_vm11, %v1058_v39, %v1050_v47  ;;  %v1124_v39 = vmul.f32 %v5054_v14, %v4997_v33  ;;  %v1135_v47 = vadd.f32 %v1127_v45, %v1103_v5 }
 0x435   : > { %v1078_v7 = vsel %vm1008_vm11, %v1065_v59, 0.0  ;;  %v1079_v9 = vsel %vm1008_vm11, %v1069_v61, 0.0 }
 0x436   : > { %v1158_v23 = vmul.f32 %v1146_v0, %v1078_v7  ;;  %v1205_v7 = vstv %s5110_s2 }
 0x43b   : > { %v1060_v51 = vpop.permute.xlu2 %1059 }
 0x43c   : > { %v1066_v44 = vsel %vm1008_vm11, %v1052_v38, %v1060_v51 }
 0x442   : > { %v1025_v62 = vpop.permute.xlu0 %1024  ;;  %v1019_v63 = vpop.permute.xlu1 %1018 }
 0x443   : > { %v1030_v2 = vsel %vm1026_vm9, %v1017_v56, %v1025_v62  ;;  %v1034_v3 = vsel %vm1026_vm9, %v1025_v62, %v1017_v56  ;;  %v1062_v13 = vpop.permute.xlu2 %1061  ;;  %v1159_v56 = vmul.f32 %v1146_v0, %v1079_v9  ;;  %v1131_v0 = vmul.f32 %v1122_v16, %v5026_v18 }
 0x444   : > { %v1045_v50 = vsel %vm1006_vm10, %v1034_v3, 0.0  ;;  %v1046_v11 = vsel %vm1006_vm10, %v1030_v2, 0.0  ;;  %v1067_v31 = vsel %vm1008_vm11, %v1054_v48, %v1062_v13  ;;  %v1071_v43 = vsel %vm1008_vm11, %v1062_v13, %v1054_v48 }
 0x445   : > { %v1106_v52 = vmul.f32 %v1098_v25, %v1045_v50  ;;  %v1107_v8 = vmul.f32 %v1098_v25, %v1046_v11  ;;  %v1027_v53 = vsel %vm1026_vm9, %v1011_v58, %v1019_v63  ;;  %v1031_v33 = vsel %vm1026_vm9, %v1019_v63, %v1011_v58 }
 0x446   : > { %v1166_v25 = vadd.f32 %v1158_v23, %v1134_v40  ;;  %v1167_v55 = vadd.f32 %v1159_v56, %v1135_v47  ;;  %v1070_v18 = vsel %vm1008_vm11, %v1060_v51, %v1052_v38  ;;  %v1082_v14 = vsel %vm1008_vm11, %v1067_v31, 0.0 }
 0x447   : > { %v1083_v16 = vsel %vm1008_vm11, %v1071_v43, 0.0  ;;  %v1138_v58 = vadd.f32 %v1130_v29, %v1106_v52  ;;  %v1139_v61 = vadd.f32 %v1131_v0, %v1107_v8  ;;  %v1039_v62 = vsel %vm1006_vm10, %v1031_v33, 0.0 }
 0x448   : > { %v1129_v51 = vmul.f32 %v5067_v12, %v5041_v60  ;;  %v1162_v4 = vmul.f32 %v5073_v27, %v1082_v14  ;;  %v1163_v5 = vmul.f32 %v5073_v27, %v1083_v16  ;;  %v1080_v9 = vsel %vm1008_vm11, %v1066_v44, 0.0 }
 0x449   : > { %v1081_v50 = vsel %vm1008_vm11, %v1070_v18, 0.0  ;;  %v1100_v11 = vmul.f32 %v5065_v22, %v1039_v62 }
 0x44a   : > { %v1023_v30 = vpop.permute.xlu1 %1022  ;;  %v1178_v54 = vpop.permute.xlu0 %1177  ;;  %v1170_v60 = vadd.f32 %v1162_v4, %v1138_v58  ;;  %v1171_v12 = vadd.f32 %v1163_v5, %v1139_v61 }
 0x44b   : > { %v1029_v59 = vsel %vm1026_vm9, %v1015_v37, %v1023_v30  ;;  %v1033_v48 = vsel %vm1026_vm9, %v1023_v30, %v1015_v37  ;;  %v1040_v37 = vsel %vm1006_vm10, %v1027_v53, 0.0  ;;  %v1190_v63 = vadd.f32 %v1178_v54, %v1166_v25  ;;  %v1186_v8 = vpop.permute.xlu2 %1185 }
 0x44c   : > { %v1191_v2 = vadd.f32 %v1178_v54, %v1167_v55  ;;  %v1043_v3 = vsel %vm1006_vm10, %v1033_v48, 0.0  ;;  %v1044_v38 = vsel %vm1006_vm10, %v1029_v59, 0.0  ;;  %v1101_v13 = vmul.f32 %v5065_v22, %v1040_v37 }
 0x44d   : > { %v1104_v17 = vmul.f32 %v5069_v24, %v1043_v3  ;;  %v1105_v45 = vmul.f32 %v5069_v24, %v1044_v38  ;;  %v1208_v56 = vmul.f32 %v1205_v7, %v1190_v63  ;;  %vm1199_vm12 = vcmp.gt.f32.partialorder %v1190_v63, 0.0 }
 0x44e   : > { %v1209_v27 = vmul.f32 %v1205_v7, %v1191_v2  ;;  %vm1200_vm13 = vcmp.gt.f32.partialorder %v1191_v2, 0.0  ;;  %v1132_v47 = vadd.f32 %v1124_v39, %v1100_v11  ;;  %v1133_v52 = vadd.f32 %v1125_v21, %v1101_v13 }
 0x44f   : > { %v1136_v30 = vadd.f32 %v1128_v15, %v1104_v17  ;;  %v1137_v0 = vadd.f32 %v1129_v51, %v1105_v45  ;;  %v5171_v53 = vsel %vm1199_vm12, %v1190_v63, %v1208_v56  ;;  %v1160_v25 = vmul.f32 %v5075_v57, %v1080_v9 }
 0x450   : > { %v1161_v55 = vmul.f32 %v5075_v57, %v1081_v50  ;;  %v1194_v59 = vadd.f32 %v1186_v8, %v1170_v60  ;;  %v1195_v39 = vadd.f32 %v1186_v8, %v1171_v12  ;;  %vm1410_vm12 = vcmask 261120  }
 0x451   : > { %v1168_v18 = vadd.f32 %v1160_v25, %v1136_v30 }
 0x452   : > { %v1056_v23 = vpop.permute.xlu1 %1055  ;;  %v1169_v14 = vadd.f32 %v1161_v55, %v1137_v0  ;;  %v1212_v57 = vmul.f32 %v1205_v7, %v1194_v59  ;;  %v1213_v61 = vmul.f32 %v1205_v7, %v1195_v39  ;;  %vm1203_vm1 = vcmp.gt.f32.partialorder %v1194_v59, 0.0 }
 0x453   : > { %v1064_v29 = vsel %vm1008_vm11, %v5071_v26, %v1056_v23  ;;  %v1068_v40 = vsel %vm1008_vm11, %v1056_v23, %v5071_v26  ;;  %v5173_v26 = vsel %vm1200_vm13, %v1191_v2, %v1209_v27  ;;  %vm1204_vm2 = vcmp.gt.f32.partialorder %v1195_v39, 0.0 }
 0x454   : > { %v1076_v22 = vsel %vm1008_vm11, %v1064_v29, 0.0  ;;  %v1077_v24 = vsel %vm1008_vm11, %v1068_v40, 0.0  ;;  %v1243_v15 = vmul.f32 %v5173_v26, %v5173_v26  ;;  %v5195_v9 = vsel %vm1203_vm1, %v1194_v59, %v1212_v57 }
 0x455   : > { %v1156_v31 = vmul.f32 %v5060_v1, %v1076_v22  ;;  %v1157_v43 = vmul.f32 %v5060_v1, %v1077_v24  ;;  %v1242_v1 = vmul.f32 %v5171_v53, %v5171_v53  ;;  %v5197_v50 = vsel %vm1204_vm2, %v1195_v39, %v1213_v61 }
 0x456   : > { %v1246_v29 = vmul.f32 %v5195_v9, %v5195_v9  ;;  %v1247_v40 = vmul.f32 %v5197_v50, %v5197_v50 }
 0x457   : > { %v1164_v33 = vadd.f32 %v1156_v31, %v1132_v47  ;;  %v1165_v54 = vadd.f32 %v1157_v43, %v1133_v52 }
 0x459   : > { %v1188_v21 = vadd.f32 %v5063_v28, %v1164_v33  ;;  %v1189_v48 = vadd.f32 %v5063_v28, %v1165_v54 }
 0x45a   : > { %v1182_v44 = vpop.permute.xlu1 %1181 }
 0x45b   : > { %vm1197_vm14 = vcmp.gt.f32.partialorder %v1188_v21, 0.0  ;;  %vm1198_vm15 = vcmp.gt.f32.partialorder %v1189_v48, 0.0  ;;  %v1206_v16 = vmul.f32 %v1205_v7, %v1188_v21  ;;  %v1207_v58 = vmul.f32 %v1205_v7, %v1189_v48 }
 0x45c   : > { %v1192_v62 = vadd.f32 %v1182_v44, %v1168_v18  ;;  %v1193_v37 = vadd.f32 %v1182_v44, %v1169_v14 }
 0x45d   : > { %v5183_v28 = vsel %vm1197_vm14, %v1188_v21, %v1206_v16  ;;  %v5185_v63 = vsel %vm1198_vm15, %v1189_v48, %v1207_v58 }
 0x45e   : > { %vm1201_vm3 = vcmp.gt.f32.partialorder %v1192_v62, 0.0  ;;  %vm1202_vm4 = vcmp.gt.f32.partialorder %v1193_v37, 0.0  ;;  %v1210_v2 = vmul.f32 %v1205_v7, %v1192_v62  ;;  %v1211_v3 = vmul.f32 %v1205_v7, %v1193_v37 }
 0x45f   : > { %v1222_v38 = vadd.f32 %v5171_v53, %v5183_v28  ;;  %v1231_v51 = vadd.f32 %v5173_v26, %v5185_v63  ;;  %v1240_v4 = vmul.f32 %v5183_v28, %v5183_v28  ;;  %v1241_v5 = vmul.f32 %v5185_v63, %v5185_v63 }
 0x460   : > { %v5199_v11 = vsel %vm1201_vm3, %v1192_v62, %v1210_v2  ;;  %v5201_v13 = vsel %vm1202_vm4, %v1193_v37, %v1211_v3 }
 0x461   : > { %v1223_v7 = vadd.f32 %v1222_v38, %v5199_v11  ;;  %v1232_v17 = vadd.f32 %v1231_v51, %v5201_v13  ;;  %v1244_v45 = vmul.f32 %v5199_v11, %v5199_v11  ;;  %v1245_v60 = vmul.f32 %v5201_v13, %v5201_v13 }
 0x462   : > { %v1248_v12 = vadd.f32 %v1242_v1, %v1240_v4  ;;  %v1257_v23 = vadd.f32 %v1243_v15, %v1241_v5 }
 0x463   : > { %v1233_v56 = vadd.f32 %v1232_v17, %v5197_v50  ;;  %v1224_v27 = vadd.f32 %v1223_v7, %v5195_v9 }
 0x464   : > { %v1249_v22 = vadd.f32 %v1248_v12, %v1244_v45  ;;  %v1258_v24 = vadd.f32 %v1257_v23, %v1245_v60 }
 0x465   : > { %v1234_v47 = vrot.slane %v1233_v56, 4  ;;  %v1225_v52 = vrot.slane %v1224_v27, 4 }
 0x466   : > { %v1250_v8 = vadd.f32 %v1249_v22, %v1246_v29  ;;  %v1259_v31 = vadd.f32 %v1258_v24, %v1247_v40 }
 0x467   : > { %v1235_v43 = vadd.f32 %v1234_v47, %v1233_v56  ;;  %v1226_v30 = vadd.f32 %v1225_v52, %v1224_v27 }
 0x468   : > { %v1251_v0 = vrot.slane %v1250_v8, 4  ;;  %v1260_v33 = vrot.slane %v1259_v31, 4 }
 0x469   : > { %v1236_v54 = vrot.slane %v1235_v43, 2  ;;  %v1227_v25 = vrot.slane %v1226_v30, 2 }
 0x46a   : > { %v1252_v55 = vadd.f32 %v1251_v0, %v1250_v8  ;;  %v1261_v59 = vadd.f32 %v1260_v33, %v1259_v31 }
 0x46b   : > { %v1237_v39 = vadd.f32 %v1236_v54, %v1235_v43  ;;  %v1228_v21 = vadd.f32 %v1227_v25, %v1226_v30 }
 0x46c   : > { %v1253_v48 = vrot.slane %v1252_v55, 2  ;;  %v1262_v1 = vrot.slane %v1261_v59, 2 }
 0x46d   : > { %v1238_v15 = vrot.slane %v1237_v39, 1  ;;  %v1229_v44 = vrot.slane %v1228_v21, 1 }
 0x46e   : > { %v1254_v18 = vadd.f32 %v1253_v48, %v1252_v55  ;;  %v1263_v14 = vadd.f32 %v1262_v1, %v1261_v59 }
 0x46f   : > { %v1239_v16 = vadd.f32 %v1238_v15, %v1237_v39  ;;  %v1230_v58 = vadd.f32 %v1229_v44, %v1228_v21 }
 0x470   : > { %v1255_v57 = vrot.slane %v1254_v18, 1  ;;  %v1264_v37 = vrot.slane %v1263_v14, 1 }
 0x471   : > { %v1321_v61 = vsel %vm487_vm0, %v1239_v16, 0.0  ;;  %v1268_v62 = vsel %vm487_vm0, %v1230_v58, 0.0 }
 0x472   : > { %1323 = vadd.xlane.f32.xlu0 %v1321_v61  ;;  %1271 = vadd.xlane.f32.xlu1 %v1268_v62  ;;  %v1256_v2 = vadd.f32 %v1255_v57, %v1254_v18  ;;  %v1265_v38 = vadd.f32 %v1264_v37, %v1263_v14  ;;  %v665_v57 = vld [vmem:[%s6685_s6] sm:$0xff]  ;;  %v666_v62 = vld [vmem:[%s6685_s6 + $0x8] sm:$0xff] }
 0x474   : > { %v1282_v3 = vsel %vm487_vm0, %v1256_v2, 0.0  ;;  %v1335_v51 = vsel %vm487_vm0, %v1265_v38, 0.0 }
 0x475   : > { %1285 = vadd.xlane.f32.xlu2 %v1282_v3 }
 0x47a   : > { %1337 = vadd.xlane.f32.xlu1 %v1335_v51 }
 0x486   : > { %1392 = vperm.xlu0 %4395, %v665_v57  }
 0x48d   : > { %1397 = vperm.xlu2 %4394, %v666_v62  }
 0x48e   : > { %4398 = vset.pattern.permute.xlu0 %v4619_v36 }
 0x4e5   : > { %v1272_v4 = vpop.xlane.xlu1 %1271  ;;  %v1324_v47 = vpop.xlane.xlu0 %1323 }
 0x4e6   : > { %v1273_v5 = vrot.slane %v1272_v4, 4  ;;  %v1325_v8 = vrot.slane %v1324_v47, 4 }
 0x4e8   : > { %v1274_v7 = vadd.f32 %v1273_v5, %v1272_v4  ;;  %v1286_v17 = vpop.xlane.xlu2 %1285  ;;  %v1326_v30 = vadd.f32 %v1325_v8, %v1324_v47 }
 0x4e9   : > { %v1287_v45 = vrot.slane %v1286_v17, 4 }
 0x4ea   : > { %v1275_v60 = vrot.slane %v1274_v7, 2  ;;  %v1327_v33 = vrot.slane %v1326_v30, 2 }
 0x4eb   : > { %v1288_v12 = vadd.f32 %v1287_v45, %v1286_v17  ;;  %v1387_v45 = vld [vmem:[%s6684_s5 + $0x8] sm:$0xff] }
 0x4ec   : > { %v1276_v23 = vadd.f32 %v1275_v60, %v1274_v7  ;;  %v1328_v39 = vadd.f32 %v1327_v33, %v1326_v30 }
 0x4ed   : > { %v1289_v56 = vrot.slane %v1288_v12, 2  ;;  %v1338_v52 = vpop.xlane.xlu1 %1337 }
 0x4ee   : > { %v1277_v27 = vrot.slane %v1276_v23, 1  ;;  %v1339_v31 = vrot.slane %v1338_v52, 4  ;;  %v1329_v15 = vrot.slane %v1328_v39, 1 }
 0x4ef   : > { %v1290_v29 = vadd.f32 %v1289_v56, %v1288_v12 }
 0x4f0   : > { %v1278_v40 = vadd.f32 %v1277_v27, %v1276_v23  ;;  %v1340_v0 = vadd.f32 %v1339_v31, %v1338_v52  ;;  %v1330_v16 = vadd.f32 %v1329_v15, %v1328_v39 }
 0x4f1   : > { %v1291_v22 = vrot.slane %v1290_v29, 1 }
 0x4f2   : > { %4216 = vpush %v1278_v40  ;;  %v1341_v25 = vrot.slane %v1340_v0, 2 }
 0x4f3   : > { %v1292_v24 = vadd.f32 %v1291_v22, %v1290_v29 }
 0x4f4   : > { %v1342_v21 = vadd.f32 %v1341_v25, %v1340_v0 }
 0x4f5   : > { %4218 = vpush %v1292_v24 }
 0x4f6   : > { %v1343_v44 = vrot.slane %v1342_v21, 1 }
 0x4f8   : > { %v1344_v58 = vadd.f32 %v1343_v44, %v1342_v21 }
 0x523   : > { %s4217_s19 = spop %4216 }
 0x524   : > { %s5219_s18 = smul.f32 0.00024414063, %s4217_s19 }
 0x526   : > { %s1296_s20 = smul.f32 %s5219_s18, %s5219_s18  ;;  %s4219_s22 = spop %4218  ;;  %v1312_v61 = vstv %s5219_s18 }
 0x527   : > { %s1295_s27 = smul.f32 0.00024414063, %s4219_s22  ;;  %v1376_v37 = vsub.f32 %v5195_v9, %v1312_v61  ;;  %v1374_v38 = vsub.f32 %v5199_v11, %v1312_v61  ;;  %v1372_v4 = vsub.f32 %v5171_v53, %v1312_v61  ;;  %v5242_v9 = vld [vmem:[%s6683_s4 + $0x28] sm:$0xff]  ;;  %v1370_v7 = vsub.f32 %v5183_v28, %v1312_v61  ;;  %v1386_v53 = vld [vmem:[%s6684_s5] sm:$0xff]  ;;  %v5254_v28 = vld [vmem:[%s6683_s4 + $0x38] sm:$0xff] }
 0x528   : > { %1502 = vperm.xlu2 %4394, %v5242_v9  }
 0x529   : > { %s1297_s29 = ssub.f32 %s1295_s27, %s1296_s20 }
 0x52b   : > { %s1298_s30 = smax.f32 %s6706_s16, %s1297_s29 }
 0x52c   : > { %s1299_s0 = sadd.f32 1e-08, %s1298_s30 }
 0x52e   : > { %v1300_v43 = vstv %s1299_s0 }
 0x52f   : > { %4481 = vrsqrt.f32 %v1300_v43  ;;  %vm1307_vm6 = vweird.f32 %v1300_v43 }
 0x530   : > { %1512 = vperm.xlu2 %4394, %v5254_v28  }
 0x535   : > { %v4482_v54 = vpop.eup %4481 }
 0x536   : > { %v1302_v55 = vmul.f32 %v4482_v54, %v1300_v43  ;;  %vm1308_vm5 = vweird.f32 %v4482_v54 }
 0x537   : > { %vm1309_vm7 = vmor %vm1307_vm6, %vm1308_vm5 }
 0x538   : > { %v1303_v59 = vmul.f32 %v4482_v54, %v1302_v55  ;;  %4397 = vset.pattern.permute.xlu2 %v4619_v36 }
 0x53a   : > { %v1304_v48 = vmul.f32 0.5, %v1303_v59 }
 0x53c   : > { %v1305_v1 = vsub.f32 1.5, %v1304_v48  ;;  %v4098_v48 = vld [vmem:[%s6682_s3 + $0x20] sm:$0xff] }
 0x53e   : > { %v1306_v18 = vmul.f32 %v4482_v54, %v1305_v1  ;;  %v4101_v1 = vld [vmem:[%s6682_s3 + $0x38] sm:$0xff] }
 0x540   : > { %v1310_v14 = vsel %vm1309_vm7, %v4482_v54, %v1306_v18  ;;  %v1398_v54 = vpop.permute.xlu2 %1397 }
 0x541   : > { %4220 = vpush %v1310_v14 }
 0x542   : > { %4222 = vpush %v1330_v16 }
 0x543   : > { %4224 = vpush %v1344_v58 }
 0x572   : > { %s4221_s27 = spop %4220 }
 0x573   : > { %v1315_v2 = vstv %s4221_s27  ;;  %s4223_s29 = spop %4222 }
 0x574   : > { %s5233_s30 = smul.f32 0.00024414063, %s4223_s29  ;;  %s4225_s0 = spop %4224  ;;  %v1384_v3 = vmul.f32 %v1376_v37, %v1315_v2  ;;  %v1382_v51 = vmul.f32 %v1374_v38, %v1315_v2  ;;  %v1380_v5 = vmul.f32 %v1372_v4, %v1315_v2  ;;  %v1378_v11 = vmul.f32 %v1370_v7, %v1315_v2 }
 0x575   : > { %s1347_s2 = smul.f32 0.00024414063, %s4225_s0 }
 0x576   : > { %s1348_s18 = smul.f32 %s5233_s30, %s5233_s30  ;;  %1435 = vmatpush.msrb.mxu0 %v1384_v3  ;;  %v1364_v22 = vstv %s5233_s30 }
 0x577   : > { %v1377_v24 = vsub.f32 %v5197_v50, %v1364_v22  ;;  %v1375_v8 = vsub.f32 %v5201_v13, %v1364_v22  ;;  %v1373_v43 = vsub.f32 %v5173_v26, %v1364_v22  ;;  %v1371_v0 = vsub.f32 %v5185_v63, %v1364_v22  ;;  %v5272_v13 = vld [vmem:[%s6683_s4 + $0x20] sm:$0xff]  ;;  %v1393_v26 = vpop.permute.xlu0 %1392  ;;  %v5278_v63 = vld [vmem:[%s6683_s4 + $0x30] sm:$0xff] }
 0x578   : > { %s1349_s22 = ssub.f32 %s1347_s2, %s1348_s18  ;;  %1436 = vmatpush.msrb.mxu0 %v1382_v51  ;;  %1497 = vperm.xlu1 %4396, %v5272_v13  }
 0x57a   : > { %s1350_s27 = smax.f32 %s6706_s16, %s1349_s22  ;;  %1437 = vmatpush.msrb.mxu0 %v1380_v5 }
 0x57b   : > { %s1351_s21 = sadd.f32 1e-08, %s1350_s27 }
 0x57c   : > { %1438 = vmatpush.msrb.mxu0 %v1378_v11  ;;  %s4110_s27 = sld [smem:[#allocation3 + $0x1]] }
 0x57d   : > { %v1352_v17 = vstv %s1351_s21  ;;  %4086 = vmatmul.msk.f32.vlgmr.msrb.gmra.mxu0 %vm1410_vm12, %v1386_v53 }
 0x57e   : > { %4483 = vrsqrt.f32 %v1352_v17  ;;  %vm1359_vm14 = vweird.f32 %v1352_v17 }
 0x580   : > { %1507 = vperm.xlu1 %4396, %v5278_v63  }
 0x582   : > { %v1503_v62 = vpop.permute.xlu2 %1502  ;;  %v5318_v3 = vstv %s4110_s27 }
 0x584   : > { %v4484_v60 = vpop.eup %4483 }
 0x585   : > { %v1354_v12 = vmul.f32 %v4484_v60, %v1352_v17  ;;  %4087 = vmatmul.msk.f32.gmra.mxu0 %vm1410_vm12, %v1387_v45  ;;  %vm1360_vm13 = vweird.f32 %v4484_v60 }
 0x586   : > { %vm1361_vm15 = vmor %vm1359_vm14, %vm1360_vm13 }
 0x587   : > { %v1355_v23 = vmul.f32 %v4484_v60, %v1354_v12 }
 0x588   : > { %4399 = vset.pattern.permute.xlu1 %v4619_v36 }
 0x589   : > { %v1356_v56 = vmul.f32 0.5, %v1355_v23 }
 0x58b   : > { %v1357_v27 = vsub.f32 1.5, %v1356_v56 }
 0x58d   : > { %v1358_v29 = vmul.f32 %v4484_v60, %v1357_v27 }
 0x58f   : > { %v1362_v40 = vsel %vm1361_vm15, %v4484_v60, %v1358_v29 }
 0x590   : > { %4226 = vpush %v1362_v40 }
 0x5c1   : > { %s4227_s21 = spop %4226 }
 0x5c2   : > { %v1367_v47 = vstv %s4227_s21 }
 0x5c3   : > { %v1385_v52 = vmul.f32 %v1377_v24, %v1367_v47  ;;  %v1383_v31 = vmul.f32 %v1375_v8, %v1367_v47  ;;  %v1381_v30 = vmul.f32 %v1373_v43, %v1367_v47  ;;  %v1379_v33 = vmul.f32 %v1371_v0, %v1367_v47 }
 0x5c5   : > { %1464 = vmatpush.msrb.mxu1 %v1385_v52 }
 0x5c7   : > { %1465 = vmatpush.msrb.mxu1 %v1383_v31 }
 0x5c9   : > { %1466 = vmatpush.msrb.mxu1 %v1381_v30 }
 0x5cb   : > { %1467 = vmatpush.msrb.mxu1 %v1379_v33 }
 0x5cc   : > { %4090 = vmatmul.msk.f32.vlgmr.msrb.gmra.mxu1 %vm1410_vm12, %v1386_v53 }
 0x5d4   : > { %4091 = vmatmul.msk.f32.gmra.mxu1 %vm1410_vm12, %v1387_v45  ;;  %v1513_v45 = vpop.permute.xlu2 %1512 }
 0x5ea   : > { %v1498_v61 = vpop.permute.xlu1 %1497 }
 0x5fa   : > { %v1440_v50 = vpop.f32.mrf.mxu0 }
 0x5fb   : > { %v1441_v55 = vadd.f32 %v1440_v50, %v1393_v26 }
 0x5fd   : > { %v5286_v21 = vadd.f32 %v1441_v55, %v4841_v34  ;;  %v4100_v34 = vld [vmem:[%s6682_s3 + $0x30] sm:$0xff] }
 0x602   : > { %v1443_v25 = vpop.f32.mrf.mxu0 }
 0x603   : > { %v1444_v59 = vadd.f32 %v1443_v25, %v1398_v54 }
 0x605   : > { %v5282_v39 = vadd.f32 %v1444_v59, %v4839_v32  ;;  %v4099_v32 = vld [vmem:[%s6682_s3 + $0x28] sm:$0xff] }
 0x607   : > { %1541 = vmatpush.msrb.mxu2 %v5282_v39 }
 0x609   : > { %1542 = vmatpush.msrb.mxu2 %v5286_v21 }
 0x60a   : > { %4102 = vmatmul.msk.f32.vlgmr.msrb.gmra.mxu2 %vm697_vm8, %v4098_v48 }
 0x612   : > { %4103 = vmatmul.msk.f32.gmra.mxu2 %vm697_vm8, %v4099_v32 }
 0x61a   : > { %4104 = vmatmul.msk.f32.gmra.mxu2 %vm697_vm8, %v4100_v34 }
 0x622   : > { %4105 = vmatmul.msk.f32.gmra.mxu2 %vm697_vm8, %v4101_v1 }
 0x649   : > { %v1469_v15 = vpop.f32.mrf.mxu1 }
 0x64a   : > { %v1470_v18 = vadd.f32 %v1469_v15, %v1393_v26 }
 0x64c   : > { %v5311_v58 = vadd.f32 %v1470_v18, %v4863_v42  ;;  %v1508_v42 = vpop.permute.xlu1 %1507 }
 0x651   : > { %v1472_v44 = vpop.f32.mrf.mxu1 }
 0x652   : > { %v1473_v14 = vadd.f32 %v1472_v44, %v1398_v54 }
 0x654   : > { %v5307_v16 = vadd.f32 %v1473_v14, %v4861_v41 }
 0x656   : > { %1570 = vmatpush.msrb.mxu3 %v5307_v16 }
 0x658   : > { %1571 = vmatpush.msrb.mxu3 %v5311_v58 }
 0x659   : > { %4106 = vmatmul.msk.f32.vlgmr.msrb.gmra.mxu3 %vm697_vm8, %v4098_v48 }
 0x661   : > { %4107 = vmatmul.msk.f32.gmra.mxu3 %vm697_vm8, %v4099_v32 }
 0x669   : > { %4108 = vmatmul.msk.f32.gmra.mxu3 %vm697_vm8, %v4100_v34 }
 0x671   : > { %4109 = vmatmul.msk.f32.gmra.mxu3 %vm697_vm8, %v4101_v1 }
 0x68d   : > { %v1544_v57 = vpop.f32.mrf.mxu2 }
 0x68e   : > { %v1545_v2 = vadd.f32 %v1544_v57, %v1498_v61 }
 0x690   : > { %v1595_v5 = vmul.f32 %v5318_v3, %v1545_v2  ;;  %vm1586_vm2 = vcmp.gt.f32.partialorder %v1545_v2, 0.0 }
 0x692   : > { %v5325_v53 = vsel %vm1586_vm2, %v1545_v2, %v1595_v5 }
 0x693   : > { %v1629_v56 = vmul.f32 %v5325_v53, %v5325_v53 }
 0x695   : > { %v1547_v41 = vpop.f32.mrf.mxu2 }
 0x696   : > { %v1548_v37 = vadd.f32 %v1547_v41, %v1503_v62 }
 0x698   : > { %v1597_v51 = vmul.f32 %v5318_v3, %v1548_v37  ;;  %vm1588_vm1 = vcmp.gt.f32.partialorder %v1548_v37, 0.0 }
 0x69a   : > { %v5323_v11 = vsel %vm1588_vm1, %v1548_v37, %v1597_v51 }
 0x69b   : > { %v1631_v60 = vmul.f32 %v5323_v11, %v5323_v11  ;;  %v1611_v27 = vadd.f32 %v5323_v11, %v5325_v53 }
 0x69d   : > { %v1550_v38 = vpop.f32.mrf.mxu2  ;;  %v1637_v22 = vadd.f32 %v1631_v60, %v1629_v56 }
 0x69e   : > { %v1551_v4 = vadd.f32 %v1550_v38, %v1508_v42 }
 0x6a0   : > { %v1599_v7 = vmul.f32 %v5318_v3, %v1551_v4  ;;  %vm1590_vm3 = vcmp.gt.f32.partialorder %v1551_v4, 0.0 }
 0x6a2   : > { %v5327_v17 = vsel %vm1590_vm3, %v1551_v4, %v1599_v7 }
 0x6a3   : > { %v1633_v29 = vmul.f32 %v5327_v17, %v5327_v17  ;;  %v1612_v24 = vadd.f32 %v1611_v27, %v5327_v17 }
 0x6a5   : > { %v1553_v12 = vpop.f32.mrf.mxu2  ;;  %v1638_v52 = vadd.f32 %v1637_v22, %v1633_v29 }
 0x6a6   : > { %v1554_v23 = vadd.f32 %v1553_v12, %v1513_v45 }
 0x6a8   : > { %vm1592_vm4 = vcmp.gt.f32.partialorder %v1554_v23, 0.0  ;;  %v1601_v40 = vmul.f32 %v5318_v3, %v1554_v23 }
 0x6aa   : > { %v5339_v47 = vsel %vm1592_vm4, %v1554_v23, %v1601_v40 }
 0x6ab   : > { %v1613_v8 = vadd.f32 %v1612_v24, %v5339_v47  ;;  %v1635_v31 = vmul.f32 %v5339_v47, %v5339_v47 }
 0x6ad   : > { %v1614_v43 = vrot.slane %v1613_v8, 4  ;;  %v1639_v30 = vadd.f32 %v1638_v52, %v1635_v31 }
 0x6af   : > { %v1615_v0 = vadd.f32 %v1614_v43, %v1613_v8  ;;  %v1640_v33 = vrot.slane %v1639_v30, 4 }
 0x6b1   : > { %v1616_v50 = vrot.slane %v1615_v0, 2  ;;  %v1641_v26 = vadd.f32 %v1640_v33, %v1639_v30 }
 0x6b3   : > { %v1617_v54 = vadd.f32 %v1616_v50, %v1615_v0  ;;  %v1642_v25 = vrot.slane %v1641_v26, 2 }
 0x6b5   : > { %v1618_v55 = vrot.slane %v1617_v54, 1  ;;  %v1643_v59 = vadd.f32 %v1642_v25, %v1641_v26 }
 0x6b7   : > { %v1619_v48 = vadd.f32 %v1618_v55, %v1617_v54  ;;  %v1644_v32 = vrot.slane %v1643_v59, 1 }
 0x6b9   : > { %v1657_v34 = vsel %vm487_vm0, %v1619_v48, 0.0  ;;  %v1645_v1 = vadd.f32 %v1644_v32, %v1643_v59 }
 0x6ba   : > { %1660 = vadd.xlane.f32.xlu1 %v1657_v34 }
 0x6bb   : > { %v1671_v15 = vsel %vm487_vm0, %v1645_v1, 0.0 }
 0x6bc   : > { %1674 = vadd.xlane.f32.xlu2 %v1671_v15 }
 0x6d4   : > { %1776 = vperm.xlu2 %4397, %v5272_v13  }
 0x6dc   : > { %v1573_v44 = vpop.f32.mrf.mxu3  ;;  %4400 = vset.pattern.permute.xlu2 %v4620_v49 }
 0x6dd   : > { %1800 = vperm.xlu2 %4400, %v5272_v13   ;;  %v1574_v57 = vadd.f32 %v1573_v44, %v1498_v61 }
 0x6df   : > { %v1596_v38 = vmul.f32 %v5318_v3, %v1574_v57  ;;  %vm1587_vm6 = vcmp.gt.f32.partialorder %v1574_v57, 0.0 }
 0x6e1   : > { %v5358_v5 = vsel %vm1587_vm6, %v1574_v57, %v1596_v38  ;;  %vm1825_vm6 = vcmp.lt.s32.totalorder %v5077_v46, 126 }
 0x6e2   : > { %v1630_v60 = vmul.f32 %v5358_v5, %v5358_v5 }
 0x6e4   : > { %v1576_v18 = vpop.f32.mrf.mxu3 }
 0x6e5   : > { %4402 = vset.pattern.permute.xlu2 %v4619_v36  ;;  %v1577_v14 = vadd.f32 %v1576_v18, %v1503_v62 }
 0x6e6   : > { %1788 = vperm.xlu2 %4402, %v5254_v28  }
 0x6e7   : > { %v1598_v37 = vmul.f32 %v5318_v3, %v1577_v14  ;;  %vm1589_vm5 = vcmp.gt.f32.partialorder %v1577_v14, 0.0 }
 0x6e9   : > { %v5356_v4 = vsel %vm1589_vm5, %v1577_v14, %v1598_v37  ;;  %vm1843_vm5 = vcmp.lt.s32.totalorder %v5077_v46, 2 }
 0x6ea   : > { %v1632_v62 = vmul.f32 %v5356_v4, %v5356_v4  ;;  %v1620_v12 = vadd.f32 %v5356_v4, %v5358_v5 }
 0x6ec   : > { %v1579_v41 = vpop.f32.mrf.mxu3  ;;  %v1646_v27 = vadd.f32 %v1632_v62, %v1630_v60 }
 0x6ed   : > { %v1580_v2 = vadd.f32 %v1579_v41, %v1508_v42 }
 0x6ee   : > { %4403 = vset.pattern.permute.xlu2 %v4620_v49 }
 0x6ef   : > { %v1600_v51 = vmul.f32 %v5318_v3, %v1580_v2  ;;  %1812 = vperm.xlu2 %4403, %v5254_v28   ;;  %vm1591_vm7 = vcmp.gt.f32.partialorder %v1580_v2, 0.0 }
 0x6f1   : > { %v5360_v61 = vsel %vm1591_vm7, %v1580_v2, %v1600_v51  ;;  %vm1823_vm7 = vcmp.ge.s32.totalorder %v5077_v46, 2 }
 0x6f2   : > { %v1634_v23 = vmul.f32 %v5360_v61, %v5360_v61  ;;  %v1621_v29 = vadd.f32 %v1620_v12, %v5360_v61 }
 0x6f4   : > { %v1582_v42 = vpop.f32.mrf.mxu3  ;;  %v1647_v40 = vadd.f32 %v1646_v27, %v1634_v23 }
 0x6f5   : > { %v1583_v7 = vadd.f32 %v1582_v42, %v1513_v45 }
 0x6f7   : > { %vm1593_vm13 = vcmp.gt.f32.partialorder %v1583_v7, 0.0  ;;  %v1602_v56 = vmul.f32 %v5318_v3, %v1583_v7  ;;  %4405 = vset.pattern.permute.xlu2 %v4621_v19 }
 0x6f8   : > { %1906 = vperm.xlu2 %4405, %v5242_v9  }
 0x6f9   : > { %v5374_v45 = vsel %vm1593_vm13, %v1583_v7, %v1602_v56 }
 0x6fa   : > { %v1622_v22 = vadd.f32 %v1621_v29, %v5374_v45  ;;  %v1636_v24 = vmul.f32 %v5374_v45, %v5374_v45 }
 0x6fc   : > { %v1623_v52 = vrot.slane %v1622_v22, 4  ;;  %v1648_v8 = vadd.f32 %v1647_v40, %v1636_v24 }
 0x6fe   : > { %v1624_v31 = vadd.f32 %v1623_v52, %v1622_v22  ;;  %v1649_v43 = vrot.slane %v1648_v8, 4 }
 0x700   : > { %v1625_v3 = vrot.slane %v1624_v31, 2  ;;  %v1650_v30 = vadd.f32 %v1649_v43, %v1648_v8  ;;  %4408 = vset.pattern.permute.xlu2 %v4622_v20 }
 0x701   : > { %1934 = vperm.xlu2 %4408, %v5278_v63  }
 0x702   : > { %v1626_v0 = vadd.f32 %v1625_v3, %v1624_v31  ;;  %v1651_v33 = vrot.slane %v1650_v30, 2 }
 0x704   : > { %v1627_v50 = vrot.slane %v1626_v0, 1  ;;  %v1652_v26 = vadd.f32 %v1651_v33, %v1650_v30 }
 0x706   : > { %v1628_v54 = vadd.f32 %v1627_v50, %v1626_v0  ;;  %v1653_v25 = vrot.slane %v1652_v26, 1 }
 0x708   : > { %v1710_v55 = vsel %vm487_vm0, %v1628_v54, 0.0  ;;  %v1654_v59 = vadd.f32 %v1653_v25, %v1652_v26 }
 0x709   : > { %1712 = vadd.xlane.f32.xlu0 %v1710_v55  ;;  %4412 = vset.pattern.permute.xlu2 %v4621_v19 }
 0x70a   : > { %v1724_v48 = vsel %vm487_vm0, %v1654_v59, 0.0  ;;  %1914 = vperm.xlu2 %4412, %v5254_v28  }
 0x70b   : > { %1726 = vadd.xlane.f32.xlu1 %v1724_v48 }
 0x712   : > { %4413 = vset.pattern.permute.xlu2 %v4623_v35 }
 0x713   : > { %1970 = vperm.xlu2 %4413, %v5254_v28  }
 0x71b   : > { %4415 = vset.pattern.permute.xlu2 %v4624_v10 }
 0x71d   : > { %1780 = vperm.xlu0 %4398, %v5242_v9  }
 0x724   : > { %1784 = vperm.xlu1 %4399, %v5278_v63  }
 0x725   : > { %4409 = vset.pattern.permute.xlu0 %v4623_v35 }
 0x726   : > { %1958 = vperm.xlu0 %4409, %v5272_v13  }
 0x72c   : > { %4401 = vset.pattern.permute.xlu1 %v4620_v49 }
 0x72d   : > { %v1661_v32 = vpop.xlane.xlu1 %1660  ;;  %1804 = vperm.xlu1 %4401, %v5242_v9  }
 0x72e   : > { %v1662_v34 = vrot.slane %v1661_v32, 4  ;;  %4410 = vset.pattern.permute.xlu0 %v4622_v20 }
 0x72f   : > { %v1675_v1 = vpop.xlane.xlu2 %1674  ;;  %1926 = vperm.xlu0 %4410, %v5272_v13  }
 0x730   : > { %v1663_v15 = vadd.f32 %v1662_v34, %v1661_v32  ;;  %v1676_v44 = vrot.slane %v1675_v1, 4 }
 0x732   : > { %v1677_v18 = vadd.f32 %v1676_v44, %v1675_v1  ;;  %v1664_v14 = vrot.slane %v1663_v15, 2 }
 0x734   : > { %v1665_v57 = vadd.f32 %v1664_v14, %v1663_v15  ;;  %v1678_v41 = vrot.slane %v1677_v18, 2 }
 0x735   : > { %1808 = vperm.xlu1 %4401, %v5278_v63  }
 0x736   : > { %v1666_v37 = vrot.slane %v1665_v57, 1  ;;  %v1679_v2 = vadd.f32 %v1678_v41, %v1677_v18 }
 0x737   : > { %1938 = vperm.xlu0 %4410, %v5254_v28   ;;  %v5415_v54 = vpop.permute.xlu2 %1776 }
 0x738   : > { %v1667_v38 = vadd.f32 %v1666_v37, %v1665_v57  ;;  %v1680_v51 = vrot.slane %v1679_v2, 1 }
 0x73a   : > { %4228 = vpush %v1667_v38  ;;  %v1681_v62 = vadd.f32 %v1680_v51, %v1679_v2 }
 0x73c   : > { %4230 = vpush %v1681_v62 }
 0x73d   : > { %4404 = vset.pattern.permute.xlu1 %v4621_v19 }
 0x73e   : > { %1902 = vperm.xlu1 %4404, %v5272_v13  }
 0x73f   : > { %4416 = vset.pattern.permute.xlu0 %v4624_v10  ;;  %v5417_v25 = vpop.permute.xlu2 %1800 }
 0x746   : > { %4406 = vset.pattern.permute.xlu1 %v4622_v20 }
 0x747   : > { %1930 = vperm.xlu1 %4406, %v5242_v9   ;;  %v5421_v59 = vpop.permute.xlu2 %1788 }
 0x74f   : > { %4407 = vset.pattern.permute.xlu1 %v4621_v19 }
 0x750   : > { %1910 = vperm.xlu1 %4407, %v5278_v63  }
 0x758   : > { %4411 = vset.pattern.permute.xlu1 %v4623_v35 }
 0x759   : > { %1962 = vperm.xlu1 %4411, %v5242_v9  }
 0x761   : > { %1966 = vperm.xlu1 %4411, %v5278_v63  }
 0x769   : > { %4414 = vset.pattern.permute.xlu1 %v4624_v10 }
 0x76a   : > { %1990 = vperm.xlu1 %4414, %v5272_v13  }
 0x76b   : > { %s4229_s29 = spop %4228 }
 0x76c   : > { %s5410_s0 = smul.f32 0.00024414063, %s4229_s29 }
 0x76d   : > { %s4231_s2 = spop %4230 }
 0x76e   : > { %s1685_s18 = smul.f32 %s5410_s0, %s5410_s0  ;;  %v1701_v48 = vstv %s5410_s0 }
 0x76f   : > { %s1684_s19 = smul.f32 0.00024414063, %s4231_s2  ;;  %v1759_v32 = vsub.f32 %v5325_v53, %v1701_v48  ;;  %v1761_v34 = vsub.f32 %v5323_v11, %v1701_v48  ;;  %v1765_v1 = vsub.f32 %v5339_v47, %v1701_v48  ;;  %v1763_v37 = vsub.f32 %v5327_v17, %v1701_v48  ;;  %v1813_v11 = vpop.permute.xlu2 %1812 }
 0x771   : > { %s1686_s20 = ssub.f32 %s1684_s19, %s1685_s18 }
 0x773   : > { %s1687_s21 = smax.f32 %s6706_s16, %s1686_s20 }
 0x774   : > { %s1688_s30 = sadd.f32 1e-08, %s1687_s21  ;;  %s6698_s21 = smov 2  }
 0x776   : > { %v1689_v42 = vstv %s1688_s30 }
 0x777   : > { %4485 = vrsqrt.f32 %v1689_v42  ;;  %vm1696_vm15 = vweird.f32 %v1689_v42 }
 0x77c   : > { %v1713_v7 = vpop.xlane.xlu0 %1712 }
 0x77d   : > { %v4486_v60 = vpop.eup %4485  ;;  %v1714_v12 = vrot.slane %v1713_v7, 4 }
 0x77e   : > { %v1691_v23 = vmul.f32 %v4486_v60, %v1689_v42  ;;  %v1727_v56 = vpop.xlane.xlu1 %1726  ;;  %vm1697_vm14 = vweird.f32 %v4486_v60 }
 0x77f   : > { %v1715_v13 = vadd.f32 %v1714_v12, %v1713_v7  ;;  %v1728_v27 = vrot.slane %v1727_v56, 4  ;;  %vm1698_vm1 = vmor %vm1696_vm15, %vm1697_vm14 }
 0x780   : > { %v1692_v29 = vmul.f32 %v4486_v60, %v1691_v23 }
 0x781   : > { %v1716_v40 = vrot.slane %v1715_v13, 2  ;;  %v1729_v22 = vadd.f32 %v1728_v27, %v1727_v56 }
 0x782   : > { %v1693_v24 = vmul.f32 0.5, %v1692_v29 }
 0x783   : > { %v1717_v52 = vadd.f32 %v1716_v40, %v1715_v13  ;;  %v1730_v8 = vrot.slane %v1729_v22, 2 }
 0x784   : > { %v1694_v31 = vsub.f32 1.5, %v1693_v24 }
 0x785   : > { %v1718_v43 = vrot.slane %v1717_v52, 1  ;;  %v1731_v3 = vadd.f32 %v1730_v8, %v1729_v22 }
 0x786   : > { %v1695_v30 = vmul.f32 %v4486_v60, %v1694_v31 }
 0x787   : > { %v1719_v0 = vadd.f32 %v1718_v43, %v1717_v52  ;;  %v1732_v33 = vrot.slane %v1731_v3, 1 }
 0x788   : > { %v1699_v50 = vsel %vm1698_vm1, %v4486_v60, %v1695_v30 }
 0x789   : > { %4232 = vpush %v1699_v50  ;;  %v1733_v26 = vadd.f32 %v1732_v33, %v1731_v3 }
 0x78a   : > { %4234 = vpush %v1719_v0 }
 0x78b   : > { %4236 = vpush %v1733_v26 }
 0x78f   : > { %v1781_v57 = vpop.permute.xlu0 %1780 }
 0x796   : > { %v5419_v55 = vpop.permute.xlu1 %1784 }
 0x79f   : > { %v1805_v41 = vpop.permute.xlu1 %1804 }
 0x7a7   : > { %v1809_v60 = vpop.permute.xlu1 %1808 }
 0x7ba   : > { %s4233_s22 = spop %4232 }
 0x7bb   : > { %v1704_v15 = vstv %s4233_s22  ;;  %s4235_s27 = spop %4234  ;;  %s6696_s22 = smov 126  }
 0x7bc   : > { %v1767_v44 = vmul.f32 %v1759_v32, %v1704_v15  ;;  %v1769_v18 = vmul.f32 %v1761_v34, %v1704_v15  ;;  %v1773_v14 = vmul.f32 %v1765_v1, %v1704_v15  ;;  %s5427_s29 = smul.f32 0.00024414063, %s4235_s27  ;;  %s4237_s2 = spop %4236  ;;  %v1771_v38 = vmul.f32 %v1763_v37, %v1704_v15 }
 0x7bd   : > { %s1736_s18 = smul.f32 0.00024414063, %s4237_s2 }
 0x7be   : > { %v1793_v2 = vmul.f32 %v1781_v57, %v1769_v18  ;;  %v1797_v53 = vmul.f32 %v5421_v59, %v1773_v14  ;;  %s1737_s0 = smul.f32 %s5427_s29, %s5427_s29  ;;  %v1791_v47 = vmul.f32 %v5415_v54, %v1767_v44  ;;  %v1795_v17 = vmul.f32 %v5419_v55, %v1771_v38 }
 0x7bf   : > { %v1753_v24 = vstv %s5427_s29  ;;  %s5558_s29 = sld [smem:[#allocation6 + $0x1]] }
 0x7c0   : > { %s1738_s19 = ssub.f32 %s1736_s18, %s1737_s0  ;;  %v5434_v51 = vadd.f32 %v1813_v11, %v1797_v53  ;;  %v5436_v62 = vadd.f32 %v1805_v41, %v1793_v2  ;;  %v5439_v42 = vadd.f32 %v5417_v25, %v1791_v47  ;;  %v5449_v12 = vadd.f32 %v1809_v60, %v1795_v17 }
 0x7c1   : > { %v1760_v52 = vsub.f32 %v5358_v5, %v1753_v24  ;;  %v1762_v8 = vsub.f32 %v5356_v4, %v1753_v24  ;;  %v1766_v31 = vsub.f32 %v5374_v45, %v1753_v24  ;;  %v1764_v33 = vsub.f32 %v5360_v61, %v1753_v24  ;;  %v1907_v45 = vpop.permute.xlu2 %1906 }
 0x7c2   : > { %s1739_s20 = smax.f32 %s6706_s16, %s1738_s19  ;;  %1833 = vrot.lane.b32.xlu2 %v5434_v51, %s6698_s21  ;;  %1829 = vrot.lane.b32.xlu1 %v5436_v62, %s6698_s21 }
 0x7c3   : > { %s1740_s30 = sadd.f32 1e-08, %s1739_s20  ;;  %1827 = vrot.lane.b32.xlu0 %v5439_v42, %s6698_s21 }
 0x7c5   : > { %v1741_v7 = vstv %s1740_s30 }
 0x7c6   : > { %4487 = vrsqrt.f32 %v1741_v7  ;;  %vm1748_vm3 = vweird.f32 %v1741_v7 }
 0x7ca   : > { %1868 = vrot.lane.b32.xlu2 %v5449_v12, %s6696_s22  ;;  %1831 = vrot.lane.b32.xlu1 %v5449_v12, %s6698_s21 }
 0x7cb   : > { %1864 = vrot.lane.b32.xlu0 %v5439_v42, %s6696_s22 }
 0x7cc   : > { %v4488_v23 = vpop.eup %4487 }
 0x7cd   : > { %v1743_v56 = vmul.f32 %v4488_v23, %v1741_v7  ;;  %vm1749_vm2 = vweird.f32 %v4488_v23 }
 0x7ce   : > { %vm1750_vm4 = vmor %vm1748_vm3, %vm1749_vm2 }
 0x7cf   : > { %v1744_v13 = vmul.f32 %v4488_v23, %v1743_v56 }
 0x7d1   : > { %v1745_v27 = vmul.f32 0.5, %v1744_v13 }
 0x7d2   : > { %1870 = vrot.lane.b32.xlu2 %v5434_v51, %s6696_s22  ;;  %1866 = vrot.lane.b32.xlu1 %v5436_v62, %s6696_s22 }
 0x7d3   : > { %v1746_v29 = vsub.f32 1.5, %v1745_v27 }
 0x7d5   : > { %v1747_v40 = vmul.f32 %v4488_v23, %v1746_v29 }
 0x7d7   : > { %v1751_v22 = vsel %vm1750_vm4, %v4488_v23, %v1747_v40 }
 0x7d8   : > { %4238 = vpush %v1751_v22 }
 0x809   : > { %s4239_s27 = spop %4238 }
 0x80a   : > { %v1756_v43 = vstv %s4239_s27 }
 0x80b   : > { %v1768_v3 = vmul.f32 %v1760_v52, %v1756_v43  ;;  %v1770_v30 = vmul.f32 %v1762_v8, %v1756_v43  ;;  %v1774_v0 = vmul.f32 %v1766_v31, %v1756_v43  ;;  %v1772_v32 = vmul.f32 %v1764_v33, %v1756_v43 }
 0x80d   : > { %v1794_v50 = vmul.f32 %v1781_v57, %v1770_v30  ;;  %v1792_v26 = vmul.f32 %v5415_v54, %v1768_v3  ;;  %v1798_v48 = vmul.f32 %v5421_v59, %v1774_v0  ;;  %v1796_v4 = vmul.f32 %v5419_v55, %v1772_v32  ;;  %v1903_v54 = vpop.permute.xlu1 %1902 }
 0x80f   : > { %v5468_v34 = vadd.f32 %v1805_v41, %v1794_v50  ;;  %v1816_v5 = vadd.f32 %v5417_v25, %v1792_v26  ;;  %v5471_v1 = vadd.f32 %v1813_v11, %v1798_v48  ;;  %v5479_v61 = vadd.f32 %v1809_v60, %v1796_v4  ;;  %v5496_v25 = vpop.permute.xlu2 %1934 }
 0x811   : > { %1837 = vrot.lane.b32.xlu0 %v5468_v34, %s6698_s21  ;;  %1835 = vrot.lane.b32.xlu2 %v1816_v5, %s6698_s21 }
 0x812   : > { %1841 = vrot.lane.b32.xlu1 %v5471_v1, %s6698_s21 }
 0x815   : > { %v1931_v55 = vpop.permute.xlu1 %1930 }
 0x817   : > { %v1915_v59 = vpop.permute.xlu2 %1914 }
 0x819   : > { %1874 = vrot.lane.b32.xlu0 %v5468_v34, %s6696_s22  ;;  %1839 = vrot.lane.b32.xlu2 %v5479_v61, %s6698_s21 }
 0x81a   : > { %1878 = vrot.lane.b32.xlu1 %v5471_v1, %s6696_s22 }
 0x81d   : > { %v5498_v15 = vpop.permute.xlu1 %1910 }
 0x81f   : > { %v5500_v44 = vpop.permute.xlu2 %1970 }
 0x821   : > { %1876 = vrot.lane.b32.xlu0 %v5479_v61, %s6696_s22  ;;  %1872 = vrot.lane.b32.xlu2 %v1816_v5, %s6696_s22 }
 0x822   : > { %2002 = vperm.xlu1 %4414, %v5254_v28  }
 0x825   : > { %v5502_v28 = vpop.permute.xlu1 %1962 }
 0x829   : > { %1998 = vperm.xlu0 %4416, %v5278_v63   ;;  %1994 = vperm.xlu2 %4415, %v5242_v9   ;;  %v1834_v63 = vpop.permute.xlu2 %1833  ;;  %v1959_v9 = vpop.permute.xlu0 %1958 }
 0x82a   : > { %4417 = vset.pattern.permute.xlu1 %v4619_v36 }
 0x82d   : > { %v5504_v18 = vpop.permute.xlu1 %1966 }
 0x831   : > { %4418 = vset.pattern.permute.xlu2 %v4619_v36  ;;  %4419 = vset.pattern.permute.xlu0 %v4618_v6  ;;  %v5506_v14 = vpop.permute.xlu2 %1868  ;;  %v1927_v41 = vpop.permute.xlu0 %1926 }
 0x832   : > { %v1941_v26 = vmul.f32 %v1927_v41, %v5439_v42  ;;  %v1942_v48 = vmul.f32 %v1927_v41, %v1816_v5 }
 0x835   : > { %v5508_v57 = vpop.permute.xlu1 %1990 }
 0x839   : > { %v1871_v37 = vpop.permute.xlu2 %1870  ;;  %v5510_v53 = vpop.permute.xlu0 %1938 }
 0x83d   : > { %v1830_v2 = vpop.permute.xlu1 %1829 }
 0x841   : > { %v1828_v47 = vpop.permute.xlu0 %1827 }
 0x845   : > { %v1832_v38 = vpop.permute.xlu1 %1831 }
 0x849   : > { %v1865_v7 = vpop.permute.xlu0 %1864 }
 0x84d   : > { %v1867_v60 = vpop.permute.xlu1 %1866 }
 0x86b   : > { %v1836_v11 = vpop.permute.xlu2 %1835 }
 0x86c   : > { %v1844_v23 = vsel %vm1843_vm5, %v1828_v47, %v1836_v11  ;;  %v1848_v56 = vsel %vm1843_vm5, %v1836_v11, %v1828_v47 }
 0x86d   : > { %v1856_v27 = vsel %vm1823_vm7, %v1848_v56, 0.0  ;;  %v1857_v29 = vsel %vm1823_vm7, %v1844_v23, 0.0  ;;  %v1943_v56 = vmul.f32 %v1931_v55, %v5436_v62 }
 0x86e   : > { %v1917_v52 = vmul.f32 %v1903_v54, %v1856_v27  ;;  %v1918_v8 = vmul.f32 %v1903_v54, %v1857_v29 }
 0x870   : > { %v1950_v41 = vadd.f32 %v1942_v48, %v1918_v8 }
 0x873   : > { %v1840_v17 = vpop.permute.xlu2 %1839 }
 0x874   : > { %v1846_v54 = vsel %vm1843_vm5, %v1832_v38, %v1840_v17 }
 0x87b   : > { %v1873_v13 = vpop.permute.xlu2 %1872 }
 0x87c   : > { %v1881_v40 = vsel %vm1825_vm6, %v1865_v7, %v1873_v13  ;;  %v1885_v22 = vsel %vm1825_vm6, %v1873_v13, %v1865_v7 }
 0x87d   : > { %v1893_v31 = vsel %vm1825_vm6, %v1881_v40, 0.0  ;;  %v1894_v43 = vsel %vm1825_vm6, %v1885_v22, 0.0 }
 0x87e   : > { %v1973_v11 = vmul.f32 %v1959_v9, %v1893_v31  ;;  %v1974_v47 = vmul.f32 %v1959_v9, %v1894_v43  ;;  %v1944_v9 = vmul.f32 %v1931_v55, %v5468_v34 }
 0x883   : > { %v1838_v24 = vpop.permute.xlu0 %1837 }
 0x884   : > { %v1842_v3 = vpop.permute.xlu1 %1841  ;;  %v1845_v30 = vsel %vm1843_vm5, %v1830_v2, %v1838_v24  ;;  %v1849_v0 = vsel %vm1843_vm5, %v1838_v24, %v1830_v2  ;;  %v1850_v2 = vsel %vm1843_vm5, %v1840_v17, %v1832_v38  ;;  %v1861_v38 = vsel %vm1823_vm7, %v1846_v54, 0.0 }
 0x885   : > { %v1847_v33 = vsel %vm1843_vm5, %v1834_v63, %v1842_v3  ;;  %v1851_v50 = vsel %vm1843_vm5, %v1842_v3, %v1834_v63  ;;  %v1858_v32 = vsel %vm1823_vm7, %v1849_v0, 0.0  ;;  %v1859_v4 = vsel %vm1823_vm7, %v1845_v30, 0.0 }
 0x886   : > { %v1919_v7 = vmul.f32 %v1907_v45, %v1858_v32  ;;  %v1920_v23 = vmul.f32 %v1907_v45, %v1859_v4  ;;  %v1862_v42 = vsel %vm1823_vm7, %v1851_v50, 0.0  ;;  %v1863_v5 = vsel %vm1823_vm7, %v1847_v33, 0.0 }
 0x887   : > { %v1949_v63 = vadd.f32 %v1941_v26, %v1917_v52  ;;  %v1860_v13 = vsel %vm1823_vm7, %v1850_v2, 0.0  ;;  %v1982_v17 = vadd.f32 %v1974_v47, %v1950_v41  ;;  %v1923_v27 = vmul.f32 %v1915_v59, %v1862_v42  ;;  %v1995_v26 = vpop.permute.xlu2 %1994 }
 0x888   : > { %v1924_v29 = vmul.f32 %v1915_v59, %v1863_v5  ;;  %v1951_v52 = vadd.f32 %v1943_v56, %v1919_v7  ;;  %v1952_v8 = vadd.f32 %v1944_v9, %v1920_v23  ;;  %v1947_v0 = vmul.f32 %v5510_v53, %v5434_v51 }
 0x889   : > { %v1981_v45 = vadd.f32 %v1973_v11, %v1949_v63  ;;  %v1921_v33 = vmul.f32 %v5498_v15, %v1860_v13  ;;  %v1922_v50 = vmul.f32 %v5498_v15, %v1861_v38  ;;  %v1945_v54 = vmul.f32 %v5496_v25, %v5449_v12 }
 0x88a   : > { %v2006_v2 = vadd.f32 %v5508_v57, %v1982_v17  ;;  %v1946_v15 = vmul.f32 %v5496_v25, %v5479_v61  ;;  %v1955_v7 = vadd.f32 %v1947_v0, %v1923_v27 }
 0x88b   : > { %v1875_v40 = vpop.permute.xlu0 %1874  ;;  %v2005_v51 = vadd.f32 %v5508_v57, %v1981_v45  ;;  %v1953_v42 = vadd.f32 %v1945_v54, %v1921_v33 }
 0x88c   : > { %v1882_v22 = vsel %vm1825_vm6, %v1867_v60, %v1875_v40  ;;  %v1886_v62 = vsel %vm1825_vm6, %v1875_v40, %v1867_v60  ;;  %v1879_v24 = vpop.permute.xlu1 %1878  ;;  %vm2015_vm1 = vcmp.gt.f32.partialorder %v2006_v2, 0.0 }
 0x88d   : > { %v1895_v31 = vsel %vm1825_vm6, %v1882_v22, 0.0  ;;  %v1896_v34 = vsel %vm1825_vm6, %v1886_v62, 0.0  ;;  %v1884_v55 = vsel %vm1825_vm6, %v1871_v37, %v1879_v24  ;;  %v1888_v59 = vsel %vm1825_vm6, %v1879_v24, %v1871_v37 }
 0x88e   : > { %v1975_v43 = vmul.f32 %v5502_v28, %v1895_v31  ;;  %v1976_v3 = vmul.f32 %v5502_v28, %v1896_v34  ;;  %v1899_v60 = vsel %vm1825_vm6, %v1884_v55, 0.0  ;;  %v1900_v30 = vsel %vm1825_vm6, %v1888_v59, 0.0 }
 0x88f   : > { %v1948_v37 = vmul.f32 %v5510_v53, %v5471_v1  ;;  %v1979_v28 = vmul.f32 %v5500_v44, %v1899_v60  ;;  %v1980_v48 = vmul.f32 %v5500_v44, %v1900_v30  ;;  %v2022_v53 = vstv %s5558_s29 }
 0x890   : > { %v1983_v32 = vadd.f32 %v1975_v43, %v1951_v52  ;;  %v1984_v4 = vadd.f32 %v1976_v3, %v1952_v8  ;;  %v1954_v44 = vadd.f32 %v1946_v15, %v1922_v50  ;;  %v2023_v25 = vmul.f32 %v2022_v53, %v2005_v51 }
 0x891   : > { %v1956_v1 = vadd.f32 %v1948_v37, %v1924_v29  ;;  %v1987_v41 = vadd.f32 %v1979_v28, %v1955_v7  ;;  %v2024_v13 = vmul.f32 %v2022_v53, %v2006_v2  ;;  %vm2014_vm15 = vcmp.gt.f32.partialorder %v2005_v51, 0.0 }
 0x892   : > { %v2007_v11 = vadd.f32 %v1995_v26, %v1983_v32  ;;  %v2008_v47 = vadd.f32 %v1995_v26, %v1984_v4  ;;  %v5609_v22 = vsel %vm2014_vm15, %v2005_v51, %v2023_v25 }
 0x893   : > { %v1877_v23 = vpop.permute.xlu0 %1876  ;;  %v1988_v56 = vadd.f32 %v1980_v48, %v1956_v1  ;;  %v5611_v62 = vsel %vm2015_vm1, %v2006_v2, %v2024_v13 }
 0x894   : > { %v2025_v5 = vmul.f32 %v2022_v53, %v2007_v11  ;;  %v2026_v63 = vmul.f32 %v2022_v53, %v2008_v47  ;;  %v2003_v12 = vpop.permute.xlu1 %2002  ;;  %vm2016_vm13 = vcmp.gt.f32.partialorder %v2007_v11, 0.0  ;;  %vm2017_vm14 = vcmp.gt.f32.partialorder %v2008_v47, 0.0 }
 0x895   : > { %v1883_v57 = vsel %vm1825_vm6, %v5506_v14, %v1877_v23  ;;  %v1887_v61 = vsel %vm1825_vm6, %v1877_v23, %v5506_v14  ;;  %v2011_v45 = vadd.f32 %v2003_v12, %v1987_v41  ;;  %v2012_v17 = vadd.f32 %v2003_v12, %v1988_v56 }
 0x896   : > { %v1897_v38 = vsel %vm1825_vm6, %v1883_v57, 0.0  ;;  %v1898_v9 = vsel %vm1825_vm6, %v1887_v61, 0.0  ;;  %v5603_v27 = vsel %vm2016_vm13, %v2007_v11, %v2025_v5  ;;  %v5605_v29 = vsel %vm2017_vm14, %v2008_v47, %v2026_v63 }
 0x897   : > { %v1977_v40 = vmul.f32 %v5504_v18, %v1897_v38  ;;  %v1978_v14 = vmul.f32 %v5504_v18, %v1898_v9  ;;  %v2059_v8 = vmul.f32 %v5603_v27, %v5603_v27  ;;  %v2060_v31 = vmul.f32 %v5605_v29, %v5605_v29 }
 0x898   : > { %v2029_v34 = vmul.f32 %v2022_v53, %v2011_v45  ;;  %v2030_v55 = vmul.f32 %v2022_v53, %v2012_v17  ;;  %vm2020_vm2 = vcmp.gt.f32.partialorder %v2011_v45, 0.0  ;;  %vm2021_vm3 = vcmp.gt.f32.partialorder %v2012_v17, 0.0 }
 0x899   : > { %v1985_v24 = vadd.f32 %v1977_v40, %v1953_v42  ;;  %v1986_v52 = vadd.f32 %v1978_v14, %v1954_v44  ;;  %v2057_v18 = vmul.f32 %v5609_v22, %v5609_v22  ;;  %v2058_v60 = vmul.f32 %v5611_v62, %v5611_v62 }
 0x89a   : > { %v2039_v33 = vadd.f32 %v5603_v27, %v5609_v22  ;;  %v2048_v50 = vadd.f32 %v5605_v29, %v5611_v62  ;;  %v5625_v26 = vsel %vm2020_vm2, %v2011_v45, %v2029_v34  ;;  %v5627_v37 = vsel %vm2021_vm3, %v2012_v17, %v2030_v55 }
 0x89b   : > { %v1999_v59 = vpop.permute.xlu0 %1998  ;;  %v2065_v28 = vadd.f32 %v2059_v8, %v2057_v18  ;;  %v2074_v48 = vadd.f32 %v2060_v31, %v2058_v60  ;;  %v2063_v11 = vmul.f32 %v5625_v26, %v5625_v26  ;;  %v2064_v47 = vmul.f32 %v5627_v37, %v5627_v37 }
 0x89c   : > { %v2009_v43 = vadd.f32 %v1999_v59, %v1985_v24  ;;  %v2010_v3 = vadd.f32 %v1999_v59, %v1986_v52 }
 0x89e   : > { %vm2018_vm4 = vcmp.gt.f32.partialorder %v2009_v43, 0.0  ;;  %vm2019_vm13 = vcmp.gt.f32.partialorder %v2010_v3, 0.0  ;;  %v2027_v30 = vmul.f32 %v2022_v53, %v2009_v43  ;;  %v2028_v0 = vmul.f32 %v2022_v53, %v2010_v3 }
 0x8a0   : > { %v5629_v32 = vsel %vm2018_vm4, %v2009_v43, %v2027_v30  ;;  %v5631_v4 = vsel %vm2019_vm13, %v2010_v3, %v2028_v0 }
 0x8a1   : > { %v2040_v54 = vadd.f32 %v2039_v33, %v5629_v32  ;;  %v2049_v51 = vadd.f32 %v2048_v50, %v5631_v4  ;;  %v2061_v2 = vmul.f32 %v5629_v32, %v5629_v32  ;;  %v2062_v15 = vmul.f32 %v5631_v4, %v5631_v4  ;;  %v4509_v33 = vld [vmem:[%s6685_s6 + $0x8] sm:$0xff]  ;;  %v4510_v50 = vld [vmem:[%s6685_s6] sm:$0xff] }
 0x8a3   : > { %v2050_v7 = vadd.f32 %v2049_v51, %v5627_v37  ;;  %v2041_v1 = vadd.f32 %v2040_v54, %v5625_v26  ;;  %v2066_v53 = vadd.f32 %v2065_v28, %v2061_v2  ;;  %v2075_v23 = vadd.f32 %v2074_v48, %v2062_v15 }
 0x8a5   : > { %v2051_v42 = vrot.slane %v2050_v7, 4  ;;  %v2042_v44 = vrot.slane %v2041_v1, 4  ;;  %v2067_v5 = vadd.f32 %v2066_v53, %v2063_v11  ;;  %v2076_v63 = vadd.f32 %v2075_v23, %v2064_v47 }
 0x8a7   : > { %v2052_v41 = vadd.f32 %v2051_v42, %v2050_v7  ;;  %v2043_v56 = vadd.f32 %v2042_v44, %v2041_v1  ;;  %v2068_v12 = vrot.slane %v2067_v5, 4  ;;  %v2077_v57 = vrot.slane %v2076_v63, 4 }
 0x8a9   : > { %v2053_v61 = vrot.slane %v2052_v41, 2  ;;  %v2044_v25 = vrot.slane %v2043_v56, 2  ;;  %v2069_v13 = vadd.f32 %v2068_v12, %v2067_v5  ;;  %v2078_v38 = vadd.f32 %v2077_v57, %v2076_v63  ;;  %v1388_v5 = vld [vmem:[%s6684_s5 + $0x10] sm:$0xff] }
 0x8aa   : > { %4088 = vmatmul.msk.f32.gmra.mxu0 %vm1410_vm12, %v1388_v5  ;;  %4092 = vmatmul.msk.f32.gmra.mxu1 %vm1410_vm12, %v1388_v5 }
 0x8ab   : > { %v2054_v9 = vadd.f32 %v2053_v61, %v2052_v41  ;;  %v2045_v45 = vadd.f32 %v2044_v25, %v2043_v56  ;;  %v2070_v17 = vrot.slane %v2069_v13, 2  ;;  %v2079_v40 = vrot.slane %v2078_v38, 2 }
 0x8ad   : > { %v2055_v14 = vrot.slane %v2054_v9, 1  ;;  %v2046_v24 = vrot.slane %v2045_v45, 1  ;;  %v2071_v52 = vadd.f32 %v2070_v17, %v2069_v13  ;;  %v2080_v8 = vadd.f32 %v2079_v40, %v2078_v38 }
 0x8af   : > { %v2056_v31 = vadd.f32 %v2055_v14, %v2054_v9  ;;  %v2047_v34 = vadd.f32 %v2046_v24, %v2045_v45  ;;  %v2072_v55 = vrot.slane %v2071_v52, 1  ;;  %v2081_v18 = vrot.slane %v2080_v8, 1 }
 0x8b1   : > { %v2138_v59 = vsel %vm487_vm0, %v2056_v31, 0.0  ;;  %v2085_v43 = vsel %vm487_vm0, %v2047_v34, 0.0  ;;  %v2073_v3 = vadd.f32 %v2072_v55, %v2071_v52  ;;  %v2082_v30 = vadd.f32 %v2081_v18, %v2080_v8 }
 0x8b2   : > { %2140 = vadd.xlane.f32.xlu0 %v2138_v59  ;;  %2088 = vadd.xlane.f32.xlu2 %v2085_v43 }
 0x8b3   : > { %v2099_v60 = vsel %vm487_vm0, %v2073_v3, 0.0  ;;  %v2152_v0 = vsel %vm487_vm0, %v2082_v30, 0.0  ;;  %v1389_v3 = vld [vmem:[%s6684_s5 + $0x18] sm:$0xff] }
 0x8b4   : > { %2102 = vadd.xlane.f32.xlu1 %v2099_v60  ;;  %4089 = vmatmul.msk.f32.gmra.mxu0 %vm1410_vm12, %v1389_v3 }
 0x8b5   : > { %4093 = vmatmul.msk.f32.gmra.mxu1 %vm1410_vm12, %v1389_v3 }
 0x8ba   : > { %2154 = vadd.xlane.f32.xlu2 %v2152_v0 }
 0x8cd   : > { %2213 = vperm.xlu1 %4417, %v4509_v33  }
 0x8d2   : > { %2209 = vperm.xlu2 %4418, %v4510_v50  }
 0x8d5   : > { %4421 = vset.pattern.permute.xlu1 %v4618_v6 }
 0x8da   : > { %4420 = vset.pattern.permute.xlu2 %v4618_v6 }
 0x925   : > { %v2089_v28 = vpop.xlane.xlu2 %2088  ;;  %v2141_v63 = vpop.xlane.xlu0 %2140 }
 0x926   : > { %v2090_v48 = vrot.slane %v2089_v28, 4  ;;  %v2142_v56 = vrot.slane %v2141_v63, 4 }
 0x927   : > { %v2103_v54 = vpop.xlane.xlu1 %2102 }
 0x928   : > { %v2091_v51 = vadd.f32 %v2090_v48, %v2089_v28  ;;  %v2104_v2 = vrot.slane %v2103_v54, 4  ;;  %v2143_v61 = vadd.f32 %v2142_v56, %v2141_v63 }
 0x92a   : > { %v2092_v15 = vrot.slane %v2091_v51, 2  ;;  %v2105_v11 = vadd.f32 %v2104_v2, %v2103_v54  ;;  %v2144_v13 = vrot.slane %v2143_v61, 2 }
 0x92c   : > { %v2106_v47 = vrot.slane %v2105_v11, 2  ;;  %v2093_v7 = vadd.f32 %v2092_v15, %v2091_v51  ;;  %v2145_v40 = vadd.f32 %v2144_v13, %v2143_v61 }
 0x92d   : > { %v2155_v41 = vpop.xlane.xlu2 %2154 }
 0x92e   : > { %v2094_v1 = vrot.slane %v2093_v7, 1  ;;  %v2107_v53 = vadd.f32 %v2106_v47, %v2105_v11  ;;  %v2156_v12 = vrot.slane %v2155_v41, 4  ;;  %v2146_v8 = vrot.slane %v2145_v40, 1 }
 0x930   : > { %v2095_v23 = vadd.f32 %v2094_v1, %v2093_v7  ;;  %v2108_v42 = vrot.slane %v2107_v53, 1  ;;  %v2157_v25 = vadd.f32 %v2156_v12, %v2155_v41  ;;  %v2147_v59 = vadd.f32 %v2146_v8, %v2145_v40  ;;  %v4131_v8 = vld [vmem:[%s6682_s3 + $0x58] sm:$0xff] }
 0x932   : > { %4240 = vpush %v2095_v23  ;;  %v2109_v44 = vadd.f32 %v2108_v42, %v2107_v53  ;;  %v2158_v9 = vrot.slane %v2157_v25, 2 }
 0x934   : > { %4242 = vpush %v2109_v44  ;;  %v2159_v14 = vadd.f32 %v2158_v9, %v2157_v25  ;;  %v5715_v9 = vld [vmem:[%s6683_s4 + $0x48] sm:$0xff] }
 0x935   : > { %2319 = vperm.xlu2 %4420, %v5715_v9  }
 0x936   : > { %v2160_v31 = vrot.slane %v2159_v14, 1 }
 0x938   : > { %v2161_v43 = vadd.f32 %v2160_v31, %v2159_v14  ;;  %v5752_v31 = vpop.f32.mrf.mxu1 }
 0x93f   : > { %v2214_v25 = vpop.permute.xlu1 %2213 }
 0x963   : > { %s4241_s20 = spop %4240 }
 0x964   : > { %s5660_s29 = smul.f32 0.00024414063, %s4241_s20 }
 0x965   : > { %s4243_s2 = spop %4242 }
 0x966   : > { %s2113_s18 = smul.f32 %s5660_s29, %s5660_s29  ;;  %v2129_v18 = vstv %s5660_s29 }
 0x967   : > { %s2112_s0 = smul.f32 0.00024414063, %s4243_s2  ;;  %v2193_v60 = vsub.f32 %v5625_v26, %v2129_v18  ;;  %v2191_v33 = vsub.f32 %v5629_v32, %v2129_v18  ;;  %v2189_v28 = vsub.f32 %v5603_v27, %v2129_v18  ;;  %v2187_v26 = vsub.f32 %v5609_v22, %v2129_v18  ;;  %v4112_v32 = vld [vmem:[%s6684_s5 + $0x20] sm:$0xff]  ;;  %v4113_v27 = vld [vmem:[%s6684_s5 + $0x28] sm:$0xff] }
 0x969   : > { %s2114_s19 = ssub.f32 %s2112_s0, %s2113_s18 }
 0x96b   : > { %s2115_s22 = smax.f32 %s6706_s16, %s2114_s19 }
 0x96c   : > { %s2116_s21 = sadd.f32 1e-08, %s2115_s22 }
 0x96e   : > { %v2117_v57 = vstv %s2116_s21 }
 0x96f   : > { %4489 = vrsqrt.f32 %v2117_v57  ;;  %vm2124_vm15 = vweird.f32 %v2117_v57 }
 0x975   : > { %v4490_v38 = vpop.eup %4489 }
 0x976   : > { %v2119_v45 = vmul.f32 %v4490_v38, %v2117_v57  ;;  %vm2125_vm14 = vweird.f32 %v4490_v38 }
 0x977   : > { %vm2126_vm1 = vmor %vm2124_vm15, %vm2125_vm14 }
 0x978   : > { %v2120_v17 = vmul.f32 %v4490_v38, %v2119_v45 }
 0x97a   : > { %v2121_v24 = vmul.f32 0.5, %v2120_v17 }
 0x97c   : > { %v2122_v52 = vsub.f32 1.5, %v2121_v24  ;;  %v4128_v24 = vld [vmem:[%s6682_s3 + $0x40] sm:$0xff] }
 0x97e   : > { %v2123_v34 = vmul.f32 %v4490_v38, %v2122_v52  ;;  %v5733_v52 = vld [vmem:[%s6683_s4 + $0x58] sm:$0xff] }
 0x97f   : > { %2329 = vperm.xlu2 %4420, %v5733_v52  }
 0x980   : > { %v2127_v55 = vsel %vm2126_vm1, %v4490_v38, %v2123_v34  ;;  %v5710_v38 = vld [vmem:[%s6683_s4 + $0x50] sm:$0xff]  ;;  %v5754_v34 = vpop.f32.mrf.mxu1 }
 0x981   : > { %4244 = vpush %v2127_v55  ;;  %2324 = vperm.xlu1 %4421, %v5710_v38  }
 0x982   : > { %4246 = vpush %v2147_v59 }
 0x983   : > { %4248 = vpush %v2161_v43 }
 0x987   : > { %4422 = vset.pattern.permute.xlu2 %v4619_v36 }
 0x989   : > { %4423 = vset.pattern.permute.xlu1 %v4619_v36 }
 0x9b2   : > { %s4245_s20 = spop %4244 }
 0x9b3   : > { %v2132_v30 = vstv %s4245_s20  ;;  %s4247_s30 = spop %4246 }
 0x9b4   : > { %v2201_v0 = vmul.f32 %v2193_v60, %v2132_v30  ;;  %s5674_s27 = smul.f32 0.00024414063, %s4247_s30  ;;  %s4249_s2 = spop %4248  ;;  %v2199_v50 = vmul.f32 %v2191_v33, %v2132_v30  ;;  %v2197_v48 = vmul.f32 %v2189_v28, %v2132_v30  ;;  %v2195_v54 = vmul.f32 %v2187_v26, %v2132_v30 }
 0x9b5   : > { %s2164_s18 = smul.f32 0.00024414063, %s4249_s2 }
 0x9b6   : > { %s2165_s0 = smul.f32 %s5674_s27, %s5674_s27  ;;  %2248 = vmatpush.msra.mxu0 %v2201_v0  ;;  %v2181_v53 = vstv %s5674_s27 }
 0x9b7   : > { %v2194_v23 = vsub.f32 %v5627_v37, %v2181_v53  ;;  %v2192_v5 = vsub.f32 %v5631_v4, %v2181_v53  ;;  %v2190_v41 = vsub.f32 %v5605_v29, %v2181_v53  ;;  %v2188_v12 = vsub.f32 %v5611_v62, %v2181_v53  ;;  %v5697_v37 = vpop.f32.mrf.mxu0  ;;  %v5704_v29 = vld [vmem:[%s6683_s4 + $0x40] sm:$0xff]  ;;  %v2210_v62 = vpop.permute.xlu2 %2209 }
 0x9b8   : > { %s2166_s29 = ssub.f32 %s2164_s18, %s2165_s0  ;;  %2249 = vmatpush.msra.mxu0 %v2199_v50  ;;  %2314 = vperm.xlu0 %4419, %v5704_v29  }
 0x9ba   : > { %s2167_s19 = smax.f32 %s6706_s16, %s2166_s29  ;;  %2250 = vmatpush.msra.mxu0 %v2197_v48 }
 0x9bb   : > { %s2168_s20 = sadd.f32 1e-08, %s2167_s19 }
 0x9bc   : > { %2251 = vmatpush.msra.mxu0 %v2195_v54 }
 0x9bd   : > { %v2169_v51 = vstv %s2168_s20  ;;  %4116 = vmatmul.msk.f32.vlgmr.msra.gmra.mxu0 %vm1410_vm12, %v4112_v32  ;;  %s4140_s20 = sld [smem:[#allocation3 + $0x2]] }
 0x9be   : > { %4491 = vrsqrt.f32 %v2169_v51  ;;  %vm2176_vm3 = vweird.f32 %v2169_v51 }
 0x9bf   : > { %v5699_v61 = vpop.f32.mrf.mxu0 }
 0x9c0   : > { %4424 = vset.pattern.permute.xlu0 %v4619_v36 }
 0x9c3   : > { %v5768_v48 = vstv %s4140_s20 }
 0x9c4   : > { %v4492_v22 = vpop.eup %4491 }
 0x9c5   : > { %v2171_v2 = vmul.f32 %v4492_v22, %v2169_v51  ;;  %4117 = vmatmul.msk.f32.gmra.mxu0 %vm1410_vm12, %v4113_v27  ;;  %vm2177_vm2 = vweird.f32 %v4492_v22 }
 0x9c6   : > { %vm2178_vm4 = vmor %vm2176_vm3, %vm2177_vm2 }
 0x9c7   : > { %v2172_v15 = vmul.f32 %v4492_v22, %v2171_v2 }
 0x9c9   : > { %v2173_v11 = vmul.f32 0.5, %v2172_v15 }
 0x9cb   : > { %v2174_v47 = vsub.f32 1.5, %v2173_v11 }
 0x9cd   : > { %v2175_v7 = vmul.f32 %v4492_v22, %v2174_v47 }
 0x9cf   : > { %v2179_v1 = vsel %vm2178_vm4, %v4492_v22, %v2175_v7 }
 0x9d0   : > { %4250 = vpush %v2179_v1 }
 0xa01   : > { %s4251_s18 = spop %4250 }
 0xa02   : > { %v2184_v42 = vstv %s4251_s18 }
 0xa03   : > { %v2202_v44 = vmul.f32 %v2194_v23, %v2184_v42  ;;  %v2200_v63 = vmul.f32 %v2192_v5, %v2184_v42  ;;  %v2198_v56 = vmul.f32 %v2190_v41, %v2184_v42  ;;  %v2196_v57 = vmul.f32 %v2188_v12, %v2184_v42 }
 0xa05   : > { %2277 = vmatpush.msra.mxu1 %v2202_v44 }
 0xa07   : > { %2278 = vmatpush.msra.mxu1 %v2200_v63 }
 0xa09   : > { %2279 = vmatpush.msra.mxu1 %v2198_v56 }
 0xa0b   : > { %2280 = vmatpush.msra.mxu1 %v2196_v57 }
 0xa0c   : > { %4120 = vmatmul.msk.f32.vlgmr.msra.gmra.mxu1 %vm1410_vm12, %v4112_v32 }
 0xa14   : > { %4121 = vmatmul.msk.f32.gmra.mxu1 %vm1410_vm12, %v4113_v27 }
 0xa2a   : > { %v2315_v33 = vpop.permute.xlu0 %2314 }
 0xa3a   : > { %v2253_v4 = vpop.f32.mrf.mxu0 }
 0xa3b   : > { %v2254_v45 = vadd.f32 %v2253_v4, %v2210_v62 }
 0xa3d   : > { %v5724_v14 = vadd.f32 %v2254_v45, %v5286_v21  ;;  %v4130_v21 = vld [vmem:[%s6682_s3 + $0x50] sm:$0xff] }
 0xa42   : > { %v2256_v13 = vpop.f32.mrf.mxu0 }
 0xa43   : > { %v2257_v17 = vadd.f32 %v2256_v13, %v2214_v25 }
 0xa45   : > { %v5721_v40 = vadd.f32 %v2257_v17, %v5282_v39  ;;  %v4129_v39 = vld [vmem:[%s6682_s3 + $0x48] sm:$0xff] }
 0xa47   : > { %2358 = vmatpush.msra.mxu2 %v5721_v40 }
 0xa49   : > { %2359 = vmatpush.msra.mxu2 %v5724_v14 }
 0xa4a   : > { %4132 = vmatmul.msk.f32.vlgmr.msra.gmra.mxu2 %vm697_vm8, %v4128_v24 }
 0xa52   : > { %4133 = vmatmul.msk.f32.gmra.mxu2 %vm697_vm8, %v4129_v39 }
 0xa5a   : > { %4134 = vmatmul.msk.f32.gmra.mxu2 %vm697_vm8, %v4130_v21 }
 0xa62   : > { %4135 = vmatmul.msk.f32.gmra.mxu2 %vm697_vm8, %v4131_v8 }
 0xa89   : > { %v2282_v55 = vpop.f32.mrf.mxu1 }
 0xa8a   : > { %v2283_v43 = vadd.f32 %v2282_v55, %v2210_v62 }
 0xa8c   : > { %v5760_v60 = vadd.f32 %v2283_v43, %v5311_v58  ;;  %v2325_v58 = vpop.permute.xlu1 %2324 }
 0xa91   : > { %v2285_v59 = vpop.f32.mrf.mxu1 }
 0xa92   : > { %v2286_v3 = vadd.f32 %v2285_v59, %v2214_v25 }
 0xa94   : > { %v5757_v18 = vadd.f32 %v2286_v3, %v5307_v16  ;;  %v2320_v16 = vpop.permute.xlu2 %2319 }
 0xa96   : > { %2387 = vmatpush.msra.mxu3 %v5757_v18 }
 0xa98   : > { %2388 = vmatpush.msra.mxu3 %v5760_v60 }
 0xa99   : > { %4136 = vmatmul.msk.f32.vlgmr.msra.gmra.mxu3 %vm697_vm8, %v4128_v24 }
 0xa9c   : > { %v2330_v47 = vpop.permute.xlu2 %2329 }
 0xaa1   : > { %4137 = vmatmul.msk.f32.gmra.mxu3 %vm697_vm8, %v4129_v39 }
 0xaa9   : > { %4138 = vmatmul.msk.f32.gmra.mxu3 %vm697_vm8, %v4130_v21 }
 0xab1   : > { %4139 = vmatmul.msk.f32.gmra.mxu3 %vm697_vm8, %v4131_v8 }
 0xacd   : > { %v2361_v30 = vpop.f32.mrf.mxu2 }
 0xace   : > { %v2362_v28 = vadd.f32 %v2361_v30, %v2315_v33 }
 0xad0   : > { %v2412_v51 = vmul.f32 %v5768_v48, %v2362_v28  ;;  %vm2403_vm14 = vcmp.gt.f32.partialorder %v2362_v28, 0.0 }
 0xad2   : > { %v5775_v2 = vsel %vm2403_vm14, %v2362_v28, %v2412_v51 }
 0xad3   : > { %v2446_v53 = vmul.f32 %v5775_v2, %v5775_v2 }
 0xad5   : > { %v2364_v0 = vpop.f32.mrf.mxu2 }
 0xad6   : > { %v2365_v50 = vadd.f32 %v2364_v0, %v2320_v16 }
 0xad8   : > { %v2414_v54 = vmul.f32 %v5768_v48, %v2365_v50  ;;  %vm2405_vm13 = vcmp.gt.f32.partialorder %v2365_v50, 0.0 }
 0xada   : > { %v5773_v22 = vsel %vm2405_vm13, %v2365_v50, %v2414_v54 }
 0xadb   : > { %v2448_v11 = vmul.f32 %v5773_v22, %v5773_v22  ;;  %v2428_v23 = vadd.f32 %v5773_v22, %v5775_v2 }
 0xadd   : > { %v2367_v26 = vpop.f32.mrf.mxu2  ;;  %v2454_v5 = vadd.f32 %v2448_v11, %v2446_v53 }
 0xade   : > { %v2368_v32 = vadd.f32 %v2367_v26, %v2325_v58 }
 0xae0   : > { %v2416_v27 = vmul.f32 %v5768_v48, %v2368_v32  ;;  %vm2407_vm15 = vcmp.gt.f32.partialorder %v2368_v32, 0.0 }
 0xae2   : > { %v5777_v15 = vsel %vm2407_vm15, %v2368_v32, %v2416_v27 }
 0xae3   : > { %v2450_v42 = vmul.f32 %v5777_v15, %v5777_v15  ;;  %v2429_v63 = vadd.f32 %v2428_v23, %v5777_v15 }
 0xae5   : > { %v2370_v7 = vpop.f32.mrf.mxu2  ;;  %v2455_v56 = vadd.f32 %v2454_v5, %v2450_v42 }
 0xae6   : > { %v2371_v1 = vadd.f32 %v2370_v7, %v2330_v47 }
 0xae8   : > { %vm2409_vm1 = vcmp.gt.f32.partialorder %v2371_v1, 0.0  ;;  %v2418_v44 = vmul.f32 %v5768_v48, %v2371_v1 }
 0xaea   : > { %v5789_v41 = vsel %vm2409_vm1, %v2371_v1, %v2418_v44 }
 0xaeb   : > { %v2430_v12 = vadd.f32 %v2429_v63, %v5789_v41  ;;  %v2452_v57 = vmul.f32 %v5789_v41, %v5789_v41 }
 0xaed   : > { %v2431_v4 = vrot.slane %v2430_v12, 4  ;;  %v2456_v62 = vadd.f32 %v2455_v56, %v2452_v57 }
 0xaef   : > { %v2432_v25 = vadd.f32 %v2431_v4, %v2430_v12  ;;  %v2457_v13 = vrot.slane %v2456_v62, 4 }
 0xaf1   : > { %v2433_v45 = vrot.slane %v2432_v25, 2  ;;  %v2458_v17 = vadd.f32 %v2457_v13, %v2456_v62 }
 0xaf3   : > { %v2434_v24 = vadd.f32 %v2433_v45, %v2432_v25  ;;  %v2459_v39 = vrot.slane %v2458_v17, 2 }
 0xaf5   : > { %v2435_v21 = vrot.slane %v2434_v24, 1  ;;  %v2460_v8 = vadd.f32 %v2459_v39, %v2458_v17 }
 0xaf7   : > { %v2436_v55 = vadd.f32 %v2435_v21, %v2434_v24  ;;  %v2461_v59 = vrot.slane %v2460_v8, 1 }
 0xaf9   : > { %v2474_v43 = vsel %vm487_vm0, %v2436_v55, 0.0  ;;  %v2462_v3 = vadd.f32 %v2461_v59, %v2460_v8 }
 0xafa   : > { %2477 = vadd.xlane.f32.xlu1 %v2474_v43 }
 0xafb   : > { %v2488_v30 = vsel %vm487_vm0, %v2462_v3, 0.0 }
 0xafc   : > { %2491 = vadd.xlane.f32.xlu2 %v2488_v30 }
 0xb14   : > { %2593 = vperm.xlu2 %4422, %v5704_v29  }
 0xb1c   : > { %v2390_v0 = vpop.f32.mrf.mxu3  ;;  %4425 = vset.pattern.permute.xlu2 %v4620_v49 }
 0xb1d   : > { %2617 = vperm.xlu2 %4425, %v5704_v29   ;;  %v2391_v26 = vadd.f32 %v2390_v0, %v2315_v33 }
 0xb1f   : > { %v2413_v27 = vmul.f32 %v5768_v48, %v2391_v26  ;;  %vm2404_vm3 = vcmp.gt.f32.partialorder %v2391_v26, 0.0 }
 0xb21   : > { %v5808_v1 = vsel %vm2404_vm3, %v2391_v26, %v2413_v27 }
 0xb22   : > { %v2447_v23 = vmul.f32 %v5808_v1, %v5808_v1 }
 0xb24   : > { %v2393_v50 = vpop.f32.mrf.mxu3 }
 0xb25   : > { %4427 = vset.pattern.permute.xlu2 %v4619_v36  ;;  %v2394_v28 = vadd.f32 %v2393_v50, %v2320_v16 }
 0xb26   : > { %2605 = vperm.xlu2 %4427, %v5733_v52  }
 0xb27   : > { %v2415_v32 = vmul.f32 %v5768_v48, %v2394_v28  ;;  %vm2406_vm2 = vcmp.gt.f32.partialorder %v2394_v28, 0.0 }
 0xb29   : > { %v5806_v7 = vsel %vm2406_vm2, %v2394_v28, %v2415_v32 }
 0xb2a   : > { %v2449_v33 = vmul.f32 %v5806_v7, %v5806_v7  ;;  %v2437_v42 = vadd.f32 %v5806_v7, %v5808_v1 }
 0xb2c   : > { %v2396_v54 = vpop.f32.mrf.mxu3  ;;  %v2463_v63 = vadd.f32 %v2449_v33, %v2447_v23 }
 0xb2d   : > { %v2397_v51 = vadd.f32 %v2396_v54, %v2325_v58 }
 0xb2e   : > { %4428 = vset.pattern.permute.xlu2 %v4620_v49 }
 0xb2f   : > { %v2417_v11 = vmul.f32 %v5768_v48, %v2397_v51  ;;  %2629 = vperm.xlu2 %4428, %v5733_v52   ;;  %vm2408_vm4 = vcmp.gt.f32.partialorder %v2397_v51, 0.0 }
 0xb31   : > { %v5810_v16 = vsel %vm2408_vm4, %v2397_v51, %v2417_v11 }
 0xb32   : > { %v2451_v44 = vmul.f32 %v5810_v16, %v5810_v16  ;;  %v2438_v56 = vadd.f32 %v2437_v42, %v5810_v16 }
 0xb34   : > { %v2399_v58 = vpop.f32.mrf.mxu3  ;;  %v2464_v12 = vadd.f32 %v2463_v63, %v2451_v44 }
 0xb35   : > { %v2400_v53 = vadd.f32 %v2399_v58, %v2330_v47 }
 0xb37   : > { %vm2410_vm13 = vcmp.gt.f32.partialorder %v2400_v53, 0.0  ;;  %v2419_v5 = vmul.f32 %v5768_v48, %v2400_v53  ;;  %4430 = vset.pattern.permute.xlu2 %v4621_v19 }
 0xb38   : > { %2709 = vperm.xlu2 %4430, %v5715_v9  }
 0xb39   : > { %v5824_v47 = vsel %vm2410_vm13, %v2400_v53, %v2419_v5 }
 0xb3a   : > { %v2439_v57 = vadd.f32 %v2438_v56, %v5824_v47  ;;  %v2453_v4 = vmul.f32 %v5824_v47, %v5824_v47 }
 0xb3c   : > { %v2440_v62 = vrot.slane %v2439_v57, 4  ;;  %v2465_v25 = vadd.f32 %v2464_v12, %v2453_v4 }
 0xb3e   : > { %v2441_v13 = vadd.f32 %v2440_v62, %v2439_v57  ;;  %v2466_v45 = vrot.slane %v2465_v25, 4 }
 0xb40   : > { %v2442_v48 = vrot.slane %v2441_v13, 2  ;;  %v2467_v17 = vadd.f32 %v2466_v45, %v2465_v25  ;;  %4432 = vset.pattern.permute.xlu2 %v4622_v20 }
 0xb41   : > { %2733 = vperm.xlu2 %4432, %v5715_v9  }
 0xb42   : > { %v2443_v24 = vadd.f32 %v2442_v48, %v2441_v13  ;;  %v2468_v39 = vrot.slane %v2467_v17, 2 }
 0xb44   : > { %v2444_v21 = vrot.slane %v2443_v24, 1  ;;  %v2469_v8 = vadd.f32 %v2468_v39, %v2467_v17 }
 0xb46   : > { %v2445_v55 = vadd.f32 %v2444_v21, %v2443_v24  ;;  %v2470_v59 = vrot.slane %v2469_v8, 1 }
 0xb48   : > { %v2527_v43 = vsel %vm487_vm0, %v2445_v55, 0.0  ;;  %v2471_v3 = vadd.f32 %v2470_v59, %v2469_v8 }
 0xb49   : > { %2529 = vadd.xlane.f32.xlu0 %v2527_v43  ;;  %2737 = vperm.xlu2 %4432, %v5710_v38  }
 0xb4a   : > { %v2541_v30 = vsel %vm487_vm0, %v2471_v3, 0.0 }
 0xb4b   : > { %2543 = vadd.xlane.f32.xlu1 %v2541_v30 }
 0xb51   : > { %4435 = vset.pattern.permute.xlu2 %v4621_v19 }
 0xb52   : > { %2717 = vperm.xlu2 %4435, %v5733_v52  }
 0xb5a   : > { %4437 = vset.pattern.permute.xlu2 %v4623_v35 }
 0xb5b   : > { %2773 = vperm.xlu2 %4437, %v5733_v52  }
 0xb5d   : > { %2601 = vperm.xlu0 %4424, %v5710_v38  }
 0xb63   : > { %4440 = vset.pattern.permute.xlu2 %v4624_v10 }
 0xb64   : > { %2597 = vperm.xlu1 %4423, %v5715_v9  }
 0xb65   : > { %4429 = vset.pattern.permute.xlu0 %v4621_v19 }
 0xb66   : > { %2705 = vperm.xlu0 %4429, %v5704_v29  }
 0xb6c   : > { %4426 = vset.pattern.permute.xlu1 %v4620_v49 }
 0xb6d   : > { %2621 = vperm.xlu1 %4426, %v5715_v9   ;;  %v2478_v0 = vpop.xlane.xlu1 %2477 }
 0xb6e   : > { %v2479_v50 = vrot.slane %v2478_v0, 4  ;;  %2713 = vperm.xlu0 %4429, %v5710_v38  }
 0xb6f   : > { %v2492_v28 = vpop.xlane.xlu2 %2491 }
 0xb70   : > { %v2480_v26 = vadd.f32 %v2479_v50, %v2478_v0  ;;  %v2493_v54 = vrot.slane %v2492_v28, 4 }
 0xb72   : > { %v2481_v32 = vrot.slane %v2480_v26, 2  ;;  %v2494_v51 = vadd.f32 %v2493_v54, %v2492_v28 }
 0xb74   : > { %v2495_v27 = vrot.slane %v2494_v51, 2  ;;  %v2482_v11 = vadd.f32 %v2481_v32, %v2480_v26 }
 0xb75   : > { %2625 = vperm.xlu1 %4426, %v5710_v38  }
 0xb76   : > { %v2483_v33 = vrot.slane %v2482_v11, 1  ;;  %v2496_v58 = vadd.f32 %v2495_v27, %v2494_v51  ;;  %4434 = vset.pattern.permute.xlu0 %v4623_v35 }
 0xb77   : > { %2765 = vperm.xlu0 %4434, %v5715_v9   ;;  %v5864_v30 = vpop.permute.xlu2 %2593 }
 0xb78   : > { %v2484_v53 = vadd.f32 %v2483_v33, %v2482_v11  ;;  %v2497_v23 = vrot.slane %v2496_v58, 1 }
 0xb7a   : > { %4252 = vpush %v2484_v53  ;;  %v2498_v42 = vadd.f32 %v2497_v23, %v2496_v58 }
 0xb7c   : > { %4254 = vpush %v2498_v42 }
 0xb7d   : > { %4431 = vset.pattern.permute.xlu1 %v4622_v20 }
 0xb7e   : > { %2729 = vperm.xlu1 %4431, %v5704_v29  }
 0xb7f   : > { %2769 = vperm.xlu0 %4434, %v5710_v38   ;;  %v5868_v50 = vpop.permute.xlu2 %2617 }
 0xb86   : > { %4433 = vset.pattern.permute.xlu1 %v4623_v35 }
 0xb87   : > { %2761 = vperm.xlu1 %4433, %v5704_v29   ;;  %4439 = vset.pattern.permute.xlu0 %v4624_v10  ;;  %v5872_v26 = vpop.permute.xlu2 %2605 }
 0xb8f   : > { %4436 = vset.pattern.permute.xlu1 %v4622_v20  ;;  %v5876_v32 = vpop.permute.xlu2 %2629 }
 0xb90   : > { %2741 = vperm.xlu1 %4436, %v5733_v52  }
 0xb97   : > { %v5881_v11 = vpop.permute.xlu2 %2709 }
 0xb98   : > { %4438 = vset.pattern.permute.xlu1 %v4624_v10 }
 0xb99   : > { %2793 = vperm.xlu1 %4438, %v5704_v29  }
 0xbab   : > { %s4253_s30 = spop %4252 }
 0xbac   : > { %s5859_s2 = smul.f32 0.00024414063, %s4253_s30 }
 0xbad   : > { %s4255_s18 = spop %4254 }
 0xbae   : > { %s2502_s27 = smul.f32 %s5859_s2, %s5859_s2  ;;  %v2518_v27 = vstv %s5859_s2 }
 0xbaf   : > { %s2501_s0 = smul.f32 0.00024414063, %s4255_s18  ;;  %v2576_v58 = vsub.f32 %v5775_v2, %v2518_v27  ;;  %v2578_v53 = vsub.f32 %v5773_v22, %v2518_v27  ;;  %v2582_v23 = vsub.f32 %v5789_v41, %v2518_v27  ;;  %v2580_v42 = vsub.f32 %v5777_v15, %v2518_v27 }
 0xbb1   : > { %s2503_s29 = ssub.f32 %s2501_s0, %s2502_s27 }
 0xbb3   : > { %s2504_s19 = smax.f32 %s6706_s16, %s2503_s29 }
 0xbb4   : > { %s2505_s21 = sadd.f32 1e-08, %s2504_s19  ;;  %s6707_s19 = smov 127  }
 0xbb6   : > { %v2506_v44 = vstv %s2505_s21 }
 0xbb7   : > { %4493 = vrsqrt.f32 %v2506_v44  ;;  %vm2513_vm15 = vweird.f32 %v2506_v44 }
 0xbbc   : > { %v2530_v5 = vpop.xlane.xlu0 %2529 }
 0xbbd   : > { %v4494_v63 = vpop.eup %4493  ;;  %v2531_v56 = vrot.slane %v2530_v5, 4 }
 0xbbe   : > { %v2508_v12 = vmul.f32 %v4494_v63, %v2506_v44  ;;  %v2544_v57 = vpop.xlane.xlu1 %2543  ;;  %vm2514_vm14 = vweird.f32 %v4494_v63 }
 0xbbf   : > { %v2532_v29 = vadd.f32 %v2531_v56, %v2530_v5  ;;  %v2545_v4 = vrot.slane %v2544_v57, 4  ;;  %vm2515_vm1 = vmor %vm2513_vm15, %vm2514_vm14 }
 0xbc0   : > { %v2509_v62 = vmul.f32 %v4494_v63, %v2508_v12 }
 0xbc1   : > { %v2533_v25 = vrot.slane %v2532_v29, 2  ;;  %v2546_v13 = vadd.f32 %v2545_v4, %v2544_v57 }
 0xbc2   : > { %v2510_v45 = vmul.f32 0.5, %v2509_v62 }
 0xbc3   : > { %v2547_v48 = vrot.slane %v2546_v13, 2  ;;  %v2534_v17 = vadd.f32 %v2533_v25, %v2532_v29 }
 0xbc4   : > { %v2511_v24 = vsub.f32 1.5, %v2510_v45 }
 0xbc5   : > { %v2535_v39 = vrot.slane %v2534_v17, 1  ;;  %v2548_v21 = vadd.f32 %v2547_v48, %v2546_v13  ;;  %v2734_v13 = vpop.permute.xlu2 %2733 }
 0xbc6   : > { %v2512_v8 = vmul.f32 %v4494_v63, %v2511_v24 }
 0xbc7   : > { %v2536_v55 = vadd.f32 %v2535_v39, %v2534_v17  ;;  %v2549_v59 = vrot.slane %v2548_v21, 1 }
 0xbc8   : > { %v2516_v43 = vsel %vm2515_vm1, %v4494_v63, %v2512_v8 }
 0xbc9   : > { %4256 = vpush %v2516_v43  ;;  %v2550_v3 = vadd.f32 %v2549_v59, %v2548_v21 }
 0xbca   : > { %4258 = vpush %v2536_v55 }
 0xbcb   : > { %4260 = vpush %v2550_v3 }
 0xbcf   : > { %v5889_v5 = vpop.permute.xlu0 %2601 }
 0xbd6   : > { %v5866_v0 = vpop.permute.xlu1 %2597 }
 0xbdf   : > { %v5870_v28 = vpop.permute.xlu1 %2621 }
 0xbe7   : > { %v5874_v54 = vpop.permute.xlu1 %2625 }
 0xbf0   : > { %v5878_v51 = vpop.permute.xlu1 %2729 }
 0xbf9   : > { %v5883_v33 = vpop.permute.xlu1 %2761 }
 0xbfa   : > { %s4257_s22 = spop %4256 }
 0xbfb   : > { %v2521_v44 = vstv %s4257_s22  ;;  %s4259_s20 = spop %4258 }
 0xbfc   : > { %v2584_v63 = vmul.f32 %v2576_v58, %v2521_v44  ;;  %v2586_v56 = vmul.f32 %v2578_v53, %v2521_v44  ;;  %v2590_v12 = vmul.f32 %v2582_v23, %v2521_v44  ;;  %s5891_s30 = smul.f32 0.00024414063, %s4259_s20  ;;  %s4261_s2 = spop %4260  ;;  %v2588_v57 = vmul.f32 %v2580_v42, %v2521_v44 }
 0xbfd   : > { %s2553_s18 = smul.f32 0.00024414063, %s4261_s2 }
 0xbfe   : > { %v2608_v2 = vmul.f32 %v5864_v30, %v2584_v63  ;;  %v2614_v22 = vmul.f32 %v5872_v26, %v2590_v12  ;;  %s2554_s27 = smul.f32 %s5891_s30, %s5891_s30  ;;  %v2612_v15 = vmul.f32 %v5889_v5, %v2588_v57  ;;  %v2610_v41 = vmul.f32 %v5866_v0, %v2586_v56 }
 0xbff   : > { %v2570_v27 = vstv %s5891_s30 }
 0xc00   : > { %s2555_s0 = ssub.f32 %s2553_s18, %s2554_s27  ;;  %v5900_v29 = vadd.f32 %v5874_v54, %v2612_v15  ;;  %v5903_v4 = vadd.f32 %v5868_v50, %v2608_v2  ;;  %v2638_v62 = vadd.f32 %v5876_v32, %v2614_v22  ;;  %v2634_v25 = vadd.f32 %v5870_v28, %v2610_v41 }
 0xc01   : > { %v2577_v58 = vsub.f32 %v5808_v1, %v2570_v27  ;;  %v2579_v53 = vsub.f32 %v5806_v7, %v2570_v27  ;;  %v2583_v23 = vsub.f32 %v5824_v47, %v2570_v27  ;;  %v2581_v12 = vsub.f32 %v5810_v16, %v2570_v27 }
 0xc02   : > { %s2556_s29 = smax.f32 %s6706_s16, %s2555_s0  ;;  %2640 = vrot.lane.b32.xlu1 %v5903_v4, %s4625_s17  ;;  %2676 = vrot.lane.b32.xlu2 %v5900_v29, %s6707_s19  ;;  %v2742_v45 = vpop.permute.xlu1 %2741  ;;  %v5915_v17 = vmul.f32 %v2734_v13, %v2634_v25 }
 0xc03   : > { %s2557_s21 = sadd.f32 1e-08, %s2556_s29  ;;  %2642 = vrot.lane.b32.xlu0 %v2634_v25, %s4625_s17  ;;  %v5913_v48 = vmul.f32 %v2742_v45, %v2638_v62 }
 0xc05   : > { %v2558_v24 = vstv %s2557_s21 }
 0xc06   : > { %4495 = vrsqrt.f32 %v2558_v24  ;;  %vm2565_vm3 = vweird.f32 %v2558_v24 }
 0xc0a   : > { %2672 = vrot.lane.b32.xlu1 %v5903_v4, %s6707_s19  ;;  %2678 = vrot.lane.b32.xlu2 %v2638_v62, %s6707_s19 }
 0xc0b   : > { %2644 = vrot.lane.b32.xlu0 %v5900_v29, %s4625_s17 }
 0xc0c   : > { %v4496_v39 = vpop.eup %4495 }
 0xc0d   : > { %v2560_v21 = vmul.f32 %v4496_v39, %v2558_v24  ;;  %vm2566_vm2 = vweird.f32 %v4496_v39 }
 0xc0e   : > { %vm2567_vm4 = vmor %vm2565_vm3, %vm2566_vm2 }
 0xc0f   : > { %v2561_v8 = vmul.f32 %v4496_v39, %v2560_v21 }
 0xc11   : > { %v2562_v55 = vmul.f32 0.5, %v2561_v8 }
 0xc12   : > { %2646 = vrot.lane.b32.xlu1 %v2638_v62, %s4625_s17  ;;  %v2794_v62 = vpop.permute.xlu1 %2793 }
 0xc13   : > { %2674 = vrot.lane.b32.xlu0 %v2634_v25, %s6707_s19  ;;  %v2563_v59 = vsub.f32 1.5, %v2562_v55 }
 0xc15   : > { %v2564_v43 = vmul.f32 %v4496_v39, %v2563_v59 }
 0xc17   : > { %v2568_v3 = vsel %vm2567_vm4, %v4496_v39, %v2564_v43 }
 0xc18   : > { %4262 = vpush %v2568_v3 }
 0xc49   : > { %s4263_s22 = spop %4262 }
 0xc4a   : > { %v2573_v42 = vstv %s4263_s22 }
 0xc4b   : > { %v2585_v44 = vmul.f32 %v2577_v58, %v2573_v42  ;;  %v2587_v63 = vmul.f32 %v2579_v53, %v2573_v42  ;;  %v2591_v56 = vmul.f32 %v2583_v23, %v2573_v42  ;;  %v2589_v15 = vmul.f32 %v2581_v12, %v2573_v42 }
 0xc4d   : > { %v2609_v57 = vmul.f32 %v5864_v30, %v2585_v44  ;;  %v2611_v2 = vmul.f32 %v5866_v0, %v2587_v63  ;;  %v2615_v22 = vmul.f32 %v5872_v26, %v2591_v56  ;;  %v2613_v30 = vmul.f32 %v5889_v5, %v2589_v15 }
 0xc4f   : > { %v2635_v41 = vadd.f32 %v5870_v28, %v2611_v2  ;;  %v2633_v1 = vadd.f32 %v5868_v50, %v2609_v57  ;;  %v2639_v7 = vadd.f32 %v5876_v32, %v2615_v22  ;;  %v5944_v0 = vadd.f32 %v5874_v54, %v2613_v30  ;;  %v5959_v50 = vpop.permute.xlu2 %2737 }
 0xc51   : > { %2650 = vrot.lane.b32.xlu1 %v2635_v41, %s4625_s17  ;;  %2648 = vrot.lane.b32.xlu2 %v2633_v1, %s4625_s17  ;;  %v5937_v47 = vmul.f32 %v2734_v13, %v2635_v41  ;;  %v5940_v16 = vmul.f32 %v2742_v45, %v2639_v7  ;;  %v2745_v30 = vmul.f32 %v5878_v51, %v2633_v1 }
 0xc52   : > { %2654 = vrot.lane.b32.xlu0 %v2639_v7, %s4625_s17 }
 0xc57   : > { %v5961_v28 = vpop.permute.xlu2 %2717 }
 0xc59   : > { %2682 = vrot.lane.b32.xlu1 %v2635_v41, %s6707_s19  ;;  %2652 = vrot.lane.b32.xlu2 %v5944_v0, %s4625_s17  ;;  %s4141_s17 = sld [smem:[#allocation6 + $0x2]] }
 0xc5a   : > { %2797 = vperm.xlu0 %4439, %v5715_v9   ;;  %v2706_v9 = vpop.permute.xlu0 %2705 }
 0xc5f   : > { %v5963_v54 = vpop.permute.xlu2 %2773 }
 0xc61   : > { %2684 = vrot.lane.b32.xlu1 %v5944_v0, %s6707_s19  ;;  %2680 = vrot.lane.b32.xlu2 %v2633_v1, %s6707_s19 }
 0xc62   : > { %4442 = vset.pattern.permute.xlu0 %v4620_v49  ;;  %v2714_v26 = vpop.permute.xlu0 %2713 }
 0xc67   : > { %v5965_v5 = vpop.permute.xlu2 %2676 }
 0xc69   : > { %2686 = vrot.lane.b32.xlu1 %v2639_v7, %s6707_s19  ;;  %2801 = vperm.xlu2 %4440, %v5710_v38   ;;  %v2744_v7 = vmul.f32 %v5878_v51, %v5903_v4 }
 0xc6a   : > { %v2766_v32 = vpop.permute.xlu0 %2765 }
 0xc6f   : > { %v5969_v38 = vpop.permute.xlu2 %2678 }
 0xc71   : > { %2805 = vperm.xlu1 %4438, %v5733_v52   ;;  %4443 = vset.pattern.permute.xlu2 %v4618_v6 }
 0xc72   : > { %v5967_v25 = vpop.permute.xlu0 %2769 }
 0xc74   : > { %v2641_v52 = vpop.permute.xlu1 %2640 }
 0xc79   : > { %4441 = vset.pattern.permute.xlu1 %v4620_v49 }
 0xc7a   : > { %v2643_v13 = vpop.permute.xlu0 %2642 }
 0xc7c   : > { %v2673_v24 = vpop.permute.xlu1 %2672 }
 0xc82   : > { %v2645_v39 = vpop.permute.xlu0 %2644 }
 0xc84   : > { %v2647_v8 = vpop.permute.xlu1 %2646 }
 0xc8a   : > { %v2675_v55 = vpop.permute.xlu0 %2674 }
 0xcab   : > { %v2649_v45 = vpop.permute.xlu2 %2648 }
 0xcac   : > { %v2656_v3 = vsel %vm1026_vm9, %v2641_v52, %v2649_v45  ;;  %v2660_v27 = vsel %vm1026_vm9, %v2649_v45, %v2641_v52 }
 0xcad   : > { %v2664_v44 = vsel %vm1006_vm10, %v2660_v27, 0.0  ;;  %v2665_v63 = vsel %vm1006_vm10, %v2656_v3, 0.0 }
 0xcae   : > { %v2720_v22 = vmul.f32 %v2706_v9, %v2664_v44  ;;  %v2721_v15 = vmul.f32 %v2706_v9, %v2665_v63 }
 0xcb0   : > { %v2752_v3 = vadd.f32 %v2744_v7, %v2720_v22 }
 0xcb3   : > { %v2653_v21 = vpop.permute.xlu2 %2652 }
 0xcb4   : > { %v2658_v4 = vsel %vm1026_vm9, %v2645_v39, %v2653_v21  ;;  %v2662_v51 = vsel %vm1026_vm9, %v2653_v21, %v2645_v39 }
 0xcb5   : > { %v2669_v39 = vsel %vm1006_vm10, %v2658_v4, 0.0 }
 0xcbb   : > { %v2681_v59 = vpop.permute.xlu2 %2680 }
 0xcbc   : > { %v2688_v23 = vsel %vm1008_vm11, %v2673_v24, %v2681_v59  ;;  %v2692_v42 = vsel %vm1008_vm11, %v2681_v59, %v2673_v24 }
 0xcbd   : > { %v2696_v57 = vsel %vm1008_vm11, %v2688_v23, 0.0  ;;  %v2697_v2 = vsel %vm1008_vm11, %v2692_v42, 0.0  ;;  %v2668_v23 = vsel %vm1006_vm10, %v2662_v51, 0.0 }
 0xcbe   : > { %v2776_v24 = vmul.f32 %v5883_v33, %v2696_v57  ;;  %v2777_v59 = vmul.f32 %v5883_v33, %v2697_v2  ;;  %v2753_v33 = vadd.f32 %v2745_v30, %v2721_v15  ;;  %v2725_v57 = vmul.f32 %v2714_v26, %v2669_v39 }
 0xcc0   : > { %v2784_v21 = vadd.f32 %v2776_v24, %v2752_v3  ;;  %v2785_v42 = vadd.f32 %v2777_v59, %v2753_v33 }
 0xcc2   : > { %v2809_v22 = vadd.f32 %v2794_v62, %v2785_v42 }
 0xcc3   : > { %v2651_v43 = vpop.permute.xlu1 %2650 }
 0xcc4   : > { %v2657_v58 = vsel %vm1026_vm9, %v2643_v13, %v2651_v43  ;;  %v2661_v53 = vsel %vm1026_vm9, %v2651_v43, %v2643_v13  ;;  %v2655_v41 = vpop.permute.xlu0 %2654  ;;  %vm2818_vm13 = vcmp.gt.f32.partialorder %v2809_v22, 0.0 }
 0xcc5   : > { %v2666_v56 = vsel %vm1006_vm10, %v2661_v53, 0.0  ;;  %v2667_v12 = vsel %vm1006_vm10, %v2657_v58, 0.0  ;;  %v2659_v15 = vsel %vm1026_vm9, %v2647_v8, %v2655_v41  ;;  %v2663_v7 = vsel %vm1026_vm9, %v2655_v41, %v2647_v8 }
 0xcc6   : > { %v2722_v52 = vmul.f32 %v5881_v11, %v2666_v56  ;;  %v2723_v13 = vmul.f32 %v5881_v11, %v2667_v12  ;;  %v2748_v12 = vmul.f32 %v5959_v50, %v5900_v29  ;;  %v2670_v8 = vsel %vm1006_vm10, %v2663_v7, 0.0 }
 0xcc7   : > { %v2671_v41 = vsel %vm1006_vm10, %v2659_v15, 0.0  ;;  %v2726_v3 = vmul.f32 %v5961_v28, %v2670_v8 }
 0xcc8   : > { %v2754_v53 = vadd.f32 %v5915_v17, %v2722_v52  ;;  %v2749_v17 = vmul.f32 %v5959_v50, %v5944_v0  ;;  %v2727_v33 = vmul.f32 %v5961_v28, %v2671_v41 }
 0xccb   : > { %v2683_v45 = vpop.permute.xlu1 %2682 }
 0xccc   : > { %v2689_v43 = vsel %vm1008_vm11, %v2675_v55, %v2683_v45  ;;  %v2693_v9 = vsel %vm1008_vm11, %v2683_v45, %v2675_v55  ;;  %v2755_v55 = vadd.f32 %v5937_v47, %v2723_v13  ;;  %v2798_v56 = vpop.permute.xlu0 %2797  ;;  %v2808_v47 = vadd.f32 %v2794_v62, %v2784_v21 }
 0xccd   : > { %v2698_v11 = vsel %vm1008_vm11, %v2689_v43, 0.0  ;;  %v2699_v1 = vsel %vm1008_vm11, %v2693_v9, 0.0  ;;  %v2825_v62 = vstv %s4141_s17  ;;  %v2757_v45 = vadd.f32 %v2749_v17, %v2725_v57  ;;  %v2802_v9 = vpop.permute.xlu2 %2801 }
 0xcce   : > { %v2778_v27 = vmul.f32 %v2766_v32, %v2698_v11  ;;  %v2779_v58 = vmul.f32 %v2766_v32, %v2699_v1  ;;  %v2724_v32 = vmul.f32 %v2714_v26, %v2668_v23  ;;  %vm2817_vm9 = vcmp.gt.f32.partialorder %v2808_v47, 0.0 }
 0xccf   : > { %v2826_v11 = vmul.f32 %v2825_v62, %v2808_v47  ;;  %v2827_v1 = vmul.f32 %v2825_v62, %v2809_v22  ;;  %v2759_v57 = vadd.f32 %v5940_v16, %v2727_v33 }
 0xcd0   : > { %v2786_v44 = vadd.f32 %v2778_v27, %v2754_v53  ;;  %v2787_v63 = vadd.f32 %v2779_v58, %v2755_v55  ;;  %v2756_v13 = vadd.f32 %v2748_v12, %v2724_v32  ;;  %v2758_v32 = vadd.f32 %v5913_v48, %v2726_v3 }
 0xcd1   : > { %v6066_v12 = vsel %vm2818_vm13, %v2809_v22, %v2827_v1 }
 0xcd2   : > { %v2810_v30 = vadd.f32 %v2798_v56, %v2786_v44  ;;  %v2811_v52 = vadd.f32 %v2798_v56, %v2787_v63  ;;  %v2861_v48 = vmul.f32 %v6066_v12, %v6066_v12 }
 0xcd3   : > { %v2685_v2 = vpop.permute.xlu1 %2684 }
 0xcd4   : > { %v2690_v29 = vsel %vm1008_vm11, %v5965_v5, %v2685_v2  ;;  %v2694_v26 = vsel %vm1008_vm11, %v2685_v2, %v5965_v5  ;;  %v2828_v5 = vmul.f32 %v2825_v62, %v2810_v30  ;;  %v2829_v43 = vmul.f32 %v2825_v62, %v2811_v52 }
 0xcd5   : > { %v2700_v0 = vsel %vm1008_vm11, %v2690_v29, 0.0  ;;  %v2701_v50 = vsel %vm1008_vm11, %v2694_v26, 0.0  ;;  %vm2819_vm14 = vcmp.gt.f32.partialorder %v2810_v30, 0.0  ;;  %vm2820_vm15 = vcmp.gt.f32.partialorder %v2811_v52, 0.0 }
 0xcd6   : > { %v2780_v24 = vmul.f32 %v5967_v25, %v2700_v0  ;;  %v2781_v59 = vmul.f32 %v5967_v25, %v2701_v50  ;;  %v6052_v23 = vsel %vm2819_vm14, %v2810_v30, %v2828_v5  ;;  %v6054_v39 = vsel %vm2820_vm15, %v2811_v52, %v2829_v43 }
 0xcd7   : > { %v2862_v2 = vmul.f32 %v6052_v23, %v6052_v23  ;;  %v2863_v17 = vmul.f32 %v6054_v39, %v6054_v39  ;;  %v2851_v50 = vadd.f32 %v6054_v39, %v6066_v12 }
 0xcd8   : > { %v2788_v4 = vadd.f32 %v2780_v24, %v2756_v13  ;;  %v2789_v51 = vadd.f32 %v2781_v59, %v2757_v45 }
 0xcd9   : > { %v2877_v45 = vadd.f32 %v2863_v17, %v2861_v48 }
 0xcda   : > { %v2812_v58 = vadd.f32 %v2802_v9, %v2788_v4  ;;  %v2813_v53 = vadd.f32 %v2802_v9, %v2789_v51 }
 0xcdb   : > { %v2687_v27 = vpop.permute.xlu1 %2686 }
 0xcdc   : > { %v2691_v25 = vsel %vm1008_vm11, %v5969_v38, %v2687_v27  ;;  %v2695_v55 = vsel %vm1008_vm11, %v2687_v27, %v5969_v38  ;;  %vm2821_vm10 = vcmp.gt.f32.partialorder %v2812_v58, 0.0  ;;  %vm2822_vm1 = vcmp.gt.f32.partialorder %v2813_v53, 0.0 }
 0xcdd   : > { %v2702_v21 = vsel %vm1008_vm11, %v2691_v25, 0.0  ;;  %v2703_v28 = vsel %vm1008_vm11, %v2695_v55, 0.0  ;;  %v2830_v42 = vmul.f32 %v2825_v62, %v2812_v58  ;;  %v2831_v44 = vmul.f32 %v2825_v62, %v2813_v53 }
 0xcde   : > { %v2782_v63 = vmul.f32 %v5963_v54, %v2702_v21  ;;  %v2783_v56 = vmul.f32 %v5963_v54, %v2703_v28  ;;  %v6063_v38 = vsel %vm2817_vm9, %v2808_v47, %v2826_v11 }
 0xcdf   : > { %v6074_v15 = vsel %vm2821_vm10, %v2812_v58, %v2830_v42  ;;  %v6076_v7 = vsel %vm2822_vm1, %v2813_v53, %v2831_v44  ;;  %v2860_v22 = vmul.f32 %v6063_v38, %v6063_v38  ;;  %v2842_v0 = vadd.f32 %v6052_v23, %v6063_v38 }
 0xce0   : > { %v2790_v54 = vadd.f32 %v2782_v63, %v2758_v32  ;;  %v2791_v47 = vadd.f32 %v2783_v56, %v2759_v57  ;;  %v2864_v16 = vmul.f32 %v6074_v15, %v6074_v15  ;;  %v2865_v52 = vmul.f32 %v6076_v7, %v6076_v7 }
 0xce1   : > { %v2868_v13 = vadd.f32 %v2862_v2, %v2860_v22  ;;  %v2843_v24 = vadd.f32 %v2842_v0, %v6074_v15  ;;  %v2852_v59 = vadd.f32 %v2851_v50, %v6076_v7 }
 0xce2   : > { %v2878_v43 = vadd.f32 %v2877_v45, %v2865_v52 }
 0xce3   : > { %v2806_v30 = vpop.permute.xlu1 %2805  ;;  %v2869_v5 = vadd.f32 %v2868_v13, %v2864_v16 }
 0xce4   : > { %v2814_v29 = vadd.f32 %v2806_v30, %v2790_v54  ;;  %v2815_v26 = vadd.f32 %v2806_v30, %v2791_v47 }
 0xce6   : > { %vm2823_vm11 = vcmp.gt.f32.partialorder %v2814_v29, 0.0  ;;  %vm2824_vm2 = vcmp.gt.f32.partialorder %v2815_v26, 0.0  ;;  %v2832_v8 = vmul.f32 %v2825_v62, %v2814_v29  ;;  %v2833_v41 = vmul.f32 %v2825_v62, %v2815_v26 }
 0xce8   : > { %v6092_v9 = vsel %vm2823_vm11, %v2814_v29, %v2832_v8  ;;  %v6094_v4 = vsel %vm2824_vm2, %v2815_v26, %v2833_v41  ;;  %v4511_v8 = vld [vmem:[%s6685_s6] sm:$0xff]  ;;  %v4512_v41 = vld [vmem:[%s6685_s6 + $0x8] sm:$0xff] }
 0xce9   : > { %v2844_v51 = vadd.f32 %v2843_v24, %v6092_v9  ;;  %v2866_v11 = vmul.f32 %v6092_v9, %v6092_v9  ;;  %v2867_v1 = vmul.f32 %v6094_v4, %v6094_v4  ;;  %v2853_v62 = vadd.f32 %v2852_v59, %v6094_v4 }
 0xceb   : > { %v2854_v3 = vrot.slane %v2853_v62, 4  ;;  %v2845_v33 = vrot.slane %v2844_v51, 4  ;;  %v2870_v27 = vadd.f32 %v2869_v5, %v2866_v11  ;;  %v2879_v58 = vadd.f32 %v2878_v43, %v2867_v1 }
 0xced   : > { %v2855_v53 = vadd.f32 %v2854_v3, %v2853_v62  ;;  %v2846_v25 = vadd.f32 %v2845_v33, %v2844_v51  ;;  %v2871_v55 = vrot.slane %v2870_v27, 4  ;;  %v2880_v21 = vrot.slane %v2879_v58, 4 }
 0xcef   : > { %v2856_v28 = vrot.slane %v2855_v53, 2  ;;  %v2847_v42 = vrot.slane %v2846_v25, 2  ;;  %v2872_v44 = vadd.f32 %v2871_v55, %v2870_v27  ;;  %v2881_v63 = vadd.f32 %v2880_v21, %v2879_v58  ;;  %v4114_v55 = vld [vmem:[%s6684_s5 + $0x30] sm:$0xff] }
 0xcf0   : > { %4118 = vmatmul.msk.f32.gmra.mxu0 %vm1410_vm12, %v4114_v55  ;;  %4122 = vmatmul.msk.f32.gmra.mxu1 %vm1410_vm12, %v4114_v55 }
 0xcf1   : > { %v2857_v56 = vadd.f32 %v2856_v28, %v2855_v53  ;;  %v2848_v32 = vadd.f32 %v2847_v42, %v2846_v25  ;;  %v2873_v57 = vrot.slane %v2872_v44, 2  ;;  %v2882_v2 = vrot.slane %v2881_v63, 2 }
 0xcf3   : > { %v2858_v17 = vrot.slane %v2857_v56, 1  ;;  %v2849_v54 = vrot.slane %v2848_v32, 1  ;;  %v2874_v47 = vadd.f32 %v2873_v57, %v2872_v44  ;;  %v2883_v22 = vadd.f32 %v2882_v2, %v2881_v63 }
 0xcf5   : > { %v2859_v48 = vadd.f32 %v2858_v17, %v2857_v56  ;;  %v2850_v30 = vadd.f32 %v2849_v54, %v2848_v32  ;;  %v2875_v16 = vrot.slane %v2874_v47, 1  ;;  %v2884_v0 = vrot.slane %v2883_v22, 1 }
 0xcf7   : > { %v2941_v52 = vsel %vm487_vm0, %v2859_v48, 0.0  ;;  %v2888_v29 = vsel %vm487_vm0, %v2850_v30, 0.0  ;;  %v2876_v26 = vadd.f32 %v2875_v16, %v2874_v47  ;;  %v2885_v13 = vadd.f32 %v2884_v0, %v2883_v22 }
 0xcf8   : > { %2943 = vadd.xlane.f32.xlu0 %v2941_v52  ;;  %2891 = vadd.xlane.f32.xlu2 %v2888_v29 }
 0xcf9   : > { %v2902_v50 = vsel %vm487_vm0, %v2876_v26, 0.0  ;;  %v2955_v45 = vsel %vm487_vm0, %v2885_v13, 0.0 }
 0xcfa   : > { %2905 = vadd.xlane.f32.xlu1 %v2902_v50 }
 0xd00   : > { %2957 = vadd.xlane.f32.xlu2 %v2955_v45  ;;  %v4115_v45 = vld [vmem:[%s6684_s5 + $0x38] sm:$0xff] }
 0xd01   : > { %4119 = vmatmul.msk.f32.gmra.mxu0 %vm1410_vm12, %v4115_v45  ;;  %4123 = vmatmul.msk.f32.gmra.mxu1 %vm1410_vm12, %v4115_v45 }
 0xd0c   : > { %3012 = vperm.xlu0 %4442, %v4511_v8  }
 0xd13   : > { %3016 = vperm.xlu1 %4441, %v4512_v41  }
 0xd14   : > { %4446 = vset.pattern.permute.xlu0 %v4619_v36 }
 0xd1b   : > { %4444 = vset.pattern.permute.xlu1 %v4618_v6 }
 0xd6b   : > { %v2892_v24 = vpop.xlane.xlu2 %2891  ;;  %v2944_v21 = vpop.xlane.xlu0 %2943 }
 0xd6c   : > { %v2893_v59 = vrot.slane %v2892_v24, 4  ;;  %v2945_v42 = vrot.slane %v2944_v21, 4 }
 0xd6d   : > { %v2906_v5 = vpop.xlane.xlu1 %2905 }
 0xd6e   : > { %v2894_v43 = vadd.f32 %v2893_v59, %v2892_v24  ;;  %v2907_v51 = vrot.slane %v2906_v5, 4  ;;  %v2946_v56 = vadd.f32 %v2945_v42, %v2944_v21 }
 0xd70   : > { %v2895_v11 = vrot.slane %v2894_v43, 2  ;;  %v2908_v1 = vadd.f32 %v2907_v51, %v2906_v5  ;;  %v2947_v57 = vrot.slane %v2946_v56, 2 }
 0xd72   : > { %v2909_v62 = vrot.slane %v2908_v1, 2  ;;  %v2896_v3 = vadd.f32 %v2895_v11, %v2894_v43  ;;  %v2948_v22 = vadd.f32 %v2947_v57, %v2946_v56 }
 0xd73   : > { %v2958_v28 = vpop.xlane.xlu2 %2957 }
 0xd74   : > { %v2897_v33 = vrot.slane %v2896_v3, 1  ;;  %v2910_v27 = vadd.f32 %v2909_v62, %v2908_v1  ;;  %v2959_v44 = vrot.slane %v2958_v28, 4  ;;  %v2949_v52 = vrot.slane %v2948_v22, 1 }
 0xd76   : > { %v2898_v58 = vadd.f32 %v2897_v33, %v2896_v3  ;;  %v2911_v53 = vrot.slane %v2910_v27, 1  ;;  %v2960_v32 = vadd.f32 %v2959_v44, %v2958_v28  ;;  %v2950_v50 = vadd.f32 %v2949_v52, %v2948_v22 }
 0xd78   : > { %4264 = vpush %v2898_v58  ;;  %v2912_v25 = vadd.f32 %v2911_v53, %v2910_v27  ;;  %v2961_v17 = vrot.slane %v2960_v32, 2 }
 0xd7a   : > { %4266 = vpush %v2912_v25  ;;  %v2962_v48 = vadd.f32 %v2961_v17, %v2960_v32 }
 0xd7c   : > { %v2963_v29 = vrot.slane %v2962_v48, 1 }
 0xd7e   : > { %v2964_v13 = vadd.f32 %v2963_v29, %v2962_v48  ;;  %v4158_v29 = vld [vmem:[%s6682_s3 + $0x60] sm:$0xff] }
 0xda9   : > { %s4265_s27 = spop %4264 }
 0xdaa   : > { %s6117_s19 = smul.f32 0.00024414063, %s4265_s27 }
 0xdab   : > { %s4267_s21 = spop %4266 }
 0xdac   : > { %s2916_s22 = smul.f32 %s6117_s19, %s6117_s19  ;;  %v2932_v8 = vstv %s6117_s19 }
 0xdad   : > { %s2915_s17 = smul.f32 0.00024414063, %s4267_s21  ;;  %v2996_v41 = vsub.f32 %v6092_v9, %v2932_v8  ;;  %v2994_v5 = vsub.f32 %v6074_v15, %v2932_v8  ;;  %v2992_v51 = vsub.f32 %v6052_v23, %v2932_v8  ;;  %v2990_v9 = vsub.f32 %v6063_v38, %v2932_v8  ;;  %v4142_v15 = vld [vmem:[%s6684_s5 + $0x40] sm:$0xff]  ;;  %v4143_v23 = vld [vmem:[%s6684_s5 + $0x48] sm:$0xff] }
 0xdaf   : > { %s2917_s20 = ssub.f32 %s2915_s17, %s2916_s22 }
 0xdb1   : > { %s2918_s30 = smax.f32 %s6706_s16, %s2917_s20 }
 0xdb2   : > { %s2919_s2 = sadd.f32 1e-08, %s2918_s30 }
 0xdb4   : > { %v2920_v63 = vstv %s2919_s2  ;;  %s4170_s2 = sld [smem:[#allocation3 + $0x3]] }
 0xdb5   : > { %4497 = vrsqrt.f32 %v2920_v63  ;;  %vm2927_vm4 = vweird.f32 %v2920_v63 }
 0xdbb   : > { %v4498_v2 = vpop.eup %4497 }
 0xdbc   : > { %v2922_v54 = vmul.f32 %v4498_v2, %v2920_v63  ;;  %vm2928_vm3 = vweird.f32 %v4498_v2 }
 0xdbd   : > { %vm2929_vm9 = vmor %vm2927_vm4, %vm2928_vm3 }
 0xdbe   : > { %v2923_v47 = vmul.f32 %v4498_v2, %v2922_v54  ;;  %v3013_v54 = vpop.permute.xlu0 %3012 }
 0xdc0   : > { %v2924_v30 = vmul.f32 0.5, %v2923_v47  ;;  %v3017_v47 = vpop.permute.xlu1 %3016 }
 0xdc2   : > { %v2925_v16 = vsub.f32 1.5, %v2924_v30 }
 0xdc4   : > { %v2926_v26 = vmul.f32 %v4498_v2, %v2925_v16 }
 0xdc6   : > { %v2930_v0 = vsel %vm2929_vm9, %v4498_v2, %v2926_v26  ;;  %v6178_v26 = vld [vmem:[%s6683_s4 + $0x78] sm:$0xff] }
 0xdc7   : > { %4268 = vpush %v2930_v0  ;;  %v6183_v0 = vld [vmem:[%s6683_s4 + $0x70] sm:$0xff] }
 0xdc8   : > { %4270 = vpush %v2950_v50  ;;  %v4161_v50 = vld [vmem:[%s6682_s3 + $0x78] sm:$0xff] }
 0xdc9   : > { %4272 = vpush %v2964_v13  ;;  %v6202_v13 = vpop.f32.mrf.mxu1 }
 0xdd1   : > { %v6204_v45 = vpop.f32.mrf.mxu1 }
 0xdf8   : > { %s4269_s0 = spop %4268 }
 0xdf9   : > { %v2935_v24 = vstv %s4269_s0  ;;  %s4271_s29 = spop %4270 }
 0xdfa   : > { %v3004_v59 = vmul.f32 %v2996_v41, %v2935_v24  ;;  %s6131_s21 = smul.f32 0.00024414063, %s4271_s29  ;;  %s4273_s22 = spop %4272  ;;  %v3002_v43 = vmul.f32 %v2994_v5, %v2935_v24  ;;  %v3000_v11 = vmul.f32 %v2992_v51, %v2935_v24  ;;  %v2998_v1 = vmul.f32 %v2990_v9, %v2935_v24 }
 0xdfb   : > { %s2967_s17 = smul.f32 0.00024414063, %s4273_s22 }
 0xdfc   : > { %s2968_s20 = smul.f32 %s6131_s21, %s6131_s21  ;;  %3051 = vmatpush.msrb.mxu0 %v3004_v59  ;;  %v2984_v55 = vstv %s6131_s21 }
 0xdfd   : > { %v2997_v21 = vsub.f32 %v6094_v4, %v2984_v55  ;;  %v2995_v44 = vsub.f32 %v6076_v7, %v2984_v55  ;;  %v2993_v56 = vsub.f32 %v6054_v39, %v2984_v55  ;;  %v2991_v57 = vsub.f32 %v6066_v12, %v2984_v55  ;;  %v6154_v4 = vpop.f32.mrf.mxu0  ;;  %v6161_v39 = vld [vmem:[%s6683_s4 + $0x68] sm:$0xff]  ;;  %v6166_v12 = vld [vmem:[%s6683_s4 + $0x60] sm:$0xff] }
 0xdfe   : > { %s2969_s19 = ssub.f32 %s2967_s17, %s2968_s20  ;;  %3052 = vmatpush.msrb.mxu0 %v3002_v43  ;;  %3122 = vperm.xlu1 %4444, %v6161_v39  }
 0xdff   : > { %3117 = vperm.xlu2 %4443, %v6166_v12  }
 0xe00   : > { %s2970_s30 = smax.f32 %s6706_s16, %s2969_s19  ;;  %3053 = vmatpush.msrb.mxu0 %v3000_v11 }
 0xe01   : > { %s2971_s27 = sadd.f32 1e-08, %s2970_s30 }
 0xe02   : > { %3054 = vmatpush.msrb.mxu0 %v2998_v1 }
 0xe03   : > { %v2972_v62 = vstv %s2971_s27  ;;  %4146 = vmatmul.msk.f32.vlgmr.msrb.gmra.mxu0 %vm1410_vm12, %v4142_v15 }
 0xe04   : > { %4499 = vrsqrt.f32 %v2972_v62  ;;  %vm2979_vm14 = vweird.f32 %v2972_v62 }
 0xe05   : > { %v6156_v17 = vpop.f32.mrf.mxu0 }
 0xe06   : > { %3132 = vperm.xlu1 %4444, %v6178_v26  }
 0xe07   : > { %3127 = vperm.xlu2 %4443, %v6183_v0  }
 0xe0a   : > { %v4500_v38 = vpop.eup %4499 }
 0xe0b   : > { %v2974_v3 = vmul.f32 %v4500_v38, %v2972_v62  ;;  %4147 = vmatmul.msk.f32.gmra.mxu0 %vm1410_vm12, %v4143_v23  ;;  %vm2980_vm13 = vweird.f32 %v4500_v38 }
 0xe0c   : > { %vm2981_vm15 = vmor %vm2979_vm14, %vm2980_vm13 }
 0xe0d   : > { %v2975_v33 = vmul.f32 %v4500_v38, %v2974_v3 }
 0xe0e   : > { %4445 = vset.pattern.permute.xlu1 %v4619_v36 }
 0xe0f   : > { %v2976_v27 = vmul.f32 0.5, %v2975_v33  ;;  %4447 = vset.pattern.permute.xlu2 %v4619_v36 }
 0xe11   : > { %v2977_v58 = vsub.f32 1.5, %v2976_v27 }
 0xe13   : > { %v2978_v53 = vmul.f32 %v4500_v38, %v2977_v58 }
 0xe15   : > { %v2982_v25 = vsel %vm2981_vm15, %v4500_v38, %v2978_v53 }
 0xe16   : > { %4274 = vpush %v2982_v25 }
 0xe47   : > { %s4275_s22 = spop %4274 }
 0xe48   : > { %v2987_v28 = vstv %s4275_s22 }
 0xe49   : > { %v3005_v42 = vmul.f32 %v2997_v21, %v2987_v28  ;;  %v3003_v63 = vmul.f32 %v2995_v44, %v2987_v28  ;;  %v3001_v32 = vmul.f32 %v2993_v56, %v2987_v28  ;;  %v2999_v2 = vmul.f32 %v2991_v57, %v2987_v28 }
 0xe4b   : > { %3080 = vmatpush.msrb.mxu1 %v3005_v42 }
 0xe4d   : > { %3081 = vmatpush.msrb.mxu1 %v3003_v63 }
 0xe4f   : > { %3082 = vmatpush.msrb.mxu1 %v3001_v32 }
 0xe51   : > { %3083 = vmatpush.msrb.mxu1 %v2999_v2 }
 0xe52   : > { %4150 = vmatmul.msk.f32.vlgmr.msrb.gmra.mxu1 %vm1410_vm12, %v4142_v15 }
 0xe59   : > { %v3118_v11 = vpop.permute.xlu2 %3117 }
 0xe5a   : > { %4151 = vmatmul.msk.f32.gmra.mxu1 %vm1410_vm12, %v4143_v23 }
 0xe70   : > { %v3123_v1 = vpop.permute.xlu1 %3122 }
 0xe78   : > { %v3133_v21 = vpop.permute.xlu1 %3132 }
 0xe80   : > { %v3056_v7 = vpop.f32.mrf.mxu0 }
 0xe81   : > { %v3057_v48 = vadd.f32 %v3056_v7, %v3013_v54 }
 0xe83   : > { %v3097_v52 = vadd.f32 %v3057_v48, %v5724_v14  ;;  %v4160_v14 = vld [vmem:[%s6682_s3 + $0x70] sm:$0xff] }
 0xe88   : > { %v3059_v22 = vpop.f32.mrf.mxu0 }
 0xe89   : > { %v3060_v30 = vadd.f32 %v3059_v22, %v3017_v47 }
 0xe8b   : > { %v3099_v16 = vadd.f32 %v3060_v30, %v5721_v40  ;;  %v4159_v40 = vld [vmem:[%s6682_s3 + $0x68] sm:$0xff] }
 0xe8d   : > { %3161 = vmatpush.msrb.mxu2 %v3099_v16 }
 0xe8f   : > { %3162 = vmatpush.msrb.mxu2 %v3097_v52 }
 0xe90   : > { %4162 = vmatmul.msk.f32.vlgmr.msrb.gmra.mxu2 %vm697_vm8, %v4158_v29 }
 0xe98   : > { %4163 = vmatmul.msk.f32.gmra.mxu2 %vm697_vm8, %v4159_v40 }
 0xea0   : > { %4164 = vmatmul.msk.f32.gmra.mxu2 %vm697_vm8, %v4160_v14 }
 0xea8   : > { %4165 = vmatmul.msk.f32.gmra.mxu2 %vm697_vm8, %v4161_v50 }
 0xecf   : > { %v3085_v8 = vpop.f32.mrf.mxu1 }
 0xed0   : > { %v3086_v24 = vadd.f32 %v3085_v8, %v3013_v54 }
 0xed2   : > { %v3098_v43 = vadd.f32 %v3086_v24, %v5760_v60  ;;  %v3128_v60 = vpop.permute.xlu2 %3127 }
 0xed7   : > { %v3088_v41 = vpop.f32.mrf.mxu1 }
 0xed8   : > { %v3089_v59 = vadd.f32 %v3088_v41, %v3017_v47 }
 0xeda   : > { %v3100_v5 = vadd.f32 %v3089_v59, %v5757_v18  ;;  %v6212_v18 = vstv %s4170_s2 }
 0xedc   : > { %3190 = vmatpush.msrb.mxu3 %v3100_v5 }
 0xede   : > { %3191 = vmatpush.msrb.mxu3 %v3098_v43 }
 0xedf   : > { %4166 = vmatmul.msk.f32.vlgmr.msrb.gmra.mxu3 %vm697_vm8, %v4158_v29 }
 0xee7   : > { %4167 = vmatmul.msk.f32.gmra.mxu3 %vm697_vm8, %v4159_v40 }
 0xeef   : > { %4168 = vmatmul.msk.f32.gmra.mxu3 %vm697_vm8, %v4160_v14 }
 0xef7   : > { %4169 = vmatmul.msk.f32.gmra.mxu3 %vm697_vm8, %v4161_v50 }
 0xf13   : > { %v3164_v51 = vpop.f32.mrf.mxu2 }
 0xf14   : > { %v3165_v62 = vadd.f32 %v3164_v51, %v3118_v11 }
 0xf16   : > { %v3215_v33 = vmul.f32 %v6212_v18, %v3165_v62  ;;  %vm3206_vm1 = vcmp.gt.f32.partialorder %v3165_v62, 0.0 }
 0xf18   : > { %v6219_v53 = vsel %vm3206_vm1, %v3165_v62, %v3215_v33 }
 0xf19   : > { %v3249_v44 = vmul.f32 %v6219_v53, %v6219_v53 }
 0xf1b   : > { %v3167_v9 = vpop.f32.mrf.mxu2 }
 0xf1c   : > { %v3168_v15 = vadd.f32 %v3167_v9, %v3123_v1 }
 0xf1e   : > { %v3217_v38 = vmul.f32 %v6212_v18, %v3168_v15  ;;  %vm3208_vm10 = vcmp.gt.f32.partialorder %v3168_v15, 0.0 }
 0xf20   : > { %v6217_v58 = vsel %vm3208_vm10, %v3168_v15, %v3217_v38 }
 0xf21   : > { %v3251_v55 = vmul.f32 %v6217_v58, %v6217_v58  ;;  %v3231_v63 = vadd.f32 %v6217_v58, %v6219_v53 }
 0xf23   : > { %v3170_v23 = vpop.f32.mrf.mxu2  ;;  %v3257_v57 = vadd.f32 %v3251_v55, %v3249_v44 }
 0xf24   : > { %v3171_v3 = vadd.f32 %v3170_v23, %v3128_v60 }
 0xf26   : > { %v3219_v27 = vmul.f32 %v6212_v18, %v3171_v3  ;;  %vm3210_vm11 = vcmp.gt.f32.partialorder %v3171_v3, 0.0 }
 0xf28   : > { %v6221_v25 = vsel %vm3210_vm11, %v3171_v3, %v3219_v27 }
 0xf29   : > { %v3253_v56 = vmul.f32 %v6221_v25, %v6221_v25  ;;  %v3232_v2 = vadd.f32 %v3231_v63, %v6221_v25 }
 0xf2b   : > { %v3173_v28 = vpop.f32.mrf.mxu2  ;;  %v3258_v54 = vadd.f32 %v3257_v57, %v3253_v56 }
 0xf2c   : > { %v3174_v42 = vadd.f32 %v3173_v28, %v3133_v21 }
 0xf2e   : > { %vm3212_vm2 = vcmp.gt.f32.partialorder %v3174_v42, 0.0  ;;  %v3221_v32 = vmul.f32 %v6212_v18, %v3174_v42 }
 0xf30   : > { %v6233_v7 = vsel %vm3212_vm2, %v3174_v42, %v3221_v32 }
 0xf31   : > { %v3233_v47 = vadd.f32 %v3232_v2, %v6233_v7  ;;  %v3255_v22 = vmul.f32 %v6233_v7, %v6233_v7 }
 0xf33   : > { %v3234_v48 = vrot.slane %v3233_v47, 4  ;;  %v3259_v30 = vadd.f32 %v3258_v54, %v3255_v22 }
 0xf35   : > { %v3235_v16 = vadd.f32 %v3234_v48, %v3233_v47  ;;  %v3260_v52 = vrot.slane %v3259_v30, 4 }
 0xf37   : > { %v3236_v29 = vrot.slane %v3235_v16, 2  ;;  %v3261_v40 = vadd.f32 %v3260_v52, %v3259_v30 }
 0xf39   : > { %v3237_v14 = vadd.f32 %v3236_v29, %v3235_v16  ;;  %v3262_v50 = vrot.slane %v3261_v40, 2 }
 0xf3b   : > { %v3238_v8 = vrot.slane %v3237_v14, 1  ;;  %v3263_v41 = vadd.f32 %v3262_v50, %v3261_v40 }
 0xf3d   : > { %v3239_v24 = vadd.f32 %v3238_v8, %v3237_v14  ;;  %v3264_v59 = vrot.slane %v3263_v41, 1 }
 0xf3f   : > { %v3277_v5 = vsel %vm487_vm0, %v3239_v24, 0.0  ;;  %v3265_v43 = vadd.f32 %v3264_v59, %v3263_v41 }
 0xf40   : > { %3280 = vadd.xlane.f32.xlu2 %v3277_v5 }
 0xf41   : > { %v3291_v51 = vsel %vm487_vm0, %v3265_v43, 0.0 }
 0xf42   : > { %3294 = vadd.xlane.f32.xlu1 %v3291_v51 }
 0xf5b   : > { %3396 = vperm.xlu1 %4445, %v6166_v12  }
 0xf62   : > { %v3193_v9 = vpop.f32.mrf.mxu3 }
 0xf63   : > { %4448 = vset.pattern.permute.xlu1 %v4620_v49  ;;  %v3194_v23 = vadd.f32 %v3193_v9, %v3118_v11 }
 0xf64   : > { %3420 = vperm.xlu1 %4448, %v6166_v12  }
 0xf65   : > { %v3216_v27 = vmul.f32 %v6212_v18, %v3194_v23  ;;  %vm3207_vm4 = vcmp.gt.f32.partialorder %v3194_v23, 0.0 }
 0xf67   : > { %v6252_v42 = vsel %vm3207_vm4, %v3194_v23, %v3216_v27 }
 0xf68   : > { %v3250_v63 = vmul.f32 %v6252_v42, %v6252_v42 }
 0xf6a   : > { %v3196_v15 = vpop.f32.mrf.mxu3 }
 0xf6b   : > { %v3197_v62 = vadd.f32 %v3196_v15, %v3123_v1 }
 0xf6c   : > { %4450 = vset.pattern.permute.xlu1 %v4619_v36 }
 0xf6d   : > { %3408 = vperm.xlu1 %4450, %v6178_v26   ;;  %v3218_v3 = vmul.f32 %v6212_v18, %v3197_v62  ;;  %vm3209_vm3 = vcmp.gt.f32.partialorder %v3197_v62, 0.0 }
 0xf6f   : > { %v6250_v28 = vsel %vm3209_vm3, %v3197_v62, %v3218_v3 }
 0xf70   : > { %v3252_v1 = vmul.f32 %v6250_v28, %v6250_v28  ;;  %v3240_v56 = vadd.f32 %v6250_v28, %v6252_v42 }
 0xf72   : > { %v3199_v38 = vpop.f32.mrf.mxu3  ;;  %v3266_v2 = vadd.f32 %v3252_v1, %v3250_v63 }
 0xf73   : > { %v3200_v33 = vadd.f32 %v3199_v38, %v3128_v60 }
 0xf75   : > { %v3220_v55 = vmul.f32 %v6212_v18, %v3200_v33  ;;  %4453 = vset.pattern.permute.xlu1 %v4621_v19  ;;  %vm3211_vm9 = vcmp.gt.f32.partialorder %v3200_v33, 0.0 }
 0xf76   : > { %3512 = vperm.xlu1 %4453, %v6161_v39  }
 0xf77   : > { %v6254_v11 = vsel %vm3211_vm9, %v3200_v33, %v3220_v55 }
 0xf78   : > { %v3254_v32 = vmul.f32 %v6254_v11, %v6254_v11  ;;  %v3241_v54 = vadd.f32 %v3240_v56, %v6254_v11 }
 0xf7a   : > { %v3202_v60 = vpop.f32.mrf.mxu3 }
 0xf7b   : > { %v3203_v44 = vadd.f32 %v3202_v60, %v3133_v21  ;;  %v3267_v21 = vadd.f32 %v3266_v2, %v3254_v32 }
 0xf7d   : > { %vm3213_vm13 = vcmp.gt.f32.partialorder %v3203_v44, 0.0  ;;  %v3222_v57 = vmul.f32 %v6212_v18, %v3203_v44 }
 0xf7e   : > { %4455 = vset.pattern.permute.xlu1 %v4622_v20 }
 0xf7f   : > { %v6267_v47 = vsel %vm3213_vm13, %v3203_v44, %v3222_v57  ;;  %3536 = vperm.xlu1 %4455, %v6161_v39  }
 0xf80   : > { %v3242_v22 = vadd.f32 %v3241_v54, %v6267_v47  ;;  %v3256_v48 = vmul.f32 %v6267_v47, %v6267_v47 }
 0xf82   : > { %v3268_v30 = vadd.f32 %v3267_v21, %v3256_v48  ;;  %v3243_v16 = vrot.slane %v3242_v22, 4 }
 0xf84   : > { %v3244_v52 = vadd.f32 %v3243_v16, %v3242_v22  ;;  %v3269_v29 = vrot.slane %v3268_v30, 4 }
 0xf86   : > { %v3245_v18 = vrot.slane %v3244_v52, 2  ;;  %v3270_v40 = vadd.f32 %v3269_v29, %v3268_v30 }
 0xf87   : > { %3540 = vperm.xlu1 %4455, %v6183_v0  }
 0xf88   : > { %v3246_v14 = vadd.f32 %v3245_v18, %v3244_v52  ;;  %v3271_v50 = vrot.slane %v3270_v40, 2 }
 0xf8a   : > { %v3247_v8 = vrot.slane %v3246_v14, 1  ;;  %v3272_v41 = vadd.f32 %v3271_v50, %v3270_v40 }
 0xf8c   : > { %v3248_v24 = vadd.f32 %v3247_v8, %v3246_v14  ;;  %v3273_v59 = vrot.slane %v3272_v41, 1 }
 0xf8e   : > { %v3330_v5 = vsel %vm487_vm0, %v3248_v24, 0.0  ;;  %v3274_v43 = vadd.f32 %v3273_v59, %v3272_v41 }
 0xf8f   : > { %3332 = vadd.xlane.f32.xlu0 %v3330_v5  ;;  %4458 = vset.pattern.permute.xlu1 %v4621_v19 }
 0xf90   : > { %v3344_v51 = vsel %vm487_vm0, %v3274_v43, 0.0  ;;  %3520 = vperm.xlu1 %4458, %v6178_v26  }
 0xf91   : > { %3346 = vadd.xlane.f32.xlu2 %v3344_v51 }
 0xf98   : > { %4460 = vset.pattern.permute.xlu1 %v4623_v35 }
 0xf99   : > { %3576 = vperm.xlu1 %4460, %v6178_v26  }
 0xfa1   : > { %4463 = vset.pattern.permute.xlu1 %v4624_v10 }
 0xfa3   : > { %3400 = vperm.xlu0 %4446, %v6161_v39  }
 0xfa9   : > { %3404 = vperm.xlu2 %4447, %v6183_v0  }
 0xfab   : > { %4451 = vset.pattern.permute.xlu0 %v4620_v49 }
 0xfac   : > { %3432 = vperm.xlu0 %4451, %v6178_v26  }
 0xfb1   : > { %4449 = vset.pattern.permute.xlu2 %v4620_v49 }
 0xfb2   : > { %3424 = vperm.xlu2 %4449, %v6161_v39  }
 0xfb3   : > { %v3281_v9 = vpop.xlane.xlu2 %3280 }
 0xfb4   : > { %v3282_v15 = vrot.slane %v3281_v9, 4  ;;  %4452 = vset.pattern.permute.xlu0 %v4621_v19 }
 0xfb5   : > { %v3295_v62 = vpop.xlane.xlu1 %3294  ;;  %3508 = vperm.xlu0 %4452, %v6166_v12  }
 0xfb6   : > { %v3283_v23 = vadd.f32 %v3282_v15, %v3281_v9  ;;  %v3296_v38 = vrot.slane %v3295_v62, 4 }
 0xfb8   : > { %v3284_v3 = vrot.slane %v3283_v23, 2  ;;  %v3297_v33 = vadd.f32 %v3296_v38, %v3295_v62 }
 0xfba   : > { %v3298_v27 = vrot.slane %v3297_v33, 2  ;;  %v3285_v55 = vadd.f32 %v3284_v3, %v3283_v23  ;;  %3428 = vperm.xlu2 %4449, %v6183_v0  }
 0xfbc   : > { %v3286_v1 = vrot.slane %v3285_v55, 1  ;;  %v3299_v60 = vadd.f32 %v3298_v27, %v3297_v33 }
 0xfbd   : > { %3516 = vperm.xlu0 %4452, %v6183_v0  }
 0xfbe   : > { %v3287_v44 = vadd.f32 %v3286_v1, %v3285_v55  ;;  %v3300_v63 = vrot.slane %v3299_v60, 1 }
 0xfc0   : > { %4276 = vpush %v3287_v44  ;;  %v3301_v56 = vadd.f32 %v3300_v63, %v3299_v60 }
 0xfc2   : > { %4278 = vpush %v3301_v56  ;;  %4454 = vset.pattern.permute.xlu2 %v4622_v20 }
 0xfc3   : > { %3532 = vperm.xlu2 %4454, %v6166_v12  }
 0xfc5   : > { %4457 = vset.pattern.permute.xlu0 %v4623_v35 }
 0xfc6   : > { %3568 = vperm.xlu0 %4457, %v6161_v39  }
 0xfcb   : > { %4456 = vset.pattern.permute.xlu2 %v4623_v35 }
 0xfcc   : > { %3564 = vperm.xlu2 %4456, %v6166_v12  }
 0xfcd   : > { %v6308_v59 = vpop.permute.xlu1 %3396 }
 0xfce   : > { %3572 = vperm.xlu0 %4457, %v6183_v0  }
 0xfd4   : > { %4459 = vset.pattern.permute.xlu2 %v4622_v20 }
 0xfd5   : > { %3544 = vperm.xlu2 %4459, %v6178_v26  }
 0xfd6   : > { %4462 = vset.pattern.permute.xlu0 %v4624_v10  ;;  %v6312_v43 = vpop.permute.xlu1 %3420 }
 0xfdd   : > { %4461 = vset.pattern.permute.xlu2 %v4624_v10 }
 0xfde   : > { %3596 = vperm.xlu2 %4461, %v6166_v12  }
 0xfdf   : > { %v6316_v9 = vpop.permute.xlu1 %3408 }
 0xfe8   : > { %v6320_v62 = vpop.permute.xlu1 %3512 }
 0xff1   : > { %s4277_s18 = spop %4276  ;;  %v6326_v3 = vpop.permute.xlu1 %3536 }
 0xff2   : > { %s6303_s27 = smul.f32 0.00024414063, %s4277_s18 }
 0xff3   : > { %s4279_s0 = spop %4278 }
 0xff4   : > { %s3305_s29 = smul.f32 %s6303_s27, %s6303_s27  ;;  %v3321_v27 = vstv %s6303_s27 }
 0xff5   : > { %s3304_s22 = smul.f32 0.00024414063, %s4279_s0  ;;  %v3379_v55 = vsub.f32 %v6219_v53, %v3321_v27  ;;  %v3381_v1 = vsub.f32 %v6217_v58, %v3321_v27  ;;  %v3383_v60 = vsub.f32 %v6221_v25, %v3321_v27  ;;  %v3385_v44 = vsub.f32 %v6233_v7, %v3321_v27 }
 0xff7   : > { %s3306_s21 = ssub.f32 %s3304_s22, %s3305_s29 }
 0xff9   : > { %s3307_s17 = smax.f32 %s6706_s16, %s3306_s21  ;;  %s6708_s21 = smov 2  }
 0xffa   : > { %s3308_s20 = sadd.f32 1e-08, %s3307_s17 }
 0xffc   : > { %v3309_v20 = vstv %s3308_s20  ;;  %s6709_s20 = smov 126  }
 0xffd   : > { %4501 = vrsqrt.f32 %v3309_v20  ;;  %vm3316_vm15 = vweird.f32 %v3309_v20 }
0x1002   : > { %v3333_v35 = vpop.xlane.xlu0 %3332 }
0x1003   : > { %v4502_v32 = vpop.eup %4501  ;;  %v3334_v57 = vrot.slane %v3333_v35, 4 }
0x1004   : > { %v3311_v10 = vmul.f32 %v4502_v32, %v3309_v20  ;;  %v3347_v2 = vpop.xlane.xlu2 %3346  ;;  %vm3317_vm14 = vweird.f32 %v4502_v32 }
0x1005   : > { %v3335_v12 = vadd.f32 %v3334_v57, %v3333_v35  ;;  %v3348_v54 = vrot.slane %v3347_v2, 4  ;;  %vm3318_vm10 = vmor %vm3316_vm15, %vm3317_vm14 }
0x1006   : > { %v3312_v21 = vmul.f32 %v4502_v32, %v3311_v10  ;;  %v3541_v10 = vpop.permute.xlu1 %3540 }
0x1007   : > { %v3336_v22 = vrot.slane %v3335_v12, 2  ;;  %v3349_v48 = vadd.f32 %v3348_v54, %v3347_v2 }
0x1008   : > { %v3313_v30 = vmul.f32 0.5, %v3312_v21 }
0x1009   : > { %v3350_v16 = vrot.slane %v3349_v48, 2  ;;  %v3337_v52 = vadd.f32 %v3336_v22, %v3335_v12 }
0x100a   : > { %v3314_v29 = vsub.f32 1.5, %v3313_v30 }
0x100b   : > { %v3338_v18 = vrot.slane %v3337_v52, 1  ;;  %v3351_v40 = vadd.f32 %v3350_v16, %v3349_v48 }
0x100c   : > { %v3315_v14 = vmul.f32 %v4502_v32, %v3314_v29  ;;  %v6310_v5 = vpop.permute.xlu2 %3404 }
0x100d   : > { %v3339_v50 = vadd.f32 %v3338_v18, %v3337_v52  ;;  %v3352_v8 = vrot.slane %v3351_v40, 1 }
0x100e   : > { %v3319_v41 = vsel %vm3318_vm10, %v4502_v32, %v3315_v14 }
0x100f   : > { %4280 = vpush %v3319_v41  ;;  %v3353_v24 = vadd.f32 %v3352_v8, %v3351_v40 }
0x1010   : > { %4282 = vpush %v3339_v50 }
0x1011   : > { %4284 = vpush %v3353_v24 }
0x1014   : > { %v6314_v51 = vpop.permute.xlu2 %3424 }
0x1015   : > { %v6324_v38 = vpop.permute.xlu0 %3400 }
0x101c   : > { %v6318_v15 = vpop.permute.xlu2 %3428 }
0x101e   : > { %v3433_v25 = vpop.permute.xlu0 %3432 }
0x1024   : > { %v6322_v23 = vpop.permute.xlu2 %3532 }
0x102c   : > { %v6328_v33 = vpop.permute.xlu2 %3564 }
0x1034   : > { %v3545_v12 = vpop.permute.xlu2 %3544 }
0x1040   : > { %s4281_s19 = spop %4280 }
0x1041   : > { %v3324_v63 = vstv %s4281_s19  ;;  %s4283_s30 = spop %4282 }
0x1042   : > { %v3387_v56 = vmul.f32 %v3379_v55, %v3324_v63  ;;  %v3389_v20 = vmul.f32 %v3381_v1, %v3324_v63  ;;  %v3391_v35 = vmul.f32 %v3383_v60, %v3324_v63  ;;  %v3393_v32 = vmul.f32 %v3385_v44, %v3324_v63  ;;  %s6335_s2 = smul.f32 0.00024414063, %s4283_s30  ;;  %s4285_s18 = spop %4284 }
0x1043   : > { %s3356_s27 = smul.f32 0.00024414063, %s4285_s18  ;;  %s6448_s30 = sld [smem:[#allocation6 + $0x3]] }
0x1044   : > { %v3411_v57 = vmul.f32 %v6308_v59, %v3387_v56  ;;  %v3413_v53 = vmul.f32 %v6324_v38, %v3389_v20  ;;  %v3415_v58 = vmul.f32 %v6310_v5, %v3391_v35  ;;  %s3357_s0 = smul.f32 %s6335_s2, %s6335_s2  ;;  %v3417_v7 = vmul.f32 %v6316_v9, %v3393_v32 }
0x1045   : > { %v3373_v41 = vstv %s6335_s2 }
0x1046   : > { %s3358_s29 = ssub.f32 %s3356_s27, %s3357_s0  ;;  %v3439_v2 = vadd.f32 %v6318_v15, %v3415_v58  ;;  %v6345_v54 = vadd.f32 %v6312_v43, %v3411_v57  ;;  %v6348_v21 = vadd.f32 %v6314_v51, %v3413_v53  ;;  %v3441_v22 = vadd.f32 %v3433_v25, %v3417_v7 }
0x1047   : > { %v3380_v24 = vsub.f32 %v6252_v42, %v3373_v41  ;;  %v3382_v27 = vsub.f32 %v6250_v28, %v3373_v41  ;;  %v3384_v55 = vsub.f32 %v6254_v11, %v3373_v41  ;;  %v3386_v1 = vsub.f32 %v6267_v47, %v3373_v41 }
0x1048   : > { %s3359_s22 = smax.f32 %s6706_s16, %s3358_s29  ;;  %v6351_v48 = vmul.f32 %v3541_v10, %v3439_v2  ;;  %3443 = vrot.lane.b32.xlu1 %v6345_v54, %s6708_s21  ;;  %3445 = vrot.lane.b32.xlu2 %v6348_v21, %s6708_s21  ;;  %v6357_v30 = vmul.f32 %v3545_v12, %v3441_v22 }
0x1049   : > { %s3360_s17 = sadd.f32 1e-08, %s3359_s22  ;;  %3447 = vrot.lane.b32.xlu0 %v3439_v2, %s6708_s21 }
0x104b   : > { %v3361_v16 = vstv %s3360_s17 }
0x104c   : > { %4503 = vrsqrt.f32 %v3361_v16  ;;  %vm3368_vm11 = vweird.f32 %v3361_v16 }
0x1050   : > { %3475 = vrot.lane.b32.xlu2 %v6345_v54, %s6709_s20  ;;  %3479 = vrot.lane.b32.xlu1 %v3439_v2, %s6709_s20 }
0x1051   : > { %3477 = vrot.lane.b32.xlu0 %v6348_v21, %s6709_s20 }
0x1052   : > { %v4504_v52 = vpop.eup %4503 }
0x1053   : > { %v3363_v29 = vmul.f32 %v4504_v52, %v3361_v16  ;;  %vm3369_vm1 = vweird.f32 %v4504_v52 }
0x1054   : > { %vm3370_vm2 = vmor %vm3368_vm11, %vm3369_vm1 }
0x1055   : > { %v3364_v18 = vmul.f32 %v4504_v52, %v3363_v29 }
0x1057   : > { %v3365_v40 = vmul.f32 0.5, %v3364_v18 }
0x1058   : > { %3449 = vrot.lane.b32.xlu2 %v3441_v22, %s6708_s21  ;;  %3481 = vrot.lane.b32.xlu1 %v3441_v22, %s6709_s20 }
0x1059   : > { %v3366_v14 = vsub.f32 1.5, %v3365_v40 }
0x105b   : > { %v3367_v50 = vmul.f32 %v4504_v52, %v3366_v14 }
0x105d   : > { %v3371_v8 = vsel %vm3370_vm2, %v4504_v52, %v3367_v50 }
0x105e   : > { %4286 = vpush %v3371_v8 }
0x108f   : > { %s4287_s19 = spop %4286 }
0x1090   : > { %v3376_v60 = vstv %s4287_s19 }
0x1091   : > { %v3388_v44 = vmul.f32 %v3380_v24, %v3376_v60  ;;  %v3390_v63 = vmul.f32 %v3382_v27, %v3376_v60  ;;  %v3392_v56 = vmul.f32 %v3384_v55, %v3376_v60  ;;  %v3394_v20 = vmul.f32 %v3386_v1, %v3376_v60 }
0x1093   : > { %v3412_v35 = vmul.f32 %v6308_v59, %v3388_v44  ;;  %v3414_v32 = vmul.f32 %v6324_v38, %v3390_v63  ;;  %v3416_v57 = vmul.f32 %v6310_v5, %v3392_v56  ;;  %v3418_v53 = vmul.f32 %v6316_v9, %v3394_v20  ;;  %v3521_v9 = vpop.permute.xlu1 %3520 }
0x1095   : > { %v6377_v42 = vadd.f32 %v6314_v51, %v3414_v32  ;;  %v6380_v28 = vadd.f32 %v6312_v43, %v3412_v35  ;;  %v3442_v11 = vadd.f32 %v3433_v25, %v3418_v53  ;;  %v3440_v47 = vadd.f32 %v6318_v15, %v3416_v57  ;;  %v6405_v43 = vpop.permute.xlu2 %3596 }
0x1097   : > { %3453 = vrot.lane.b32.xlu2 %v6377_v42, %s6708_s21  ;;  %3451 = vrot.lane.b32.xlu1 %v6380_v28, %s6708_s21  ;;  %v6387_v59 = vmul.f32 %v3545_v12, %v3442_v11  ;;  %v6390_v5 = vmul.f32 %v3541_v10, %v3440_v47 }
0x1098   : > { %3457 = vrot.lane.b32.xlu0 %v3442_v11, %s6708_s21 }
0x109b   : > { %v3577_v58 = vpop.permute.xlu1 %3576 }
0x109f   : > { %3485 = vrot.lane.b32.xlu2 %v6377_v42, %s6709_s20  ;;  %3455 = vrot.lane.b32.xlu1 %v3440_v47, %s6708_s21 }
0x10a0   : > { %3600 = vperm.xlu0 %4462, %v6161_v39   ;;  %v6407_v39 = vpop.permute.xlu0 %3508 }
0x10a2   : > { %v3446_v51 = vpop.permute.xlu2 %3445 }
0x10a7   : > { %3487 = vrot.lane.b32.xlu2 %v3440_v47, %s6709_s20  ;;  %3483 = vrot.lane.b32.xlu1 %v6380_v28, %s6709_s20 }
0x10a8   : > { %4465 = vset.pattern.permute.xlu0 %v4619_v36  ;;  %v6409_v15 = vpop.permute.xlu0 %3516 }
0x10aa   : > { %v6411_v38 = vpop.permute.xlu2 %3475 }
0x10af   : > { %3489 = vrot.lane.b32.xlu2 %v3442_v11, %s6709_s20  ;;  %3604 = vperm.xlu1 %4463, %v6183_v0  }
0x10b0   : > { %v3569_v25 = vpop.permute.xlu0 %3568 }
0x10b2   : > { %v3450_v7 = vpop.permute.xlu2 %3449 }
0x10b7   : > { %3608 = vperm.xlu2 %4461, %v6178_v26   ;;  %4466 = vset.pattern.permute.xlu1 %v4618_v6 }
0x10b8   : > { %v6413_v10 = vpop.permute.xlu0 %3572 }
0x10ba   : > { %v3444_v0 = vpop.permute.xlu1 %3443 }
0x10bf   : > { %4464 = vset.pattern.permute.xlu2 %v4618_v6 }
0x10c0   : > { %v3448_v12 = vpop.permute.xlu0 %3447 }
0x10c2   : > { %v3480_v2 = vpop.permute.xlu1 %3479 }
0x10c8   : > { %v3478_v52 = vpop.permute.xlu0 %3477 }
0x10ca   : > { %v3482_v16 = vpop.permute.xlu1 %3481 }
0x10f1   : > { %v3454_v26 = vpop.permute.xlu2 %3453 }
0x10f2   : > { %v3464_v18 = vsel %vm1843_vm5, %v3454_v26, %v3446_v51  ;;  %v3460_v14 = vsel %vm1843_vm5, %v3446_v51, %v3454_v26  ;;  %v3549_v51 = vmul.f32 %v6326_v3, %v6348_v21 }
0x10f3   : > { %v3469_v8 = vsel %vm1823_vm7, %v3464_v18, 0.0  ;;  %v3470_v63 = vsel %vm1823_vm7, %v3460_v14, 0.0  ;;  %v3550_v18 = vmul.f32 %v6326_v3, %v6377_v42  ;;  %v3547_v42 = vmul.f32 %v6322_v23, %v6345_v54 }
0x10f4   : > { %v3525_v56 = vmul.f32 %v6320_v62, %v3469_v8 }
0x10f6   : > { %v3557_v21 = vadd.f32 %v3549_v51, %v3525_v56  ;;  %v3548_v56 = vmul.f32 %v6322_v23, %v6380_v28 }
0x10f9   : > { %v3486_v22 = vpop.permute.xlu2 %3485 }
0x10fa   : > { %v3492_v41 = vsel %vm1825_vm6, %v3478_v52, %v3486_v22  ;;  %v3496_v55 = vsel %vm1825_vm6, %v3486_v22, %v3478_v52 }
0x10fb   : > { %v3501_v20 = vsel %vm1825_vm6, %v3492_v41, 0.0  ;;  %v3502_v35 = vsel %vm1825_vm6, %v3496_v55, 0.0 }
0x10fc   : > { %v3581_v26 = vmul.f32 %v3569_v25, %v3501_v20  ;;  %v3582_v14 = vmul.f32 %v3569_v25, %v3502_v35  ;;  %v3628_v20 = vstv %s6448_s30 }
0x10fe   : > { %v3589_v55 = vadd.f32 %v3581_v26, %v3557_v21 }
0x1101   : > { %v3488_v29 = vpop.permute.xlu2 %3487 }
0x1102   : > { %v3493_v8 = vsel %vm1825_vm6, %v3480_v2, %v3488_v29  ;;  %v3497_v54 = vsel %vm1825_vm6, %v3488_v29, %v3480_v2 }
0x1109   : > { %v3452_v40 = vpop.permute.xlu1 %3451  ;;  %v3490_v60 = vpop.permute.xlu2 %3489 }
0x110a   : > { %v3458_v50 = vpop.permute.xlu0 %3457  ;;  %v3463_v32 = vsel %vm1843_vm5, %v3452_v40, %v3444_v0  ;;  %v3494_v53 = vsel %vm1825_vm6, %v3482_v16, %v3490_v60  ;;  %v3498_v47 = vsel %vm1825_vm6, %v3490_v60, %v3482_v16  ;;  %v3459_v22 = vsel %vm1843_vm5, %v3444_v0, %v3452_v40 }
0x110b   : > { %v3462_v24 = vsel %vm1843_vm5, %v3450_v7, %v3458_v50  ;;  %v3466_v27 = vsel %vm1843_vm5, %v3458_v50, %v3450_v7  ;;  %v3526_v7 = vmul.f32 %v6320_v62, %v3470_v63  ;;  %v3505_v16 = vsel %vm1825_vm6, %v3494_v53, 0.0 }
0x110c   : > { %v3473_v1 = vsel %vm1823_vm7, %v3466_v27, 0.0  ;;  %v3474_v44 = vsel %vm1823_vm7, %v3462_v24, 0.0  ;;  %v3506_v50 = vsel %vm1825_vm6, %v3498_v47, 0.0  ;;  %v3468_v3 = vsel %vm1823_vm7, %v3459_v22, 0.0 }
0x110d   : > { %v3529_v57 = vmul.f32 %v3521_v9, %v3473_v1  ;;  %v3530_v11 = vmul.f32 %v3521_v9, %v3474_v44  ;;  %v3467_v9 = vsel %vm1823_vm7, %v3463_v32, 0.0  ;;  %v3585_v41 = vmul.f32 %v3577_v58, %v3505_v16 }
0x110e   : > { %v3558_v27 = vadd.f32 %v3550_v18, %v3526_v7  ;;  %v3586_v1 = vmul.f32 %v3577_v58, %v3506_v50 }
0x110f   : > { %v3561_v40 = vadd.f32 %v6357_v30, %v3529_v57  ;;  %v3562_v25 = vadd.f32 %v6387_v59, %v3530_v11  ;;  %v3524_v59 = vmul.f32 %v6407_v39, %v3468_v3  ;;  %v3503_v57 = vsel %vm1825_vm6, %v3493_v8, 0.0 }
0x1110   : > { %v3590_v44 = vadd.f32 %v3582_v14, %v3558_v27 }
0x1111   : > { %v3456_v52 = vpop.permute.xlu1 %3455  ;;  %v3593_v63 = vadd.f32 %v3585_v41, %v3561_v40  ;;  %v3594_v32 = vadd.f32 %v3586_v1, %v3562_v25  ;;  %v3609_v58 = vpop.permute.xlu2 %3608  ;;  %v3556_v51 = vadd.f32 %v3548_v56, %v3524_v59 }
0x1112   : > { %v3461_v62 = vsel %vm1843_vm5, %v3448_v12, %v3456_v52  ;;  %v3465_v0 = vsel %vm1843_vm5, %v3456_v52, %v3448_v12  ;;  %v3601_v24 = vpop.permute.xlu0 %3600  ;;  %v3523_v12 = vmul.f32 %v6407_v39, %v3467_v9  ;;  %v3504_v39 = vsel %vm1825_vm6, %v3497_v54, 0.0  ;;  %v4144_v9 = vld [vmem:[%s6684_s5 + $0x50] sm:$0xff] }
0x1113   : > { %v3471_v30 = vsel %vm1823_vm7, %v3465_v0, 0.0  ;;  %v3472_v60 = vsel %vm1823_vm7, %v3461_v62, 0.0  ;;  %v3613_v35 = vadd.f32 %v3601_v24, %v3589_v55  ;;  %v3614_v47 = vadd.f32 %v3601_v24, %v3590_v44  ;;  %4148 = vmatmul.msk.f32.gmra.mxu0 %vm1410_vm12, %v4144_v9  ;;  %4152 = vmatmul.msk.f32.gmra.mxu1 %vm1410_vm12, %v4144_v9 }
0x1114   : > { %v3527_v53 = vmul.f32 %v6409_v15, %v3471_v30  ;;  %v3528_v11 = vmul.f32 %v6409_v15, %v3472_v60  ;;  %v3555_v29 = vadd.f32 %v3547_v42, %v3523_v12  ;;  %v3617_v7 = vadd.f32 %v3609_v58, %v3593_v63 }
0x1115   : > { %v3631_v22 = vmul.f32 %v3628_v20, %v3613_v35  ;;  %v3618_v52 = vadd.f32 %v3609_v58, %v3594_v32  ;;  %v3632_v16 = vmul.f32 %v3628_v20, %v3614_v47  ;;  %vm3622_vm5 = vcmp.gt.f32.partialorder %v3613_v35, 0.0 }
0x1116   : > { %v3560_v21 = vadd.f32 %v6390_v5, %v3528_v11  ;;  %v3583_v62 = vmul.f32 %v6413_v10, %v3503_v57  ;;  %vm3626_vm7 = vcmp.gt.f32.partialorder %v3617_v7, 0.0  ;;  %v3635_v24 = vmul.f32 %v3628_v20, %v3617_v7 }
0x1117   : > { %vm3627_vm3 = vcmp.gt.f32.partialorder %v3618_v52, 0.0  ;;  %v6513_v40 = vsel %vm3622_vm5, %v3613_v35, %v3631_v22  ;;  %v3636_v27 = vmul.f32 %v3628_v20, %v3618_v52 }
0x1118   : > { %v6539_v32 = vsel %vm3626_vm7, %v3617_v7, %v3635_v24 }
0x1119   : > { %v3484_v2 = vpop.permute.xlu1 %3483 }
0x111a   : > { %v3491_v23 = vsel %vm1825_vm6, %v6411_v38, %v3484_v2  ;;  %v3495_v28 = vsel %vm1825_vm6, %v3484_v2, %v6411_v38  ;;  %v3559_v38 = vadd.f32 %v6351_v48, %v3527_v53 }
0x111b   : > { %v3499_v26 = vsel %vm1825_vm6, %v3491_v23, 0.0  ;;  %v3500_v15 = vsel %vm1825_vm6, %v3495_v28, 0.0  ;;  %vm3623_vm6 = vcmp.gt.f32.partialorder %v3614_v47, 0.0 }
0x111c   : > { %v3579_v18 = vmul.f32 %v6328_v33, %v3499_v26  ;;  %v3580_v14 = vmul.f32 %v6328_v33, %v3500_v15  ;;  %v3584_v33 = vmul.f32 %v6413_v10, %v3504_v39  ;;  %v6515_v5 = vsel %vm3623_vm6, %v3614_v47, %v3632_v16  ;;  %v4145_v10 = vld [vmem:[%s6684_s5 + $0x58] sm:$0xff] }
0x111d   : > { %v3591_v42 = vadd.f32 %v3583_v62, %v3559_v38  ;;  %v3666_v1 = vmul.f32 %v6515_v5, %v6515_v5  ;;  %4149 = vmatmul.msk.f32.gmra.mxu0 %vm1410_vm12, %v4145_v10  ;;  %4153 = vmatmul.msk.f32.gmra.mxu1 %vm1410_vm12, %v4145_v10 }
0x111e   : > { %v3587_v46 = vadd.f32 %v3579_v18, %v3555_v29  ;;  %v3588_v50 = vadd.f32 %v3580_v14, %v3556_v51  ;;  %v3592_v25 = vadd.f32 %v3584_v33, %v3560_v21  ;;  %v3669_v51 = vmul.f32 %v6539_v32, %v6539_v32 }
0x1120   : > { %v3611_v0 = vadd.f32 %v6405_v43, %v3587_v46  ;;  %v3612_v48 = vadd.f32 %v6405_v43, %v3588_v50  ;;  %v3665_v43 = vmul.f32 %v6513_v40, %v6513_v40 }
0x1121   : > { %v3605_v3 = vpop.permute.xlu1 %3604 }
0x1122   : > { %vm3620_vm4 = vcmp.gt.f32.partialorder %v3611_v0, 0.0  ;;  %vm3621_vm9 = vcmp.gt.f32.partialorder %v3612_v48, 0.0  ;;  %v3629_v8 = vmul.f32 %v3628_v20, %v3611_v0  ;;  %v3630_v41 = vmul.f32 %v3628_v20, %v3612_v48 }
0x1123   : > { %v3615_v55 = vadd.f32 %v3605_v3, %v3591_v42  ;;  %v3616_v12 = vadd.f32 %v3605_v3, %v3592_v25 }
0x1124   : > { %v6524_v30 = vsel %vm3620_vm4, %v3611_v0, %v3629_v8  ;;  %v6526_v60 = vsel %vm3621_vm9, %v3612_v48, %v3630_v41 }
0x1125   : > { %vm3624_vm13 = vcmp.gt.f32.partialorder %v3615_v55, 0.0  ;;  %vm3625_vm14 = vcmp.gt.f32.partialorder %v3616_v12, 0.0  ;;  %v3633_v54 = vmul.f32 %v3628_v20, %v3615_v55  ;;  %v3634_v59 = vmul.f32 %v3628_v20, %v3616_v12 }
0x1126   : > { %v3645_v44 = vadd.f32 %v6513_v40, %v6524_v30  ;;  %v3654_v63 = vadd.f32 %v6515_v5, %v6526_v60  ;;  %v3663_v56 = vmul.f32 %v6524_v30, %v6524_v30  ;;  %v3664_v35 = vmul.f32 %v6526_v60, %v6526_v60 }
0x1127   : > { %v6542_v20 = vsel %vm3627_vm3, %v3618_v52, %v3636_v27  ;;  %v6544_v58 = vsel %vm3624_vm13, %v3615_v55, %v3633_v54  ;;  %v6546_v57 = vsel %vm3625_vm14, %v3616_v12, %v3634_v59 }
0x1128   : > { %v3646_v53 = vadd.f32 %v3645_v44, %v6544_v58  ;;  %v3655_v11 = vadd.f32 %v3654_v63, %v6546_v57  ;;  %v3667_v47 = vmul.f32 %v6544_v58, %v6544_v58  ;;  %v3668_v2 = vmul.f32 %v6546_v57, %v6546_v57 }
0x1129   : > { %v3671_v39 = vadd.f32 %v3665_v43, %v3663_v56  ;;  %v3680_v29 = vadd.f32 %v3666_v1, %v3664_v35  ;;  %v3670_v7 = vmul.f32 %v6542_v20, %v6542_v20  ;;  %v668_v56 = vld [vmem:[%s6685_s6 + $0x18] sm:$0xff]  ;;  %v667_v35 = vld [vmem:[%s6685_s6 + $0x10] sm:$0xff] }
0x112a   : > { %v3656_v23 = vadd.f32 %v3655_v11, %v6542_v20  ;;  %v3647_v28 = vadd.f32 %v3646_v53, %v6539_v32 }
0x112b   : > { %v3672_v26 = vadd.f32 %v3671_v39, %v3667_v47  ;;  %v3681_v15 = vadd.f32 %v3680_v29, %v3668_v2 }
0x112c   : > { %v3657_v22 = vrot.slane %v3656_v23, 4  ;;  %v3648_v52 = vrot.slane %v3647_v28, 4 }
0x112d   : > { %v3673_v18 = vadd.f32 %v3672_v26, %v3669_v51  ;;  %v3682_v14 = vadd.f32 %v3681_v15, %v3670_v7 }
0x112e   : > { %v3658_v9 = vadd.f32 %v3657_v22, %v3656_v23  ;;  %v3649_v16 = vadd.f32 %v3648_v52, %v3647_v28 }
0x112f   : > { %v3674_v38 = vrot.slane %v3673_v18, 4  ;;  %v3683_v21 = vrot.slane %v3682_v14, 4 }
0x1130   : > { %v3659_v46 = vrot.slane %v3658_v9, 2  ;;  %v3650_v50 = vrot.slane %v3649_v16, 2 }
0x1131   : > { %v3675_v62 = vadd.f32 %v3674_v38, %v3673_v18  ;;  %v3684_v33 = vadd.f32 %v3683_v21, %v3682_v14 }
0x1132   : > { %v3660_v0 = vadd.f32 %v3659_v46, %v3658_v9  ;;  %v3651_v48 = vadd.f32 %v3650_v50, %v3649_v16 }
0x1133   : > { %v3676_v3 = vrot.slane %v3675_v62, 2  ;;  %v3685_v42 = vrot.slane %v3684_v33, 2 }
0x1134   : > { %v3661_v25 = vrot.slane %v3660_v0, 1  ;;  %v3652_v8 = vrot.slane %v3651_v48, 1 }
0x1135   : > { %v3677_v41 = vadd.f32 %v3676_v3, %v3675_v62  ;;  %v3686_v10 = vadd.f32 %v3685_v42, %v3684_v33 }
0x1136   : > { %v3662_v24 = vadd.f32 %v3661_v25, %v3660_v0  ;;  %v3653_v27 = vadd.f32 %v3652_v8, %v3651_v48 }
0x1137   : > { %v3678_v55 = vrot.slane %v3677_v41, 1  ;;  %v3687_v1 = vrot.slane %v3686_v10, 1 }
0x1138   : > { %v3744_v12 = vsel %vm487_vm0, %v3662_v24, 0.0  ;;  %v3691_v43 = vsel %vm487_vm0, %v3653_v27, 0.0 }
0x1139   : > { %3746 = vadd.xlane.f32.xlu0 %v3744_v12  ;;  %3694 = vadd.xlane.f32.xlu1 %v3691_v43  ;;  %v3679_v54 = vadd.f32 %v3678_v55, %v3677_v41  ;;  %v3688_v44 = vadd.f32 %v3687_v1, %v3686_v10 }
0x113b   : > { %v3705_v59 = vsel %vm487_vm0, %v3679_v54, 0.0  ;;  %v3758_v63 = vsel %vm487_vm0, %v3688_v44, 0.0 }
0x113c   : > { %3708 = vadd.xlane.f32.xlu2 %v3705_v59 }
0x1141   : > { %3760 = vadd.xlane.f32.xlu1 %v3758_v63 }
0x114d   : > { %2221 = vperm.xlu0 %4465, %v668_v56  }
0x1154   : > { %1407 = vperm.xlu2 %4464, %v668_v56  }
0x1155   : > { %4472 = vset.pattern.permute.xlu0 %v4618_v6 }
0x115a   : > { %1402 = vperm.xlu1 %4466, %v667_v35  }
0x115c   : > { %4467 = vset.pattern.permute.xlu2 %v4619_v36 }
0x115d   : > { %2217 = vperm.xlu2 %4467, %v667_v35  }
0x1162   : > { %4469 = vset.pattern.permute.xlu1 %v4620_v49 }
0x1163   : > { %3020 = vperm.xlu1 %4469, %v667_v35  }
0x1165   : > { %4468 = vset.pattern.permute.xlu2 %v4620_v49 }
0x1166   : > { %3024 = vperm.xlu2 %4468, %v668_v56  }
0x116b   : > { %4471 = vset.pattern.permute.xlu1 %v4621_v19 }
0x116c   : > { %3821 = vperm.xlu1 %4471, %v667_v35  }
0x116e   : > { %4470 = vset.pattern.permute.xlu2 %v4621_v19 }
0x116f   : > { %3825 = vperm.xlu2 %4470, %v668_v56  }
0x11ac   : > { %v3695_v6 = vpop.xlane.xlu1 %3694  ;;  %v3747_v16 = vpop.xlane.xlu0 %3746 }
0x11ad   : > { %v3696_v53 = vrot.slane %v3695_v6, 4  ;;  %v3748_v38 = vrot.slane %v3747_v16, 4 }
0x11af   : > { %v3697_v11 = vadd.f32 %v3696_v53, %v3695_v6  ;;  %v3709_v47 = vpop.xlane.xlu2 %3708 }
0x11b0   : > { %v3710_v2 = vrot.slane %v3709_v47, 4 }
0x11b1   : > { %v3698_v39 = vrot.slane %v3697_v11, 2 }
0x11b2   : > { %v3711_v36 = vadd.f32 %v3710_v2, %v3709_v47 }
0x11b3   : > { %v3699_v29 = vadd.f32 %v3698_v39, %v3697_v11  ;;  %v4174_v39 = vld [vmem:[%s6684_s5 + $0x70] sm:$0xff] }
0x11b4   : > { %v3712_v23 = vrot.slane %v3711_v36, 2  ;;  %v3761_v19 = vpop.xlane.xlu1 %3760 }
0x11b5   : > { %v3700_v28 = vrot.slane %v3699_v29, 1 }
0x11b6   : > { %v3713_v51 = vadd.f32 %v3712_v23, %v3711_v36 }
0x11b7   : > { %v3701_v7 = vadd.f32 %v3700_v28, %v3699_v29  ;;  %v6576_v15 = vpop.permute.xlu2 %1407  ;;  %v4175_v28 = vld [vmem:[%s6684_s5 + $0x78] sm:$0xff] }
0x11b8   : > { %v3714_v49 = vrot.slane %v3713_v51, 1 }
0x11b9   : > { %4288 = vpush %v3701_v7 }
0x11ba   : > { %v3715_v26 = vadd.f32 %v3714_v49, %v3713_v51 }
0x11bc   : > { %4290 = vpush %v3715_v26 }
0x11bf   : > { %v6578_v22 = vpop.permute.xlu2 %2217 }
0x11c0   : > { %v2289_v18 = vadd.f32 %v6202_v13, %v6578_v22  ;;  %v3762_v13 = vrot.slane %v3761_v19, 4 }
0x11c2   : > { %v3763_v46 = vadd.f32 %v3762_v13, %v3761_v19 }
0x11c4   : > { %v3764_v33 = vrot.slane %v3763_v46, 2 }
0x11c6   : > { %v3765_v42 = vadd.f32 %v3764_v33, %v3763_v46 }
0x11c7   : > { %v3025_v46 = vpop.permute.xlu2 %3024 }
0x11c8   : > { %v3766_v10 = vrot.slane %v3765_v42, 1 }
0x11ca   : > { %v3767_v12 = vadd.f32 %v3766_v10, %v3765_v42  ;;  %v1450_v42 = vadd.f32 %v5699_v61, %v6576_v15  ;;  %v3091_v61 = vpop.f32.mrf.mxu1 }
0x11cc   : > { %v6580_v52 = vpop.permute.xlu1 %1402 }
0x11cd   : > { %v1476_v14 = vadd.f32 %v5752_v31, %v6580_v52  ;;  %v3749_v31 = vadd.f32 %v3748_v38, %v3747_v16 }
0x11cf   : > { %v6586_v9 = vadd.f32 %v2289_v18, %v1476_v14  ;;  %v3750_v50 = vrot.slane %v3749_v31, 2  ;;  %v3826_v10 = vpop.permute.xlu2 %3825 }
0x11d1   : > { %v3751_v3 = vadd.f32 %v3750_v50, %v3749_v31 }
0x11d3   : > { %v3752_v41 = vrot.slane %v3751_v3, 1 }
0x11d5   : > { %v3753_v55 = vadd.f32 %v3752_v41, %v3751_v3  ;;  %v3021_v31 = vpop.permute.xlu1 %3020 }
0x11de   : > { %v3822_v33 = vpop.permute.xlu1 %3821 }
0x11ea   : > { %s4289_s20 = spop %4288 }
0x11eb   : > { %s6588_s19 = smul.f32 0.00024414063, %s4289_s20 }
0x11ed   : > { %s3719_s30 = smul.f32 %s6588_s19, %s6588_s19  ;;  %s4291_s2 = spop %4290  ;;  %v3735_v43 = vstv %s6588_s19 }
0x11ee   : > { %s3718_s18 = smul.f32 0.00024414063, %s4291_s2  ;;  %v3799_v1 = vsub.f32 %v6539_v32, %v3735_v43  ;;  %v3797_v44 = vsub.f32 %v6544_v58, %v3735_v43  ;;  %v3795_v56 = vsub.f32 %v6513_v40, %v3735_v43  ;;  %v3793_v32 = vsub.f32 %v6524_v30, %v3735_v43  ;;  %v4172_v58 = vld [vmem:[%s6684_s5 + $0x60] sm:$0xff]  ;;  %v4173_v40 = vld [vmem:[%s6684_s5 + $0x68] sm:$0xff] }
0x11f0   : > { %s3720_s27 = ssub.f32 %s3718_s18, %s3719_s30 }
0x11f2   : > { %s3721_s0 = smax.f32 %s6706_s16, %s3720_s27 }
0x11f3   : > { %s3722_s29 = sadd.f32 1e-08, %s3721_s0 }
0x11f5   : > { %v3723_v21 = vstv %s3722_s29 }
0x11f6   : > { %4505 = vrsqrt.f32 %v3723_v21  ;;  %vm3730_vm15 = vweird.f32 %v3723_v21 }
0x11fc   : > { %v4506_v62 = vpop.eup %4505 }
0x11fd   : > { %v3725_v0 = vmul.f32 %v4506_v62, %v3723_v21  ;;  %vm3731_vm0 = vweird.f32 %v4506_v62 }
0x11fe   : > { %vm3732_vm10 = vmor %vm3730_vm15, %vm3731_vm0 }
0x11ff   : > { %v3726_v48 = vmul.f32 %v4506_v62, %v3725_v0  ;;  %v2260_v0 = vadd.f32 %v6154_v4, %v6578_v22 }
0x1201   : > { %v3727_v25 = vmul.f32 0.5, %v3726_v48 }
0x1203   : > { %v3728_v8 = vsub.f32 1.5, %v3727_v25 }
0x1205   : > { %v3729_v24 = vmul.f32 %v4506_v62, %v3728_v8 }
0x1207   : > { %v3733_v27 = vsel %vm3732_vm10, %v4506_v62, %v3729_v24  ;;  %v1447_v62 = vadd.f32 %v5697_v37, %v6580_v52 }
0x1208   : > { %4292 = vpush %v3733_v27 }
0x1209   : > { %4294 = vpush %v3753_v55  ;;  %v2298_v8 = vadd.f32 %v2260_v0, %v1447_v62 }
0x120a   : > { %4296 = vpush %v3767_v12 }
0x1239   : > { %s4293_s22 = spop %4292 }
0x123a   : > { %v3738_v54 = vstv %s4293_s22  ;;  %s4295_s21 = spop %4294  ;;  %s433_s22 = sand.u32 1, %s4605_s24  }
0x123b   : > { %v3807_v59 = vmul.f32 %v3799_v1, %v3738_v54  ;;  %s6595_s17 = smul.f32 0.00024414063, %s4295_s21  ;;  %s4297_s20 = spop %4296  ;;  %v3805_v63 = vmul.f32 %v3797_v44, %v3738_v54  ;;  %v3803_v35 = vmul.f32 %v3795_v56, %v3738_v54  ;;  %v3801_v6 = vmul.f32 %v3793_v32, %v3738_v54  ;;  %v3913_v56 = vld [vmem:[%s6690_s11] sm:$0xff] }
0x123c   : > { %s3770_s30 = smul.f32 0.00024414063, %s4297_s20  ;;  %3916 = vperm.xlu0 %4472, %v3913_v56   ;;  %s4070_s21 = sshll.u32 %s433_s22, 4 }
0x123d   : > { %s3771_s2 = smul.f32 %s6595_s17, %s6595_s17  ;;  %3852 = vmatpush.msra.mxu0 %v3807_v59  ;;  %v3787_v51 = vstv %s6595_s17  ;;  %s3898_s17 = sld [smem:[#allocation2]]  ;;  %v3094_v59 = vpop.f32.mrf.mxu1 }
0x123e   : > { %v3800_v7 = vsub.f32 %v6542_v20, %v3787_v51  ;;  %v3798_v26 = vsub.f32 %v6546_v57, %v3787_v51  ;;  %v3796_v18 = vsub.f32 %v6515_v5, %v3787_v51  ;;  %v3794_v16 = vsub.f32 %v6526_v60, %v3787_v51  ;;  %v3062_v20 = vpop.f32.mrf.mxu0  ;;  %v2222_v60 = vpop.permute.xlu0 %2221  ;;  %s4191_s20 = sshll.u32 %s4718_s9, 4  ;;  %s3965_s27 = scalar_lea.sflag [#allocation4], %s433_s22 }
0x123f   : > { %s3772_s19 = ssub.f32 %s3770_s30, %s3771_s2  ;;  %3853 = vmatpush.msra.mxu0 %v3805_v63  ;;  %v2263_v48 = vadd.f32 %v6156_v17, %v2222_v60  ;;  %v3063_v3 = vadd.f32 %v3062_v20, %v3021_v31  ;;  %v3912_v63 = vld [vmem:[%s6689_s10] sm:$0xff]  ;;  %s4563_s30 = scalar_lea.hbm %s6691_s12, 32 }
0x1241   : > { %s3773_s18 = smax.f32 %s6706_s16, %s3772_s19  ;;  %3854 = vmatpush.msra.mxu0 %v3803_v35  ;;  %v2300_v24 = vadd.f32 %v2263_v48, %v1450_v42  ;;  %v3101_v27 = vadd.f32 %v3063_v3, %v2298_v8  ;;  %s435_s16 = scalar_lea.vmem [#allocation8], %s4070_s21 }
0x1242   : > { %s3774_s29 = sadd.f32 1e-08, %s3773_s18 }
0x1243   : > { %3855 = vmatpush.msra.mxu0 %v3801_v6  ;;  %v3903_v43 = vstv %s3898_s17  ;;  %v2292_v6 = vadd.f32 %v6204_v45, %v2222_v60  ;;  %s3978_s17 = sshll.u32 %s435_s16, 4  ;;  %s3979_s17 = int_to_ptr.vmem [resolvable:$true] %s3978_s17 }
0x1244   : > { %v3775_v53 = vstv %s3774_s29  ;;  %4176 = vmatmul.msk.f32.vlgmr.msra.gmra.mxu0 %vm1410_vm12, %v4172_v58 }
0x1245   : > { %4507 = vrsqrt.f32 %v3775_v53  ;;  %vm3782_vm11 = vweird.f32 %v3775_v53 }
0x1246   : > { %v3065_v57 = vpop.f32.mrf.mxu0 }
0x1247   : > { %v3066_v25 = vadd.f32 %v3065_v57, %v3025_v46 }
0x1249   : > { %v3103_v12 = vadd.f32 %v3066_v25, %v2300_v24 }
0x124b   : > { %v4508_v11 = vpop.eup %4507 }
0x124c   : > { %v3777_v30 = vmul.f32 %v4508_v11, %v3775_v53  ;;  %4177 = vmatmul.msk.f32.gmra.mxu0 %vm1410_vm12, %v4173_v40  ;;  %vm3783_vm1 = vweird.f32 %v4508_v11  ;;  %v1479_v53 = vadd.f32 %v5754_v34, %v6576_v15 }
0x124d   : > { %vm3784_vm2 = vmor %vm3782_vm11, %vm3783_vm1 }
0x124e   : > { %v3778_v47 = vmul.f32 %v4508_v11, %v3777_v30  ;;  %v2301_v30 = vadd.f32 %v2292_v6, %v1479_v53 }
0x1250   : > { %v3779_v2 = vmul.f32 0.5, %v3778_v47 }
0x1252   : > { %v3780_v36 = vsub.f32 1.5, %v3779_v2 }
0x1254   : > { %4178 = vmatmul.msk.f32.gmra.mxu0 %vm1410_vm12, %v4174_v39  ;;  %v3781_v29 = vmul.f32 %v4508_v11, %v3780_v36 }
0x1256   : > { %v3785_v23 = vsel %vm3784_vm2, %v4508_v11, %v3781_v29 }
0x1257   : > { %4298 = vpush %v3785_v23 }
0x125c   : > { %4179 = vmatmul.msk.f32.gmra.mxu0 %vm1410_vm12, %v4175_v28 }
0x1288   : > { %s4299_s19 = spop %4298 }
0x1289   : > { %v3790_v49 = vstv %s4299_s19  ;;  %s3976_s19 = scalar_lea.hbm %s6691_s12, %s4191_s20 }
0x128a   : > { %v3808_v19 = vmul.f32 %v3800_v7, %v3790_v49  ;;  %v3806_v14 = vmul.f32 %v3798_v26, %v3790_v49  ;;  %v3804_v38 = vmul.f32 %v3796_v18, %v3790_v49  ;;  %v3802_v13 = vmul.f32 %v3794_v16, %v3790_v49  ;;  %s3980_s18 = sshll.u32 %s3976_s19, 4  ;;  %s3981_s18 = int_to_ptr.hbm [resolvable:$true] %s3980_s18 }
0x128b   : > { %s4557_s0 = sshra.s32 %s3981_s18, 4  ;;  %s4558_s0 = int_to_ptr.hbm [resolvable:$true] %s4557_s0 }
0x128c   : > { %3879 = vmatpush.msra.mxu1 %v3808_v19  ;;  %s4559_s29 = scalar_lea.hbm %s4558_s0, 16  ;;  %p4564_p3 = scmp.lt.s32.totalorder %s4558_s0, %s6691_s12 }
0x128d   : > { %p4560_p0 = scmp.ne.s32.totalorder %s4558_s0, %s4559_s29  ;;  %p4565_p4 = scmp.lt.s32.totalorder %s4563_s30, %s4559_s29 }
0x128e   : > { %3880 = vmatpush.msra.mxu1 %v3806_v14 }
0x128f   : > { %p4561_p1 = pnand %p4560_p0, %p4735_p5  ;;  %p4566_p7 = por %p4565_p4, %p4564_p3 }
0x1290   : > { %3881 = vmatpush.msra.mxu1 %v3804_v38 }
0x1291   : > { %p4562_p2 = pneg %p4561_p1 }
0x1292   : > { %3882 = vmatpush.msra.mxu1 %v3802_v13 }
0x1293   : > { %4180 = vmatmul.msk.f32.vlgmr.msra.gmra.mxu1 %vm1410_vm12, %v4172_v58  ;;  %v3092_v58 = vadd.f32 %v3091_v61, %v3021_v31  ;;  %p4567_p8 = pnand %p4566_p7, %p4562_p2 }
0x1295   : > { %v3102_v47 = vadd.f32 %v3092_v58, %v6586_v9 }
0x129b   : > { %4181 = vmatmul.msk.f32.gmra.mxu1 %vm1410_vm12, %v4173_v40  ;;  %v3095_v40 = vadd.f32 %v3094_v59, %v3025_v46 }
0x12a3   : > { %4182 = vmatmul.msk.f32.gmra.mxu1 %vm1410_vm12, %v4174_v39  ;;  %v3104_v39 = vadd.f32 %v3095_v40, %v2301_v30 }
0x12ab   : > { %4183 = vmatmul.msk.f32.gmra.mxu1 %vm1410_vm12, %v4175_v28 }
0x12ae   : > { %v3917_v34 = vpop.permute.xlu0 %3916 }
0x12c1   : > { %v3857_v5 = vpop.f32.mrf.mxu0 }
0x12c9   : > { %v3859_v21 = vpop.f32.mrf.mxu0 }
0x12d1   : > { %v3861_v50 = vpop.f32.mrf.mxu0 }
0x12d2   : > { %v3862_v41 = vadd.f32 %v3861_v50, %v3822_v33 }
0x12d4   : > { %v3894_v37 = vadd.f32 %v3862_v41, %v3101_v27 }
0x12d6   : > { %v3904_v4 = vmul.f32 %v3903_v43, %v3894_v37  ;;  %vm3899_vm5 = vcmp.gt.f32.partialorder %v3894_v37, 0.0 }
0x12d8   : > { %v3908_v22 = vsel %vm3899_vm5, %v3894_v37, %v3904_v4 }
0x12d9   : > { %v3864_v55 = vpop.f32.mrf.mxu0 }
0x12da   : > { %v3865_v52 = vadd.f32 %v3864_v55, %v3826_v10 }
0x12dc   : > { %v3896_v1 = vadd.f32 %v3865_v52, %v3103_v12 }
0x12de   : > { %v3906_v54 = vmul.f32 %v3903_v43, %v3896_v1  ;;  %vm3901_vm12 = vcmp.gt.f32.partialorder %v3896_v1, 0.0 }
0x12e0   : > { %v3910_v17 = vsel %vm3901_vm12, %v3896_v1, %v3906_v54 }
0x12e1   : > { %3936 = vmatpush.msra.mxu2 %v3910_v17 }
0x12e3   : > { %3937 = vmatpush.msra.mxu2 %v3908_v22 }
0x12e4   : > { %4184 = vmatmul.msk.f32.vlgmr.msra.gmra.mxu2 %vm697_vm8, %v3912_v63 }
0x1310   : > { %v3884_v44 = vpop.f32.mrf.mxu1 }
0x1318   : > { %v3886_v35 = vpop.f32.mrf.mxu1 }
0x1320   : > { %v3888_v32 = vpop.f32.mrf.mxu1 }
0x1321   : > { %v3889_v11 = vadd.f32 %v3888_v32, %v3822_v33 }
0x1323   : > { %v3895_v36 = vadd.f32 %v3889_v11, %v3102_v47 }
0x1325   : > { %v3905_v51 = vmul.f32 %v3903_v43, %v3895_v36  ;;  %vm3900_vm7 = vcmp.gt.f32.partialorder %v3895_v36, 0.0 }
0x1327   : > { %v3909_v7 = vsel %vm3900_vm7, %v3895_v36, %v3905_v51 }
0x1328   : > { %v3891_v2 = vpop.f32.mrf.mxu1 }
0x1329   : > { %v3892_v29 = vadd.f32 %v3891_v2, %v3826_v10 }
0x132b   : > { %v3897_v23 = vadd.f32 %v3892_v29, %v3104_v39 }
0x132d   : > { %v3907_v28 = vmul.f32 %v3903_v43, %v3897_v23  ;;  %vm3902_vm6 = vcmp.gt.f32.partialorder %v3897_v23, 0.0 }
0x132f   : > { %v3911_v45 = vsel %vm3902_vm6, %v3897_v23, %v3907_v28 }
0x1330   : > { %3956 = vmatpush.msra.mxu3 %v3911_v45 }
0x1332   : > { %3957 = vmatpush.msra.mxu3 %v3909_v7 }
0x1333   : > { %4185 = vmatmul.msk.f32.vlgmr.msra.gmra.mxu3 %vm697_vm8, %v3912_v63 }
0x1367   : > { %v3939_v15 = vpop.f32.mrf.mxu2 }
0x1368   : > { %v3940_v9 = vadd.f32 %v3939_v15, %v3917_v34 }
0x136a   : > { %3962 = vst [vmem:[%s435_s16] sm:$0xff] %v3940_v9 }
0x13b6   : > { %v3959_v49 = vpop.f32.mrf.mxu3 }
0x13b7   : > { %v3960_v26 = vadd.f32 %v3959_v49, %v3917_v34 }
0x13b9   : > { %3963 = vst [vmem:[%s435_s16 + $0x8] sm:$0xff] %v3960_v26 }
0x13ba   : > { %4570 = shalt.err (!%p4567_p8)
}
0x13bb   : > { %4308 = dma.vmem_to_hbm [thread:$0]  (%p4735_p5), %s3979_s17, 256, %s3981_s18, %s3965_s27  }
0x13bc PF: > { %p4325_p9 = scmp.ge.s32.totalorder %s4613_s26, 2  ;;  %s3992_s22 = sand.u32 1, %s4601_s23  }
0x13bd   : > { %s3993_s16 = scalar_lea.sflag [#allocation4], %s3992_s22 }
0x13be   : > { %p4318_p10 = pnand %p4325_p9, %p4739_p6 }
0x13c0   : > { %p4319_p11 = pneg %p4318_p10 }
0x13c2   : > { %4596 = dma.done.wait (%p4319_p11), %s3993_s16, 256  }
0x13c3   : > { %4598 = vsyncadd (%p4319_p11), %s3993_s16, 4294967040  ;;  %p25_p12 = scmp.ge.s32.totalorder %s4722_s28, 4   ;;  %s6710_s23 = smov %s4605_s24 }
0x13c4   : > { %s6711_s24 = smov %s4609_s25  ;;  %s6712_s25 = smov %s4733_s13 }
0x13c5   : > { %s6713_s26 = smov %s4722_s28  ;;  %27 = sbr.rel (!%p25_p12) target bundleno = 9 (0x9), region = 121 }
0x13ca   :  { %3999 = vsyncpa [#allocation4], 1 }
0x13cb   :  { %4001 = vsyncpa [#allocation4 + $0x1], 1 }
0x13cc   :  { %4002 = vsyncpa [#allocation5], 1 }
0x13cd   :  { %4004 = vsyncpa [#allocation5 + $0x1], 1 }
0x13ce   :  { %4005 = vsyncpa [#allocation7], 1 }

</bundles_post_ra>
